<compile_context>
chip_gen: v7x
topology: tpu7x:2x2x1
jax: 0.10.0
libtpu: 0.0.40
codegen_flags: <defaults>
</compile_context>

<pallas_src>
import jax
import jax.numpy as jnp
from jax.experimental import pallas as pl
from jax.experimental.pallas import tpu as pltpu

H1 = 256          # preprocess1 output dim
H2 = 128          # hidden_conv_1 == hidden_conv_2
BN_EPS = 1e-5
NEG_SLOPE = 0.01  # F.leaky_relu default


def _leaky_relu(x):
    return jnp.where(x >= 0, x, NEG_SLOPE * x)


def roland_kernel(
    # inputs
    x_ref, a_ref,
    w1_ref, b1_ref,
    w2_ref, b2_ref,
    wc1_ref, bc1_ref,
    wih1_ref, whh1_ref, bih1_ref, bhh1_ref,
    wc2_ref, bc2_ref,
    wih2_ref, whh2_ref, bih2_ref, bhh2_ref,
    wp_ref, bp_ref,
    src_ref, dst_ref,          # SMEM int32 label-edge endpoints
    prev0_ref, prev1_ref,
    # outputs
    out_ref, ce0_ref, ce1_ref, ce2_ref,
    # scratch
    had_scr,
):
    bf16 = jnp.bfloat16
    f32 = jnp.float32
    H = H2

    x = x_ref[...]
    a = a_ref[...]
    prev0 = prev0_ref[...]
    prev1 = prev1_ref[...]

    # --- preprocess1 (+ folded bn1) -> leaky_relu -> dropout (eval: identity) ---
    h = jnp.dot(x, w1_ref[...], preferred_element_type=f32) + b1_ref[...]
    h = _leaky_relu(h)

    # --- preprocess2 (+ folded bn2) -> leaky_relu -> dropout (eval: identity) ---
    h = jnp.dot(h.astype(bf16), w2_ref[...], preferred_element_type=f32) + b2_ref[...]
    h = _leaky_relu(h)

    # TODO(synk): ReshapeH.reshape_to_fill compares an int against a 2-D tensor
    # (always errors in PyTorch); intended semantics when x covers all nodes is
    # identity, which is what we implement (x has num_nodes rows here).

    # Shared gru1 hidden projection: both gru1 calls use hprev=prev0, so
    # gh1 = prev0 @ Whh1^T + bhh1 is computed exactly once and reused.
    gh1 = jnp.dot(prev0.astype(bf16), whh1_ref[...],
                  preferred_element_type=f32) + bhh1_ref[...]

    def gru(x_in, hprev, gh, wih_ref, bih_ref):
        # PyTorch nn.GRUCell gate ordering: [r, z, n]
        gi = jnp.dot(x_in.astype(bf16), wih_ref[...],
                     preferred_element_type=f32) + bih_ref[...]
        r = jax.nn.sigmoid(gi[:, :H] + gh[:, :H])
        z = jax.nn.sigmoid(gi[:, H:2 * H] + gh[:, H:2 * H])
        n = jnp.tanh(gi[:, 2 * H:] + r * gh[:, 2 * H:])
        return (1.0 - z) * n + z * hprev

    # --- 0-hop node embedding: gru1(h, previous_embeddings[0]) ---
    ce0_ref[...] = gru(h, prev0, gh1, wih1_ref, bih1_ref)

    # --- conv1: A_norm @ (h W^T) + b (+ folded bn3) -> leaky_relu -> dropout ---
    # TODO(synk): for large graphs (N >~ a few thousand) dense bf16 A no longer
    # fits VMEM; tile the two SpMMs over node-row panels with a grid
    # (A BlockSpec (TILE_N, N)) and a "parallel" axis for megacore/2-TC chips.
    hw = jnp.dot(h.astype(bf16), wc1_ref[...], preferred_element_type=f32)
    h = jnp.dot(a, hw.astype(bf16), preferred_element_type=f32) + bc1_ref[...]
    h = _leaky_relu(h)

    # --- temporal update (train=True, update='gru'): gru1(h, prev0), reuses gh1 ---
    h = gru(h, prev0, gh1, wih1_ref, bih1_ref)
    ce1_ref[...] = h

    # --- conv2 (+ folded bn4) -> leaky_relu -> dropout ---
    hw = jnp.dot(h.astype(bf16), wc2_ref[...], preferred_element_type=f32)
    h = jnp.dot(a, hw.astype(bf16), preferred_element_type=f32) + bc2_ref[...]
    h = _leaky_relu(h)

    # --- temporal update: gru2(h, prev1) ---
    gh2 = jnp.dot(prev1.astype(bf16), whh2_ref[...],
                  preferred_element_type=f32) + bhh2_ref[...]
    h = gru(h, prev1, gh2, wih2_ref, bih2_ref)
    ce2_ref[...] = h

    # --- LP head: SMEM-index row gather with the hadamard product fused into
    #     the gather loop (single [E,H] scratch), then one folded
    #     (postprocess1 + sum) matvec on the MXU. ---
    e_lbl = had_scr.shape[0]
    for i in range(e_lbl):                      # static, tiny trip count
        s = src_ref[i]
        d = dst_ref[i]
        had_scr[pl.ds(i, 1), :] = (ce2_ref[pl.ds(s, 1), :]
                                   * ce2_ref[pl.ds(d, 1), :])

    out_ref[...] = jnp.dot(had_scr[...], wp_ref[...],
                           preferred_element_type=f32) + bp_ref[...]


def init_params(key, input_dim, output_dim):
    ks = iter(jax.random.split(key, 24))

    def w(shape):
        return jax.random.normal(next(ks), shape, jnp.float32) * 0.1

    H = H2
    return dict(
        # PyTorch convention (out, in); biases (1, out)
        w1=w((H1, input_dim)), b1=w((1, H1)),
        g1=jnp.ones((1, H1), jnp.float32), be1=jnp.zeros((1, H1), jnp.float32),
        w2=w((H, H1)), b2=w((1, H)),
        g2=jnp.ones((1, H), jnp.float32), be2=jnp.zeros((1, H), jnp.float32),
        wc1=w((H, H)), bc1=w((1, H)),
        g3=jnp.ones((1, H), jnp.float32), be3=jnp.zeros((1, H), jnp.float32),
        wih1=w((3 * H, H)), whh1=w((3 * H, H)), bih1=w((1, 3 * H)), bhh1=w((1, 3 * H)),
        wc2=w((H, H)), bc2=w((1, H)),
        g4=jnp.ones((1, H), jnp.float32), be4=jnp.zeros((1, H), jnp.float32),
        wih2=w((3 * H, H)), whh2=w((3 * H, H)), bih2=w((1, 3 * H)), bhh2=w((1, 3 * H)),
        wp=w((output_dim, H)), bp=w((1, output_dim)),
    )


def prepare_params(p):
    """One-time prep: fold eval-mode BN (running mean=0, var=1) into the
    preceding Linear/GCN weights, pre-transpose everything to [in, out], cast
    MXU weights to bf16, and fold the LP-head sum over output_dim into a single
    matvec column."""
    s = 1.0 / jnp.sqrt(jnp.float32(1.0 + BN_EPS))

    def fold(w, b, gamma, beta):
        scale = gamma * s                                  # (1, out)
        w_eff = (w * scale.T).T.astype(jnp.bfloat16)       # -> (in, out), bf16
        b_eff = (b * scale + beta).astype(jnp.float32)
        return w_eff, b_eff

    w1, b1 = fold(p['w1'], p['b1'], p['g1'], p['be1'])
    w2, b2 = fold(p['w2'], p['b2'], p['g2'], p['be2'])
    wc1, bc1 = fold(p['wc1'], p['bc1'], p['g3'], p['be3'])
    wc2, bc2 = fold(p['wc2'], p['bc2'], p['g4'], p['be4'])

    # sum_o (h_had @ wp[o,:] + bp[o]) == h_had @ sum_o wp[o,:] + sum(bp)
    wp_sum = jnp.sum(p['wp'], axis=0, keepdims=True).T.astype(jnp.float32)  # (H2, 1)
    bp_sum = jnp.sum(p['bp']).reshape(1, 1).astype(jnp.float32)

    bf = jnp.bfloat16
    return dict(
        w1=w1, b1=b1, w2=w2, b2=b2,
        wc1=wc1, bc1=bc1, wc2=wc2, bc2=bc2,
        wih1=p['wih1'].T.astype(bf), whh1=p['whh1'].T.astype(bf),
        bih1=p['bih1'].astype(jnp.float32), bhh1=p['bhh1'].astype(jnp.float32),
        wih2=p['wih2'].T.astype(bf), whh2=p['whh2'].T.astype(bf),
        bih2=p['bih2'].astype(jnp.float32), bhh2=p['bhh2'].astype(jnp.float32),
        wp=wp_sum, bp=bp_sum,
    )


def gcn_norm_dense(edge_index, num_nodes):
    # Dense GCNConv normalization: D^{-1/2} (A + I) D^{-1/2}. Duplicate edges
    # sum (matches PyG's scatter-add) and a self-loop of weight 1 is appended.
    src, dst = edge_index[0], edge_index[1]
    a = jnp.zeros((num_nodes, num_nodes), jnp.float32).at[dst, src].add(1.0)
    a = a + jnp.eye(num_nodes, dtype=jnp.float32)
    deg = a.sum(axis=1)
    dinv = jnp.where(deg > 0, 1.0 / jnp.sqrt(deg), 0.0)
    return dinv[:, None] * a * dinv[None, :]


@jax.jit
def roland_forward(x, a_norm, kp, src_idx, dst_idx, prev0, prev1):
    n_nodes, f_in = x.shape
    e_lbl = src_idx.shape[0]

    inputs = [
        x.astype(jnp.bfloat16), a_norm.astype(jnp.bfloat16),
        kp['w1'], kp['b1'], kp['w2'], kp['b2'],
        kp['wc1'], kp['bc1'],
        kp['wih1'], kp['whh1'], kp['bih1'], kp['bhh1'],
        kp['wc2'], kp['bc2'],
        kp['wih2'], kp['whh2'], kp['bih2'], kp['bhh2'],
        kp['wp'], kp['bp'],
        src_idx.astype(jnp.int32), dst_idx.astype(jnp.int32),
        prev0, prev1,
    ]

    vmem = pl.BlockSpec(memory_space=pltpu.MemorySpace.VMEM)
    smem = pl.BlockSpec(memory_space=pltpu.MemorySpace.SMEM)
    in_specs = [vmem] * 20 + [smem, smem] + [vmem, vmem]

    out_shapes = (
        jax.ShapeDtypeStruct((e_lbl, 1), jnp.float32),
        jax.ShapeDtypeStruct((n_nodes, H2), jnp.float32),
        jax.ShapeDtypeStruct((n_nodes, H2), jnp.float32),
        jax.ShapeDtypeStruct((n_nodes, H2), jnp.float32),
    )

    # Explicit scoped-VMEM sizing (everything is resident; double-buffer margin).
    in_bytes = sum(int(t.size) * t.dtype.itemsize for t in inputs)
    out_bytes = 4 * (e_lbl * 1 + 3 * n_nodes * H2)
    scratch_bytes = e_lbl * H2 * 4
    vmem_limit = int(min(100 * 1024 * 1024,
                         2 * (in_bytes + out_bytes + scratch_bytes) + (8 << 20)))

    flops = 2 * (
        n_nodes * f_in * H1 + n_nodes * H1 * H2                # preprocess 1/2
        + 2 * (n_nodes * H2 * H2 + n_nodes * n_nodes * H2)     # conv1, conv2
        + 5 * (n_nodes * H2 * 3 * H2)                          # 3x gi + 2x gh (gh1 shared)
        + e_lbl * H2                                           # LP head matvec
    )
    transcendentals = 9 * n_nodes * H2                         # 3 GRU x (2 sigmoid + tanh)
    bytes_accessed = in_bytes + out_bytes

    out, ce0, ce1, ce2 = pl.pallas_call(
        roland_kernel,
        out_shape=out_shapes,
        in_specs=in_specs,
        out_specs=(vmem, vmem, vmem, vmem),
        scratch_shapes=[
            pltpu.VMEM((e_lbl, H2), jnp.float32),
        ],
        compiler_params=pltpu.CompilerParams(vmem_limit_bytes=vmem_limit),
        cost_estimate=pl.CostEstimate(
            flops=int(flops),
            transcendentals=int(transcendentals),
            bytes_accessed=int(bytes_accessed),
        ),
    )(*inputs)
    return out[:, 0], (ce0, ce1, ce2)


if __name__ == "__main__":
    N, F_IN, OUT_DIM = 64, 16, 8   # num_nodes, input_dim, output_dim
    E, E_LBL = 64, 16              # graph edges (pre-symmetrization), label edges

    key = jax.random.PRNGKey(0)
    k_x, k_e, k_lbl, k_p, k_prev0, k_prev1 = jax.random.split(key, 6)

    x = jax.random.normal(k_x, (N, F_IN), jnp.float32)
    e = jax.random.randint(k_e, (2, E), 0, N)
    edge_index = jnp.concatenate([e, e[::-1]], axis=1)          # (2, 2E), symmetric
    edge_label_index = jax.random.randint(k_lbl, (2, E_LBL), 0, N)

    params = init_params(k_p, F_IN, OUT_DIM)
    kparams = prepare_params(params)   # one-time BN fold / transpose / bf16 cast
    prev0 = jax.random.normal(k_prev0, (N, H2), jnp.float32) * 0.1
    prev1 = jax.random.normal(k_prev1, (N, H2), jnp.float32) * 0.1

    # Glue: dense normalized adjacency (kernel uses SMEM index gather for the head).
    a_norm = gcn_norm_dense(edge_index, N)

    out, current_embeddings = roland_forward(
        x, a_norm, kparams,
        edge_label_index[0], edge_label_index[1],
        prev0, prev1)
    jax.block_until_ready((out, current_embeddings))

    assert out.shape == (E_LBL,)
    assert all(ce.shape == (N, H2) for ce in current_embeddings)
    assert bool(jnp.all(jnp.isfinite(out)))
    print("KERNEL_OK")
</pallas_src>

<mosaic_0001>
module attributes {stable_mosaic.version = 11 : i64} {
  func.func @roland_kernel(%arg0: memref<64x16xbf16, #tpu.memory_space<vmem>>, %arg1: memref<64x64xbf16, #tpu.memory_space<vmem>>, %arg2: memref<16x256xbf16, #tpu.memory_space<vmem>>, %arg3: memref<1x256xf32, #tpu.memory_space<vmem>>, %arg4: memref<256x128xbf16, #tpu.memory_space<vmem>>, %arg5: memref<1x128xf32, #tpu.memory_space<vmem>>, %arg6: memref<128x128xbf16, #tpu.memory_space<vmem>>, %arg7: memref<1x128xf32, #tpu.memory_space<vmem>>, %arg8: memref<128x384xbf16, #tpu.memory_space<vmem>>, %arg9: memref<128x384xbf16, #tpu.memory_space<vmem>>, %arg10: memref<1x384xf32, #tpu.memory_space<vmem>>, %arg11: memref<1x384xf32, #tpu.memory_space<vmem>>, %arg12: memref<128x128xbf16, #tpu.memory_space<vmem>>, %arg13: memref<1x128xf32, #tpu.memory_space<vmem>>, %arg14: memref<128x384xbf16, #tpu.memory_space<vmem>>, %arg15: memref<128x384xbf16, #tpu.memory_space<vmem>>, %arg16: memref<1x384xf32, #tpu.memory_space<vmem>>, %arg17: memref<1x384xf32, #tpu.memory_space<vmem>>, %arg18: memref<128x1xf32, #tpu.memory_space<vmem>>, %arg19: memref<1x1xf32, #tpu.memory_space<vmem>>, %arg20: memref<16xi32, #tpu.memory_space<smem>>, %arg21: memref<16xi32, #tpu.memory_space<smem>>, %arg22: memref<64x128xf32, #tpu.memory_space<vmem>>, %arg23: memref<64x128xf32, #tpu.memory_space<vmem>>, %arg24: memref<16x1xf32, #tpu.memory_space<vmem>>, %arg25: memref<64x128xf32, #tpu.memory_space<vmem>>, %arg26: memref<64x128xf32, #tpu.memory_space<vmem>>, %arg27: memref<64x128xf32, #tpu.memory_space<vmem>>, %arg28: memref<16x128xf32, #tpu.memory_space<vmem>>) attributes {dimension_semantics = [], scalar_prefetch = 0 : i64, scratch_operands = 1 : i64, tpu.core_type = #tpu.core_type<tc>} {
    %c0 = arith.constant 0 : index
    %c0_0 = arith.constant 0 : index
    %0 = vector.load %arg0[%c0, %c0_0] : memref<64x16xbf16, #tpu.memory_space<vmem>>, vector<64x16xbf16>
    %c0_1 = arith.constant 0 : index
    %c0_2 = arith.constant 0 : index
    %1 = vector.load %arg1[%c0_1, %c0_2] : memref<64x64xbf16, #tpu.memory_space<vmem>>, vector<64x64xbf16>
    %c0_3 = arith.constant 0 : index
    %c0_4 = arith.constant 0 : index
    %2 = vector.load %arg22[%c0_3, %c0_4] : memref<64x128xf32, #tpu.memory_space<vmem>>, vector<64x128xf32>
    %c0_5 = arith.constant 0 : index
    %c0_6 = arith.constant 0 : index
    %3 = vector.load %arg23[%c0_5, %c0_6] : memref<64x128xf32, #tpu.memory_space<vmem>>, vector<64x128xf32>
    %c0_7 = arith.constant 0 : index
    %c0_8 = arith.constant 0 : index
    %4 = vector.load %arg2[%c0_7, %c0_8] : memref<16x256xbf16, #tpu.memory_space<vmem>>, vector<16x256xbf16>
    %cst = arith.constant dense<0.000000e+00> : vector<64x256xf32>
    %5 = tpu.matmul %0, %4, %cst {dimension_numbers = #tpu.dot_dimension_numbers<[1], [0], [0], [1], [0, 0, 1, 1], [], []>} : vector<64x16xbf16>, vector<16x256xbf16>, vector<64x256xf32> -> vector<64x256xf32>
    %c0_9 = arith.constant 0 : index
    %c0_10 = arith.constant 0 : index
    %6 = vector.load %arg3[%c0_9, %c0_10] : memref<1x256xf32, #tpu.memory_space<vmem>>, vector<1x256xf32>
    %7 = vector.broadcast %6 : vector<1x256xf32> to vector<64x256xf32>
    %8 = arith.addf %5, %7 : vector<64x256xf32>
    %cst_11 = arith.constant 0.000000e+00 : f32
    %9 = vector.broadcast %cst_11 : f32 to vector<64x256xf32>
    %10 = arith.cmpf oge, %8, %9 : vector<64x256xf32>
    %cst_12 = arith.constant 0.00999999977 : f32
    %11 = vector.broadcast %cst_12 : f32 to vector<64x256xf32>
    %12 = arith.mulf %11, %8 : vector<64x256xf32>
    %13 = arith.select %10, %8, %12 : vector<64x256xi1>, vector<64x256xf32>
    %14 = arith.truncf %13 : vector<64x256xf32> to vector<64x256xbf16>
    %c0_13 = arith.constant 0 : index
    %c0_14 = arith.constant 0 : index
    %15 = vector.load %arg4[%c0_13, %c0_14] : memref<256x128xbf16, #tpu.memory_space<vmem>>, vector<256x128xbf16>
    %cst_15 = arith.constant dense<0.000000e+00> : vector<64x128xf32>
    %16 = tpu.matmul %14, %15, %cst_15 {dimension_numbers = #tpu.dot_dimension_numbers<[1], [0], [0], [1], [0, 0, 1, 1], [], []>} : vector<64x256xbf16>, vector<256x128xbf16>, vector<64x128xf32> -> vector<64x128xf32>
    %c0_16 = arith.constant 0 : index
    %c0_17 = arith.constant 0 : index
    %17 = vector.load %arg5[%c0_16, %c0_17] : memref<1x128xf32, #tpu.memory_space<vmem>>, vector<1x128xf32>
    %18 = vector.broadcast %17 : vector<1x128xf32> to vector<64x128xf32>
    %19 = arith.addf %16, %18 : vector<64x128xf32>
    %cst_18 = arith.constant 0.000000e+00 : f32
    %20 = vector.broadcast %cst_18 : f32 to vector<64x128xf32>
    %21 = arith.cmpf oge, %19, %20 : vector<64x128xf32>
    %cst_19 = arith.constant 0.00999999977 : f32
    %22 = vector.broadcast %cst_19 : f32 to vector<64x128xf32>
    %23 = arith.mulf %22, %19 : vector<64x128xf32>
    %24 = arith.select %21, %19, %23 : vector<64x128xi1>, vector<64x128xf32>
    %25 = arith.truncf %2 : vector<64x128xf32> to vector<64x128xbf16>
    %c0_20 = arith.constant 0 : index
    %c0_21 = arith.constant 0 : index
    %26 = vector.load %arg9[%c0_20, %c0_21] : memref<128x384xbf16, #tpu.memory_space<vmem>>, vector<128x384xbf16>
    %cst_22 = arith.constant dense<0.000000e+00> : vector<64x384xf32>
    %27 = tpu.matmul %25, %26, %cst_22 {dimension_numbers = #tpu.dot_dimension_numbers<[1], [0], [0], [1], [0, 0, 1, 1], [], []>} : vector<64x128xbf16>, vector<128x384xbf16>, vector<64x384xf32> -> vector<64x384xf32>
    %c0_23 = arith.constant 0 : index
    %c0_24 = arith.constant 0 : index
    %28 = vector.load %arg11[%c0_23, %c0_24] : memref<1x384xf32, #tpu.memory_space<vmem>>, vector<1x384xf32>
    %29 = vector.broadcast %28 : vector<1x384xf32> to vector<64x384xf32>
    %30 = arith.addf %27, %29 : vector<64x384xf32>
    %31 = arith.truncf %24 : vector<64x128xf32> to vector<64x128xbf16>
    %c0_25 = arith.constant 0 : index
    %c0_26 = arith.constant 0 : index
    %32 = vector.load %arg8[%c0_25, %c0_26] : memref<128x384xbf16, #tpu.memory_space<vmem>>, vector<128x384xbf16>
    %cst_27 = arith.constant dense<0.000000e+00> : vector<64x384xf32>
    %33 = tpu.matmul %31, %32, %cst_27 {dimension_numbers = #tpu.dot_dimension_numbers<[1], [0], [0], [1], [0, 0, 1, 1], [], []>} : vector<64x128xbf16>, vector<128x384xbf16>, vector<64x384xf32> -> vector<64x384xf32>
    %c0_28 = arith.constant 0 : index
    %c0_29 = arith.constant 0 : index
    %34 = vector.load %arg10[%c0_28, %c0_29] : memref<1x384xf32, #tpu.memory_space<vmem>>, vector<1x384xf32>
    %35 = vector.broadcast %34 : vector<1x384xf32> to vector<64x384xf32>
    %36 = arith.addf %33, %35 : vector<64x384xf32>
    %37 = vector.extract_strided_slice %36 {offsets = [0, 0], sizes = [64, 128], strides = [1, 1]} : vector<64x384xf32> to vector<64x128xf32>
    %38 = vector.extract_strided_slice %30 {offsets = [0, 0], sizes = [64, 128], strides = [1, 1]} : vector<64x384xf32> to vector<64x128xf32>
    %39 = arith.addf %37, %38 : vector<64x128xf32>
    %40 = arith.negf %39 : vector<64x128xf32>
    %41 = math.exp %40 : vector<64x128xf32>
    %cst_30 = arith.constant 1.000000e+00 : f32
    %42 = vector.broadcast %cst_30 : f32 to vector<64x128xf32>
    %43 = arith.addf %42, %41 : vector<64x128xf32>
    %44 = arith.divf %42, %43 : vector<64x128xf32>
    %45 = vector.extract_strided_slice %36 {offsets = [0, 128], sizes = [64, 128], strides = [1, 1]} : vector<64x384xf32> to vector<64x128xf32>
    %46 = vector.extract_strided_slice %30 {offsets = [0, 128], sizes = [64, 128], strides = [1, 1]} : vector<64x384xf32> to vector<64x128xf32>
    %47 = arith.addf %45, %46 : vector<64x128xf32>
    %48 = arith.negf %47 : vector<64x128xf32>
    %49 = math.exp %48 : vector<64x128xf32>
    %cst_31 = arith.constant 1.000000e+00 : f32
    %50 = vector.broadcast %cst_31 : f32 to vector<64x128xf32>
    %51 = arith.addf %50, %49 : vector<64x128xf32>
    %52 = arith.divf %50, %51 : vector<64x128xf32>
    %53 = vector.extract_strided_slice %36 {offsets = [0, 256], sizes = [64, 128], strides = [1, 1]} : vector<64x384xf32> to vector<64x128xf32>
    %54 = vector.extract_strided_slice %30 {offsets = [0, 256], sizes = [64, 128], strides = [1, 1]} : vector<64x384xf32> to vector<64x128xf32>
    %55 = arith.mulf %44, %54 : vector<64x128xf32>
    %56 = arith.addf %53, %55 : vector<64x128xf32>
    %57 = math.tanh %56 : vector<64x128xf32>
    %cst_32 = arith.constant 1.000000e+00 : f32
    %58 = vector.broadcast %cst_32 : f32 to vector<64x128xf32>
    %59 = arith.subf %58, %52 : vector<64x128xf32>
    %60 = arith.mulf %59, %57 : vector<64x128xf32>
    %61 = arith.mulf %52, %2 : vector<64x128xf32>
    %62 = arith.addf %60, %61 : vector<64x128xf32>
    %c0_33 = arith.constant 0 : index
    %c0_34 = arith.constant 0 : index
    %63 = vector.load %arg25[%c0_33, %c0_34] : memref<64x128xf32, #tpu.memory_space<vmem>>, vector<64x128xf32>
    tpu.vector_store %arg25[%c0_33, %c0_34], %62 {strides = array<i32>} : memref<64x128xf32, #tpu.memory_space<vmem>>, vector<64x128xf32>,
    %64 = arith.truncf %24 : vector<64x128xf32> to vector<64x128xbf16>
    %c0_35 = arith.constant 0 : index
    %c0_36 = arith.constant 0 : index
    %65 = vector.load %arg6[%c0_35, %c0_36] : memref<128x128xbf16, #tpu.memory_space<vmem>>, vector<128x128xbf16>
    %cst_37 = arith.constant dense<0.000000e+00> : vector<64x128xf32>
    %66 = tpu.matmul %64, %65, %cst_37 {dimension_numbers = #tpu.dot_dimension_numbers<[1], [0], [0], [1], [0, 0, 1, 1], [], []>} : vector<64x128xbf16>, vector<128x128xbf16>, vector<64x128xf32> -> vector<64x128xf32>
    %67 = arith.truncf %66 : vector<64x128xf32> to vector<64x128xbf16>
    %cst_38 = arith.constant dense<0.000000e+00> : vector<64x128xf32>
    %68 = tpu.matmul %1, %67, %cst_38 {dimension_numbers = #tpu.dot_dimension_numbers<[1], [0], [0], [1], [0, 0, 1, 1], [], []>} : vector<64x64xbf16>, vector<64x128xbf16>, vector<64x128xf32> -> vector<64x128xf32>
    %c0_39 = arith.constant 0 : index
    %c0_40 = arith.constant 0 : index
    %69 = vector.load %arg7[%c0_39, %c0_40] : memref<1x128xf32, #tpu.memory_space<vmem>>, vector<1x128xf32>
    %70 = vector.broadcast %69 : vector<1x128xf32> to vector<64x128xf32>
    %71 = arith.addf %68, %70 : vector<64x128xf32>
    %cst_41 = arith.constant 0.000000e+00 : f32
    %72 = vector.broadcast %cst_41 : f32 to vector<64x128xf32>
    %73 = arith.cmpf oge, %71, %72 : vector<64x128xf32>
    %cst_42 = arith.constant 0.00999999977 : f32
    %74 = vector.broadcast %cst_42 : f32 to vector<64x128xf32>
    %75 = arith.mulf %74, %71 : vector<64x128xf32>
    %76 = arith.select %73, %71, %75 : vector<64x128xi1>, vector<64x128xf32>
    %77 = arith.truncf %76 : vector<64x128xf32> to vector<64x128xbf16>
    %c0_43 = arith.constant 0 : index
    %c0_44 = arith.constant 0 : index
    %78 = vector.load %arg8[%c0_43, %c0_44] : memref<128x384xbf16, #tpu.memory_space<vmem>>, vector<128x384xbf16>
    %cst_45 = arith.constant dense<0.000000e+00> : vector<64x384xf32>
    %79 = tpu.matmul %77, %78, %cst_45 {dimension_numbers = #tpu.dot_dimension_numbers<[1], [0], [0], [1], [0, 0, 1, 1], [], []>} : vector<64x128xbf16>, vector<128x384xbf16>, vector<64x384xf32> -> vector<64x384xf32>
    %c0_46 = arith.constant 0 : index
    %c0_47 = arith.constant 0 : index
    %80 = vector.load %arg10[%c0_46, %c0_47] : memref<1x384xf32, #tpu.memory_space<vmem>>, vector<1x384xf32>
    %81 = vector.broadcast %80 : vector<1x384xf32> to vector<64x384xf32>
    %82 = arith.addf %79, %81 : vector<64x384xf32>
    %83 = vector.extract_strided_slice %82 {offsets = [0, 0], sizes = [64, 128], strides = [1, 1]} : vector<64x384xf32> to vector<64x128xf32>
    %84 = vector.extract_strided_slice %30 {offsets = [0, 0], sizes = [64, 128], strides = [1, 1]} : vector<64x384xf32> to vector<64x128xf32>
    %85 = arith.addf %83, %84 : vector<64x128xf32>
    %86 = arith.negf %85 : vector<64x128xf32>
    %87 = math.exp %86 : vector<64x128xf32>
    %cst_48 = arith.constant 1.000000e+00 : f32
    %88 = vector.broadcast %cst_48 : f32 to vector<64x128xf32>
    %89 = arith.addf %88, %87 : vector<64x128xf32>
    %90 = arith.divf %88, %89 : vector<64x128xf32>
    %91 = vector.extract_strided_slice %82 {offsets = [0, 128], sizes = [64, 128], strides = [1, 1]} : vector<64x384xf32> to vector<64x128xf32>
    %92 = vector.extract_strided_slice %30 {offsets = [0, 128], sizes = [64, 128], strides = [1, 1]} : vector<64x384xf32> to vector<64x128xf32>
    %93 = arith.addf %91, %92 : vector<64x128xf32>
    %94 = arith.negf %93 : vector<64x128xf32>
    %95 = math.exp %94 : vector<64x128xf32>
    %cst_49 = arith.constant 1.000000e+00 : f32
    %96 = vector.broadcast %cst_49 : f32 to vector<64x128xf32>
    %97 = arith.addf %96, %95 : vector<64x128xf32>
    %98 = arith.divf %96, %97 : vector<64x128xf32>
    %99 = vector.extract_strided_slice %82 {offsets = [0, 256], sizes = [64, 128], strides = [1, 1]} : vector<64x384xf32> to vector<64x128xf32>
    %100 = vector.extract_strided_slice %30 {offsets = [0, 256], sizes = [64, 128], strides = [1, 1]} : vector<64x384xf32> to vector<64x128xf32>
    %101 = arith.mulf %90, %100 : vector<64x128xf32>
    %102 = arith.addf %99, %101 : vector<64x128xf32>
    %103 = math.tanh %102 : vector<64x128xf32>
    %cst_50 = arith.constant 1.000000e+00 : f32
    %104 = vector.broadcast %cst_50 : f32 to vector<64x128xf32>
    %105 = arith.subf %104, %98 : vector<64x128xf32>
    %106 = arith.mulf %105, %103 : vector<64x128xf32>
    %107 = arith.mulf %98, %2 : vector<64x128xf32>
    %108 = arith.addf %106, %107 : vector<64x128xf32>
    %c0_51 = arith.constant 0 : index
    %c0_52 = arith.constant 0 : index
    %109 = vector.load %arg26[%c0_51, %c0_52] : memref<64x128xf32, #tpu.memory_space<vmem>>, vector<64x128xf32>
    tpu.vector_store %arg26[%c0_51, %c0_52], %108 {strides = array<i32>} : memref<64x128xf32, #tpu.memory_space<vmem>>, vector<64x128xf32>,
    %110 = arith.truncf %108 : vector<64x128xf32> to vector<64x128xbf16>
    %c0_53 = arith.constant 0 : index
    %c0_54 = arith.constant 0 : index
    %111 = vector.load %arg12[%c0_53, %c0_54] : memref<128x128xbf16, #tpu.memory_space<vmem>>, vector<128x128xbf16>
    %cst_55 = arith.constant dense<0.000000e+00> : vector<64x128xf32>
    %112 = tpu.matmul %110, %111, %cst_55 {dimension_numbers = #tpu.dot_dimension_numbers<[1], [0], [0], [1], [0, 0, 1, 1], [], []>} : vector<64x128xbf16>, vector<128x128xbf16>, vector<64x128xf32> -> vector<64x128xf32>
    %113 = arith.truncf %112 : vector<64x128xf32> to vector<64x128xbf16>
    %cst_56 = arith.constant dense<0.000000e+00> : vector<64x128xf32>
    %114 = tpu.matmul %1, %113, %cst_56 {dimension_numbers = #tpu.dot_dimension_numbers<[1], [0], [0], [1], [0, 0, 1, 1], [], []>} : vector<64x64xbf16>, vector<64x128xbf16>, vector<64x128xf32> -> vector<64x128xf32>
    %c0_57 = arith.constant 0 : index
    %c0_58 = arith.constant 0 : index
    %115 = vector.load %arg13[%c0_57, %c0_58] : memref<1x128xf32, #tpu.memory_space<vmem>>, vector<1x128xf32>
    %116 = vector.broadcast %115 : vector<1x128xf32> to vector<64x128xf32>
    %117 = arith.addf %114, %116 : vector<64x128xf32>
    %cst_59 = arith.constant 0.000000e+00 : f32
    %118 = vector.broadcast %cst_59 : f32 to vector<64x128xf32>
    %119 = arith.cmpf oge, %117, %118 : vector<64x128xf32>
    %cst_60 = arith.constant 0.00999999977 : f32
    %120 = vector.broadcast %cst_60 : f32 to vector<64x128xf32>
    %121 = arith.mulf %120, %117 : vector<64x128xf32>
    %122 = arith.select %119, %117, %121 : vector<64x128xi1>, vector<64x128xf32>
    %123 = arith.truncf %3 : vector<64x128xf32> to vector<64x128xbf16>
    %c0_61 = arith.constant 0 : index
    %c0_62 = arith.constant 0 : index
    %124 = vector.load %arg15[%c0_61, %c0_62] : memref<128x384xbf16, #tpu.memory_space<vmem>>, vector<128x384xbf16>
    %cst_63 = arith.constant dense<0.000000e+00> : vector<64x384xf32>
    %125 = tpu.matmul %123, %124, %cst_63 {dimension_numbers = #tpu.dot_dimension_numbers<[1], [0], [0], [1], [0, 0, 1, 1], [], []>} : vector<64x128xbf16>, vector<128x384xbf16>, vector<64x384xf32> -> vector<64x384xf32>
    %c0_64 = arith.constant 0 : index
    %c0_65 = arith.constant 0 : index
    %126 = vector.load %arg17[%c0_64, %c0_65] : memref<1x384xf32, #tpu.memory_space<vmem>>, vector<1x384xf32>
    %127 = vector.broadcast %126 : vector<1x384xf32> to vector<64x384xf32>
    %128 = arith.addf %125, %127 : vector<64x384xf32>
    %129 = arith.truncf %122 : vector<64x128xf32> to vector<64x128xbf16>
    %c0_66 = arith.constant 0 : index
    %c0_67 = arith.constant 0 : index
    %130 = vector.load %arg14[%c0_66, %c0_67] : memref<128x384xbf16, #tpu.memory_space<vmem>>, vector<128x384xbf16>
    %cst_68 = arith.constant dense<0.000000e+00> : vector<64x384xf32>
    %131 = tpu.matmul %129, %130, %cst_68 {dimension_numbers = #tpu.dot_dimension_numbers<[1], [0], [0], [1], [0, 0, 1, 1], [], []>} : vector<64x128xbf16>, vector<128x384xbf16>, vector<64x384xf32> -> vector<64x384xf32>
    %c0_69 = arith.constant 0 : index
    %c0_70 = arith.constant 0 : index
    %132 = vector.load %arg16[%c0_69, %c0_70] : memref<1x384xf32, #tpu.memory_space<vmem>>, vector<1x384xf32>
    %133 = vector.broadcast %132 : vector<1x384xf32> to vector<64x384xf32>
    %134 = arith.addf %131, %133 : vector<64x384xf32>
    %135 = vector.extract_strided_slice %134 {offsets = [0, 0], sizes = [64, 128], strides = [1, 1]} : vector<64x384xf32> to vector<64x128xf32>
    %136 = vector.extract_strided_slice %128 {offsets = [0, 0], sizes = [64, 128], strides = [1, 1]} : vector<64x384xf32> to vector<64x128xf32>
    %137 = arith.addf %135, %136 : vector<64x128xf32>
    %138 = arith.negf %137 : vector<64x128xf32>
    %139 = math.exp %138 : vector<64x128xf32>
    %cst_71 = arith.constant 1.000000e+00 : f32
    %140 = vector.broadcast %cst_71 : f32 to vector<64x128xf32>
    %141 = arith.addf %140, %139 : vector<64x128xf32>
    %142 = arith.divf %140, %141 : vector<64x128xf32>
    %143 = vector.extract_strided_slice %134 {offsets = [0, 128], sizes = [64, 128], strides = [1, 1]} : vector<64x384xf32> to vector<64x128xf32>
    %144 = vector.extract_strided_slice %128 {offsets = [0, 128], sizes = [64, 128], strides = [1, 1]} : vector<64x384xf32> to vector<64x128xf32>
    %145 = arith.addf %143, %144 : vector<64x128xf32>
    %146 = arith.negf %145 : vector<64x128xf32>
    %147 = math.exp %146 : vector<64x128xf32>
    %cst_72 = arith.constant 1.000000e+00 : f32
    %148 = vector.broadcast %cst_72 : f32 to vector<64x128xf32>
    %149 = arith.addf %148, %147 : vector<64x128xf32>
    %150 = arith.divf %148, %149 : vector<64x128xf32>
    %151 = vector.extract_strided_slice %134 {offsets = [0, 256], sizes = [64, 128], strides = [1, 1]} : vector<64x384xf32> to vector<64x128xf32>
    %152 = vector.extract_strided_slice %128 {offsets = [0, 256], sizes = [64, 128], strides = [1, 1]} : vector<64x384xf32> to vector<64x128xf32>
    %153 = arith.mulf %142, %152 : vector<64x128xf32>
    %154 = arith.addf %151, %153 : vector<64x128xf32>
    %155 = math.tanh %154 : vector<64x128xf32>
    %cst_73 = arith.constant 1.000000e+00 : f32
    %156 = vector.broadcast %cst_73 : f32 to vector<64x128xf32>
    %157 = arith.subf %156, %150 : vector<64x128xf32>
    %158 = arith.mulf %157, %155 : vector<64x128xf32>
    %159 = arith.mulf %150, %3 : vector<64x128xf32>
    %160 = arith.addf %158, %159 : vector<64x128xf32>
    %c0_74 = arith.constant 0 : index
    %c0_75 = arith.constant 0 : index
    %161 = vector.load %arg27[%c0_74, %c0_75] : memref<64x128xf32, #tpu.memory_space<vmem>>, vector<64x128xf32>
    tpu.vector_store %arg27[%c0_74, %c0_75], %160 {strides = array<i32>} : memref<64x128xf32, #tpu.memory_space<vmem>>, vector<64x128xf32>,
    %c0_76 = arith.constant 0 : index
    %162 = memref.load %arg20[%c0_76] : memref<16xi32, #tpu.memory_space<smem>>
    %c0_77 = arith.constant 0 : index
    %163 = memref.load %arg21[%c0_77] : memref<16xi32, #tpu.memory_space<smem>>
    %164 = arith.index_cast %162 : i32 to index
    %c0_78 = arith.constant 0 : index
    %165 = vector.load %arg27[%164, %c0_78] : memref<64x128xf32, #tpu.memory_space<vmem>>, vector<1x128xf32>
    %166 = arith.index_cast %163 : i32 to index
    %c0_79 = arith.constant 0 : index
    %167 = vector.load %arg27[%166, %c0_79] : memref<64x128xf32, #tpu.memory_space<vmem>>, vector<1x128xf32>
    %168 = arith.mulf %165, %167 : vector<1x128xf32>
    %c0_80 = arith.constant 0 : index
    %c0_81 = arith.constant 0 : index
    %169 = vector.load %arg28[%c0_80, %c0_81] : memref<16x128xf32, #tpu.memory_space<vmem>>, vector<1x128xf32>
    tpu.vector_store %arg28[%c0_80, %c0_81], %168 {strides = array<i32>} : memref<16x128xf32, #tpu.memory_space<vmem>>, vector<1x128xf32>,
    %c1 = arith.constant 1 : index
    %170 = memref.load %arg20[%c1] : memref<16xi32, #tpu.memory_space<smem>>
    %c1_82 = arith.constant 1 : index
    %171 = memref.load %arg21[%c1_82] : memref<16xi32, #tpu.memory_space<smem>>
    %172 = arith.index_cast %170 : i32 to index
    %c0_83 = arith.constant 0 : index
    %173 = vector.load %arg27[%172, %c0_83] : memref<64x128xf32, #tpu.memory_space<vmem>>, vector<1x128xf32>
    %174 = arith.index_cast %171 : i32 to index
    %c0_84 = arith.constant 0 : index
    %175 = vector.load %arg27[%174, %c0_84] : memref<64x128xf32, #tpu.memory_space<vmem>>, vector<1x128xf32>
    %176 = arith.mulf %173, %175 : vector<1x128xf32>
    %c1_85 = arith.constant 1 : index
    %c0_86 = arith.constant 0 : index
    %177 = vector.load %arg28[%c1_85, %c0_86] : memref<16x128xf32, #tpu.memory_space<vmem>>, vector<1x128xf32>
    tpu.vector_store %arg28[%c1_85, %c0_86], %176 {strides = array<i32>} : memref<16x128xf32, #tpu.memory_space<vmem>>, vector<1x128xf32>,
    %c2 = arith.constant 2 : index
    %178 = memref.load %arg20[%c2] : memref<16xi32, #tpu.memory_space<smem>>
    %c2_87 = arith.constant 2 : index
    %179 = memref.load %arg21[%c2_87] : memref<16xi32, #tpu.memory_space<smem>>
    %180 = arith.index_cast %178 : i32 to index
    %c0_88 = arith.constant 0 : index
    %181 = vector.load %arg27[%180, %c0_88] : memref<64x128xf32, #tpu.memory_space<vmem>>, vector<1x128xf32>
    %182 = arith.index_cast %179 : i32 to index
    %c0_89 = arith.constant 0 : index
    %183 = vector.load %arg27[%182, %c0_89] : memref<64x128xf32, #tpu.memory_space<vmem>>, vector<1x128xf32>
    %184 = arith.mulf %181, %183 : vector<1x128xf32>
    %c2_90 = arith.constant 2 : index
    %c0_91 = arith.constant 0 : index
    %185 = vector.load %arg28[%c2_90, %c0_91] : memref<16x128xf32, #tpu.memory_space<vmem>>, vector<1x128xf32>
    tpu.vector_store %arg28[%c2_90, %c0_91], %184 {strides = array<i32>} : memref<16x128xf32, #tpu.memory_space<vmem>>, vector<1x128xf32>,
    %c3 = arith.constant 3 : index
    %186 = memref.load %arg20[%c3] : memref<16xi32, #tpu.memory_space<smem>>
    %c3_92 = arith.constant 3 : index
    %187 = memref.load %arg21[%c3_92] : memref<16xi32, #tpu.memory_space<smem>>
    %188 = arith.index_cast %186 : i32 to index
    %c0_93 = arith.constant 0 : index
    %189 = vector.load %arg27[%188, %c0_93] : memref<64x128xf32, #tpu.memory_space<vmem>>, vector<1x128xf32>
    %190 = arith.index_cast %187 : i32 to index
    %c0_94 = arith.constant 0 : index
    %191 = vector.load %arg27[%190, %c0_94] : memref<64x128xf32, #tpu.memory_space<vmem>>, vector<1x128xf32>
    %192 = arith.mulf %189, %191 : vector<1x128xf32>
    %c3_95 = arith.constant 3 : index
    %c0_96 = arith.constant 0 : index
    %193 = vector.load %arg28[%c3_95, %c0_96] : memref<16x128xf32, #tpu.memory_space<vmem>>, vector<1x128xf32>
    tpu.vector_store %arg28[%c3_95, %c0_96], %192 {strides = array<i32>} : memref<16x128xf32, #tpu.memory_space<vmem>>, vector<1x128xf32>,
    %c4 = arith.constant 4 : index
    %194 = memref.load %arg20[%c4] : memref<16xi32, #tpu.memory_space<smem>>
    %c4_97 = arith.constant 4 : index
    %195 = memref.load %arg21[%c4_97] : memref<16xi32, #tpu.memory_space<smem>>
    %196 = arith.index_cast %194 : i32 to index
    %c0_98 = arith.constant 0 : index
    %197 = vector.load %arg27[%196, %c0_98] : memref<64x128xf32, #tpu.memory_space<vmem>>, vector<1x128xf32>
    %198 = arith.index_cast %195 : i32 to index
    %c0_99 = arith.constant 0 : index
    %199 = vector.load %arg27[%198, %c0_99] : memref<64x128xf32, #tpu.memory_space<vmem>>, vector<1x128xf32>
    %200 = arith.mulf %197, %199 : vector<1x128xf32>
    %c4_100 = arith.constant 4 : index
    %c0_101 = arith.constant 0 : index
    %201 = vector.load %arg28[%c4_100, %c0_101] : memref<16x128xf32, #tpu.memory_space<vmem>>, vector<1x128xf32>
    tpu.vector_store %arg28[%c4_100, %c0_101], %200 {strides = array<i32>} : memref<16x128xf32, #tpu.memory_space<vmem>>, vector<1x128xf32>,
    %c5 = arith.constant 5 : index
    %202 = memref.load %arg20[%c5] : memref<16xi32, #tpu.memory_space<smem>>
    %c5_102 = arith.constant 5 : index
    %203 = memref.load %arg21[%c5_102] : memref<16xi32, #tpu.memory_space<smem>>
    %204 = arith.index_cast %202 : i32 to index
    %c0_103 = arith.constant 0 : index
    %205 = vector.load %arg27[%204, %c0_103] : memref<64x128xf32, #tpu.memory_space<vmem>>, vector<1x128xf32>
    %206 = arith.index_cast %203 : i32 to index
    %c0_104 = arith.constant 0 : index
    %207 = vector.load %arg27[%206, %c0_104] : memref<64x128xf32, #tpu.memory_space<vmem>>, vector<1x128xf32>
    %208 = arith.mulf %205, %207 : vector<1x128xf32>
    %c5_105 = arith.constant 5 : index
    %c0_106 = arith.constant 0 : index
    %209 = vector.load %arg28[%c5_105, %c0_106] : memref<16x128xf32, #tpu.memory_space<vmem>>, vector<1x128xf32>
    tpu.vector_store %arg28[%c5_105, %c0_106], %208 {strides = array<i32>} : memref<16x128xf32, #tpu.memory_space<vmem>>, vector<1x128xf32>,
    %c6 = arith.constant 6 : index
    %210 = memref.load %arg20[%c6] : memref<16xi32, #tpu.memory_space<smem>>
    %c6_107 = arith.constant 6 : index
    %211 = memref.load %arg21[%c6_107] : memref<16xi32, #tpu.memory_space<smem>>
    %212 = arith.index_cast %210 : i32 to index
    %c0_108 = arith.constant 0 : index
    %213 = vector.load %arg27[%212, %c0_108] : memref<64x128xf32, #tpu.memory_space<vmem>>, vector<1x128xf32>
    %214 = arith.index_cast %211 : i32 to index
    %c0_109 = arith.constant 0 : index
    %215 = vector.load %arg27[%214, %c0_109] : memref<64x128xf32, #tpu.memory_space<vmem>>, vector<1x128xf32>
    %216 = arith.mulf %213, %215 : vector<1x128xf32>
    %c6_110 = arith.constant 6 : index
    %c0_111 = arith.constant 0 : index
    %217 = vector.load %arg28[%c6_110, %c0_111] : memref<16x128xf32, #tpu.memory_space<vmem>>, vector<1x128xf32>
    tpu.vector_store %arg28[%c6_110, %c0_111], %216 {strides = array<i32>} : memref<16x128xf32, #tpu.memory_space<vmem>>, vector<1x128xf32>,
    %c7 = arith.constant 7 : index
    %218 = memref.load %arg20[%c7] : memref<16xi32, #tpu.memory_space<smem>>
    %c7_112 = arith.constant 7 : index
    %219 = memref.load %arg21[%c7_112] : memref<16xi32, #tpu.memory_space<smem>>
    %220 = arith.index_cast %218 : i32 to index
    %c0_113 = arith.constant 0 : index
    %221 = vector.load %arg27[%220, %c0_113] : memref<64x128xf32, #tpu.memory_space<vmem>>, vector<1x128xf32>
    %222 = arith.index_cast %219 : i32 to index
    %c0_114 = arith.constant 0 : index
    %223 = vector.load %arg27[%222, %c0_114] : memref<64x128xf32, #tpu.memory_space<vmem>>, vector<1x128xf32>
    %224 = arith.mulf %221, %223 : vector<1x128xf32>
    %c7_115 = arith.constant 7 : index
    %c0_116 = arith.constant 0 : index
    %225 = vector.load %arg28[%c7_115, %c0_116] : memref<16x128xf32, #tpu.memory_space<vmem>>, vector<1x128xf32>
    tpu.vector_store %arg28[%c7_115, %c0_116], %224 {strides = array<i32>} : memref<16x128xf32, #tpu.memory_space<vmem>>, vector<1x128xf32>,
    %c8 = arith.constant 8 : index
    %226 = memref.load %arg20[%c8] : memref<16xi32, #tpu.memory_space<smem>>
    %c8_117 = arith.constant 8 : index
    %227 = memref.load %arg21[%c8_117] : memref<16xi32, #tpu.memory_space<smem>>
    %228 = arith.index_cast %226 : i32 to index
    %c0_118 = arith.constant 0 : index
    %229 = vector.load %arg27[%228, %c0_118] : memref<64x128xf32, #tpu.memory_space<vmem>>, vector<1x128xf32>
    %230 = arith.index_cast %227 : i32 to index
    %c0_119 = arith.constant 0 : index
    %231 = vector.load %arg27[%230, %c0_119] : memref<64x128xf32, #tpu.memory_space<vmem>>, vector<1x128xf32>
    %232 = arith.mulf %229, %231 : vector<1x128xf32>
    %c8_120 = arith.constant 8 : index
    %c0_121 = arith.constant 0 : index
    %233 = vector.load %arg28[%c8_120, %c0_121] : memref<16x128xf32, #tpu.memory_space<vmem>>, vector<1x128xf32>
    tpu.vector_store %arg28[%c8_120, %c0_121], %232 {strides = array<i32>} : memref<16x128xf32, #tpu.memory_space<vmem>>, vector<1x128xf32>,
    %c9 = arith.constant 9 : index
    %234 = memref.load %arg20[%c9] : memref<16xi32, #tpu.memory_space<smem>>
    %c9_122 = arith.constant 9 : index
    %235 = memref.load %arg21[%c9_122] : memref<16xi32, #tpu.memory_space<smem>>
    %236 = arith.index_cast %234 : i32 to index
    %c0_123 = arith.constant 0 : index
    %237 = vector.load %arg27[%236, %c0_123] : memref<64x128xf32, #tpu.memory_space<vmem>>, vector<1x128xf32>
    %238 = arith.index_cast %235 : i32 to index
    %c0_124 = arith.constant 0 : index
    %239 = vector.load %arg27[%238, %c0_124] : memref<64x128xf32, #tpu.memory_space<vmem>>, vector<1x128xf32>
    %240 = arith.mulf %237, %239 : vector<1x128xf32>
    %c9_125 = arith.constant 9 : index
    %c0_126 = arith.constant 0 : index
    %241 = vector.load %arg28[%c9_125, %c0_126] : memref<16x128xf32, #tpu.memory_space<vmem>>, vector<1x128xf32>
    tpu.vector_store %arg28[%c9_125, %c0_126], %240 {strides = array<i32>} : memref<16x128xf32, #tpu.memory_space<vmem>>, vector<1x128xf32>,
    %c10 = arith.constant 10 : index
    %242 = memref.load %arg20[%c10] : memref<16xi32, #tpu.memory_space<smem>>
    %c10_127 = arith.constant 10 : index
    %243 = memref.load %arg21[%c10_127] : memref<16xi32, #tpu.memory_space<smem>>
    %244 = arith.index_cast %242 : i32 to index
    %c0_128 = arith.constant 0 : index
    %245 = vector.load %arg27[%244, %c0_128] : memref<64x128xf32, #tpu.memory_space<vmem>>, vector<1x128xf32>
    %246 = arith.index_cast %243 : i32 to index
    %c0_129 = arith.constant 0 : index
    %247 = vector.load %arg27[%246, %c0_129] : memref<64x128xf32, #tpu.memory_space<vmem>>, vector<1x128xf32>
    %248 = arith.mulf %245, %247 : vector<1x128xf32>
    %c10_130 = arith.constant 10 : index
    %c0_131 = arith.constant 0 : index
    %249 = vector.load %arg28[%c10_130, %c0_131] : memref<16x128xf32, #tpu.memory_space<vmem>>, vector<1x128xf32>
    tpu.vector_store %arg28[%c10_130, %c0_131], %248 {strides = array<i32>} : memref<16x128xf32, #tpu.memory_space<vmem>>, vector<1x128xf32>,
    %c11 = arith.constant 11 : index
    %250 = memref.load %arg20[%c11] : memref<16xi32, #tpu.memory_space<smem>>
    %c11_132 = arith.constant 11 : index
    %251 = memref.load %arg21[%c11_132] : memref<16xi32, #tpu.memory_space<smem>>
    %252 = arith.index_cast %250 : i32 to index
    %c0_133 = arith.constant 0 : index
    %253 = vector.load %arg27[%252, %c0_133] : memref<64x128xf32, #tpu.memory_space<vmem>>, vector<1x128xf32>
    %254 = arith.index_cast %251 : i32 to index
    %c0_134 = arith.constant 0 : index
    %255 = vector.load %arg27[%254, %c0_134] : memref<64x128xf32, #tpu.memory_space<vmem>>, vector<1x128xf32>
    %256 = arith.mulf %253, %255 : vector<1x128xf32>
    %c11_135 = arith.constant 11 : index
    %c0_136 = arith.constant 0 : index
    %257 = vector.load %arg28[%c11_135, %c0_136] : memref<16x128xf32, #tpu.memory_space<vmem>>, vector<1x128xf32>
    tpu.vector_store %arg28[%c11_135, %c0_136], %256 {strides = array<i32>} : memref<16x128xf32, #tpu.memory_space<vmem>>, vector<1x128xf32>,
    %c12 = arith.constant 12 : index
    %258 = memref.load %arg20[%c12] : memref<16xi32, #tpu.memory_space<smem>>
    %c12_137 = arith.constant 12 : index
    %259 = memref.load %arg21[%c12_137] : memref<16xi32, #tpu.memory_space<smem>>
    %260 = arith.index_cast %258 : i32 to index
    %c0_138 = arith.constant 0 : index
    %261 = vector.load %arg27[%260, %c0_138] : memref<64x128xf32, #tpu.memory_space<vmem>>, vector<1x128xf32>
    %262 = arith.index_cast %259 : i32 to index
    %c0_139 = arith.constant 0 : index
    %263 = vector.load %arg27[%262, %c0_139] : memref<64x128xf32, #tpu.memory_space<vmem>>, vector<1x128xf32>
    %264 = arith.mulf %261, %263 : vector<1x128xf32>
    %c12_140 = arith.constant 12 : index
    %c0_141 = arith.constant 0 : index
    %265 = vector.load %arg28[%c12_140, %c0_141] : memref<16x128xf32, #tpu.memory_space<vmem>>, vector<1x128xf32>
    tpu.vector_store %arg28[%c12_140, %c0_141], %264 {strides = array<i32>} : memref<16x128xf32, #tpu.memory_space<vmem>>, vector<1x128xf32>,
    %c13 = arith.constant 13 : index
    %266 = memref.load %arg20[%c13] : memref<16xi32, #tpu.memory_space<smem>>
    %c13_142 = arith.constant 13 : index
    %267 = memref.load %arg21[%c13_142] : memref<16xi32, #tpu.memory_space<smem>>
    %268 = arith.index_cast %266 : i32 to index
    %c0_143 = arith.constant 0 : index
    %269 = vector.load %arg27[%268, %c0_143] : memref<64x128xf32, #tpu.memory_space<vmem>>, vector<1x128xf32>
    %270 = arith.index_cast %267 : i32 to index
    %c0_144 = arith.constant 0 : index
    %271 = vector.load %arg27[%270, %c0_144] : memref<64x128xf32, #tpu.memory_space<vmem>>, vector<1x128xf32>
    %272 = arith.mulf %269, %271 : vector<1x128xf32>
    %c13_145 = arith.constant 13 : index
    %c0_146 = arith.constant 0 : index
    %273 = vector.load %arg28[%c13_145, %c0_146] : memref<16x128xf32, #tpu.memory_space<vmem>>, vector<1x128xf32>
    tpu.vector_store %arg28[%c13_145, %c0_146], %272 {strides = array<i32>} : memref<16x128xf32, #tpu.memory_space<vmem>>, vector<1x128xf32>,
    %c14 = arith.constant 14 : index
    %274 = memref.load %arg20[%c14] : memref<16xi32, #tpu.memory_space<smem>>
    %c14_147 = arith.constant 14 : index
    %275 = memref.load %arg21[%c14_147] : memref<16xi32, #tpu.memory_space<smem>>
    %276 = arith.index_cast %274 : i32 to index
    %c0_148 = arith.constant 0 : index
    %277 = vector.load %arg27[%276, %c0_148] : memref<64x128xf32, #tpu.memory_space<vmem>>, vector<1x128xf32>
    %278 = arith.index_cast %275 : i32 to index
    %c0_149 = arith.constant 0 : index
    %279 = vector.load %arg27[%278, %c0_149] : memref<64x128xf32, #tpu.memory_space<vmem>>, vector<1x128xf32>
    %280 = arith.mulf %277, %279 : vector<1x128xf32>
    %c14_150 = arith.constant 14 : index
    %c0_151 = arith.constant 0 : index
    %281 = vector.load %arg28[%c14_150, %c0_151] : memref<16x128xf32, #tpu.memory_space<vmem>>, vector<1x128xf32>
    tpu.vector_store %arg28[%c14_150, %c0_151], %280 {strides = array<i32>} : memref<16x128xf32, #tpu.memory_space<vmem>>, vector<1x128xf32>,
    %c15 = arith.constant 15 : index
    %282 = memref.load %arg20[%c15] : memref<16xi32, #tpu.memory_space<smem>>
    %c15_152 = arith.constant 15 : index
    %283 = memref.load %arg21[%c15_152] : memref<16xi32, #tpu.memory_space<smem>>
    %284 = arith.index_cast %282 : i32 to index
    %c0_153 = arith.constant 0 : index
    %285 = vector.load %arg27[%284, %c0_153] : memref<64x128xf32, #tpu.memory_space<vmem>>, vector<1x128xf32>
    %286 = arith.index_cast %283 : i32 to index
    %c0_154 = arith.constant 0 : index
    %287 = vector.load %arg27[%286, %c0_154] : memref<64x128xf32, #tpu.memory_space<vmem>>, vector<1x128xf32>
    %288 = arith.mulf %285, %287 : vector<1x128xf32>
    %c15_155 = arith.constant 15 : index
    %c0_156 = arith.constant 0 : index
    %289 = vector.load %arg28[%c15_155, %c0_156] : memref<16x128xf32, #tpu.memory_space<vmem>>, vector<1x128xf32>
    tpu.vector_store %arg28[%c15_155, %c0_156], %288 {strides = array<i32>} : memref<16x128xf32, #tpu.memory_space<vmem>>, vector<1x128xf32>,
    %c0_157 = arith.constant 0 : index
    %c0_158 = arith.constant 0 : index
    %290 = vector.load %arg28[%c0_157, %c0_158] : memref<16x128xf32, #tpu.memory_space<vmem>>, vector<16x128xf32>
    %c0_159 = arith.constant 0 : index
    %c0_160 = arith.constant 0 : index
    %291 = vector.load %arg18[%c0_159, %c0_160] : memref<128x1xf32, #tpu.memory_space<vmem>>, vector<128x1xf32>
    %cst_161 = arith.constant dense<0.000000e+00> : vector<16x1xf32>
    %292 = tpu.matmul %290, %291, %cst_161 {dimension_numbers = #tpu.dot_dimension_numbers<[1], [0], [0], [1], [0, 0, 1, 1], [], []>} : vector<16x128xf32>, vector<128x1xf32>, vector<16x1xf32> -> vector<16x1xf32>
    %c0_162 = arith.constant 0 : index
    %c0_163 = arith.constant 0 : index
    %293 = vector.load %arg19[%c0_162, %c0_163] : memref<1x1xf32, #tpu.memory_space<vmem>>, vector<1x1xf32>
    %294 = vector.broadcast %293 : vector<1x1xf32> to vector<16x1xf32>
    %295 = arith.addf %292, %294 : vector<16x1xf32>
    %c0_164 = arith.constant 0 : index
    %c0_165 = arith.constant 0 : index
    %296 = vector.load %arg24[%c0_164, %c0_165] : memref<16x1xf32, #tpu.memory_space<vmem>>, vector<16x1xf32>
    tpu.vector_store %arg24[%c0_164, %c0_165], %295 {strides = array<i32>} : memref<16x1xf32, #tpu.memory_space<vmem>>, vector<16x1xf32>,
    return
  }
}

</mosaic_0001>

<bundles_post_ra>
// kernel: roland_forward.1
= control target key start
LH: loop header
LB: loop body
LE: loop exit
PB: predicated region body
PF: predicated region fallthrough
CT: control target
= control target key end

     0   :  { %s6434_s0 = inlined_call_operand.vmem [shape: bf16[64,16], index: 0, kind: input, shape index: {}]   ;;  %s6435_s1 = inlined_call_operand.vmem [shape: bf16[64,64], index: 1, kind: input, shape index: {}]   ;;  %s6436_s2 = inlined_call_operand.vmem [shape: bf16[16,256], index: 2, kind: input, shape index: {}]   ;;  %s6437_s3 = inlined_call_operand.vmem [shape: f32[1,256], index: 3, kind: input, shape index: {}]   ;;  %s6438_s4 = inlined_call_operand.vmem [shape: bf16[256,128], index: 4, kind: input, shape index: {}]   ;;  %s6439_s5 = inlined_call_operand.vmem [shape: f32[1,128], index: 5, kind: input, shape index: {}]   ;;  %s6440_s6 = inlined_call_operand.hbm [shape: bf16[128,128], index: 6, kind: input, shape index: {}]   ;;  %s6441_s7 = inlined_call_operand.vmem [shape: f32[1,128], index: 7, kind: input, shape index: {}]   ;;  %s6442_s8 = inlined_call_operand.vmem [shape: bf16[128,384], index: 8, kind: input, shape index: {}]   ;;  %s6443_s9 = inlined_call_operand.hbm [shape: bf16[128,384], index: 9, kind: input, shape index: {}]   ;;  %s6444_s10 = inlined_call_operand.vmem [shape: f32[1,384], index: 10, kind: input, shape index: {}]   ;;  %s6445_s11 = inlined_call_operand.vmem [shape: f32[1,384], index: 11, kind: input, shape index: {}]   ;;  %s6446_s12 = inlined_call_operand.hbm [shape: bf16[128,128], index: 12, kind: input, shape index: {}]   ;;  %s6447_s13 = inlined_call_operand.hbm [shape: f32[1,128], index: 13, kind: input, shape index: {}]   ;;  %s6448_s14 = inlined_call_operand.hbm [shape: bf16[128,384], index: 14, kind: input, shape index: {}]   ;;  %s6449_s15 = inlined_call_operand.hbm [shape: bf16[128,384], index: 15, kind: input, shape index: {}]   ;;  %s6450_s16 = inlined_call_operand.vmem [shape: f32[1,384], index: 16, kind: input, shape index: {}]   ;;  %s6451_s17 = inlined_call_operand.vmem [shape: f32[1,384], index: 17, kind: input, shape index: {}]   ;;  %s6452_s18 = inlined_call_operand.vmem [shape: f32[128,1], index: 18, kind: input, shape index: {}]   ;;  %s6453_s19 = inlined_call_operand.<no memory space> [shape: f32[1,1], index: 19, kind: input, shape index: {}]   ;;  %s6454_s20 = inlined_call_operand.vmem [shape: s32[16], index: 20, kind: input, shape index: {}]   ;;  %s6455_s21 = inlined_call_operand.vmem [shape: s32[16], index: 21, kind: input, shape index: {}]   ;;  %s6456_s22 = inlined_call_operand.hbm [shape: f32[64,128], index: 22, kind: input, shape index: {}]   ;;  %s6457_s23 = inlined_call_operand.hbm [shape: f32[64,128], index: 23, kind: input, shape index: {}]   ;;  %s6458_s24 = inlined_call_operand.vmem [shape: f32[16,1], index: 24, kind: output, shape index: {0}]   ;;  %s6459_s25 = inlined_call_operand.hbm [shape: f32[64,128], index: 25, kind: output, shape index: {1}]   ;;  %s6460_s26 = inlined_call_operand.hbm [shape: f32[64,128], index: 26, kind: output, shape index: {2}]   ;;  %s6461_s27 = inlined_call_operand.hbm [shape: f32[64,128], index: 27, kind: output, shape index: {3}]  }
   0x1   :  { %6478 = sst [smem:[#allocation43_spill]] %s6434_s0  ;;  %v33_v0 = vstv %s6453_s19 }
   0x2   :  { %6479 = sst [smem:[#allocation44_spill]] %s6435_s1  ;;  %34 = vst [vmem:[#allocation3] sm:$0x1] %v33_v0 }
   0x3   :  { %6480 = sst [smem:[#allocation45_spill]] %s6436_s2 }
   0x4   :  { %6481 = sst [smem:[#allocation46_spill]] %s6437_s3 }
   0x5   :  { %6482 = sst [smem:[#allocation47_spill]] %s6438_s4 }
   0x6   :  { %6483 = sst [smem:[#allocation48_spill]] %s6439_s5 }
   0x7   :  { %6484 = sst [smem:[#allocation49_spill]] %s6440_s6 }
   0x8   :  { %6485 = sst [smem:[#allocation50_spill]] %s6441_s7 }
   0x9   :  { %6486 = sst [smem:[#allocation51_spill]] %s6442_s8 }
   0xa   :  { %6487 = sst [smem:[#allocation52_spill]] %s6443_s9 }
   0xb   :  { %6488 = sst [smem:[#allocation53_spill]] %s6444_s10 }
   0xc   :  { %6489 = sst [smem:[#allocation54_spill]] %s6445_s11 }
   0xd   :  { %6490 = sst [smem:[#allocation55_spill]] %s6458_s24 }
   0xe   :  { %6491 = sst [smem:[#allocation56_spill]] %s6459_s25 }
   0xf   :  { %6492 = sst [smem:[#allocation57_spill]] %s6460_s26 }
  0x10   :  { %6493 = sst [smem:[#allocation58_spill]] %s6461_s27 }
  0x11   :  { %35 = vsyncpa [#allocation5], 0 }
  0x12   :  { %36 = vsyncpa [#allocation9], 0 }
  0x13   :  { %37 = vsyncpa [#allocation12], 0 }
  0x14   :  { %38 = vsyncpa [#allocation15], 0 }
  0x15   :  { %39 = vsyncpa [#allocation7], 0 }
  0x16   :  { %40 = vsyncpa [#allocation18], 0 }
  0x17   :  { %41 = vsyncpa [#allocation21], 0 }
  0x18   :  { %42 = vsyncpa [#allocation6], 0 }
  0x19   :  { %43 = vsyncpa [#allocation24], 0  ;;  %s5070_s8 = smov [#allocation8]   ;;  %s6494_s28 = sld [smem:[#allocation52_spill]] }
  0x1a   :  { %s77_s30 = sshll.u32 %s5070_s8, 4  ;;  %s78_s30 = int_to_ptr.vmem [resolvable:$true] %s77_s30 }
  0x1f   :  { %s4784_s0 = scalar_lea.hbm %s6494_s28, 3072 }
  0x20   :  { %p4785_p0 = scmp.ne.s32.totalorder %s6494_s28, %s4784_s0  ;;  %p4788_p1 = scmp.lt.u32.totalorder %s4784_s0, %s6494_s28 }
  0x22   :  { %p4790_p2 = pnand %p4788_p1, %p4785_p0 }
  0x24   :  { %4793 = shalt.err (!%p4790_p2)
}
  0x25   :  { %s4794_s6 = scalar_lea.vmem %s78_s30, 3072  ;;  %p4799_p4 = scmp.lt.s32.totalorder %s78_s30, %s78_s30 }
  0x26   :  { %p4795_p3 = scmp.ne.s32.totalorder %s78_s30, %s4794_s6  ;;  %p4800_p5 = scmp.lt.s32.totalorder %s4794_s6, %s4794_s6 }
  0x28   :  { %p4801_p6 = por %p4800_p5, %p4799_p4 }
  0x2a   :  { %p4802_p7 = pnand %p4801_p6, %p4795_p3 }
  0x2c   :  { %4805 = shalt.err (!%p4802_p7)
}
  0x2d   :  { %s5071_s11 = smov 192   ;;  %s5072_s2 = smov 12  }
  0x2e   :  { %83 = dma.hbm_to_vmem [thread:$0]  %s6494_s28, 3072, %s78_s30, [#allocation9], %s5071_s11, %s5071_s11, %s5072_s2  }
  0x2f   :  { %s5073_s4 = smov [#allocation11]   ;;  %s5074_s9 = smov [#allocation14]  }
  0x30   :  { %s106_s8 = sshll.u32 %s5073_s4, 4  ;;  %s127_s5 = sshll.u32 %s5074_s9, 4  ;;  %s107_s8 = int_to_ptr.vmem [resolvable:$true] %s106_s8  ;;  %s128_s5 = int_to_ptr.vmem [resolvable:$true] %s127_s5 }
  0x31   :  { %s4806_s29 = scalar_lea.hbm %s6447_s13, 16 }
  0x32   :  { %p4807_p8 = scmp.ne.s32.totalorder %s6447_s13, %s4806_s29  ;;  %p4810_p9 = scmp.lt.u32.totalorder %s4806_s29, %s6447_s13 }
  0x34   :  { %p4812_p10 = pnand %p4810_p9, %p4807_p8 }
  0x36   :  { %4815 = shalt.err (!%p4812_p10)
}
  0x37   :  { %s4816_s30 = scalar_lea.vmem %s107_s8, 16  ;;  %s4820_s28 = scalar_lea.vmem %s107_s8, 32 }
  0x38   :  { %p4817_p11 = scmp.ne.s32.totalorder %s107_s8, %s4816_s30  ;;  %p4821_p12 = scmp.lt.s32.totalorder %s107_s8, %s107_s8 }
  0x39   :  { %p4822_p13 = scmp.lt.s32.totalorder %s4820_s28, %s4816_s30 }
  0x3b   :  { %p4823_p0 = por %p4822_p13, %p4821_p12 }
  0x3d   :  { %p4824_p1 = pnand %p4823_p0, %p4817_p11 }
  0x3f   :  { %4827 = shalt.err (!%p4824_p1)
}
  0x40   :  { %109 = dma.hbm_to_vmem [thread:$0]  %s6447_s13, 16, %s107_s8, [#allocation12]  }
  0x41   :  { %s4828_s24 = scalar_lea.hbm %s6449_s15, 3072 }
  0x42   :  { %p4829_p2 = scmp.ne.s32.totalorder %s6449_s15, %s4828_s24  ;;  %p4832_p3 = scmp.lt.u32.totalorder %s4828_s24, %s6449_s15 }
  0x44   :  { %p4834_p4 = pnand %p4832_p3, %p4829_p2 }
  0x46   :  { %4837 = shalt.err (!%p4834_p4)
}
  0x47   :  { %s4838_s1 = scalar_lea.vmem %s128_s5, 3072  ;;  %p4843_p6 = scmp.lt.s32.totalorder %s128_s5, %s128_s5 }
  0x48   :  { %p4839_p5 = scmp.ne.s32.totalorder %s128_s5, %s4838_s1  ;;  %p4844_p7 = scmp.lt.s32.totalorder %s4838_s1, %s4838_s1 }
  0x4a   :  { %p4845_p8 = por %p4844_p7, %p4843_p6 }
  0x4c   :  { %p4846_p9 = pnand %p4845_p8, %p4839_p5 }
  0x4e   :  { %4849 = shalt.err (!%p4846_p9)
}
  0x4f   :  { %133 = dma.hbm_to_vmem [thread:$0]  %s6449_s15, 3072, %s128_s5, [#allocation15], %s5071_s11, %s5071_s11, %s5072_s2  }
  0x50   :  { %s5075_s6 = smov [#allocation4]   ;;  %s6495_s7 = sld [smem:[#allocation49_spill]] }
  0x51   :  { %s61_s30 = sshll.u32 %s5075_s6, 4  ;;  %s62_s30 = int_to_ptr.vmem [resolvable:$true] %s61_s30 }
  0x56   :  { %s4850_s4 = scalar_lea.hbm %s6495_s7, 1024 }
  0x57   :  { %p4851_p10 = scmp.ne.s32.totalorder %s6495_s7, %s4850_s4  ;;  %p4854_p11 = scmp.lt.u32.totalorder %s4850_s4, %s6495_s7 }
  0x59   :  { %p4856_p12 = pnand %p4854_p11, %p4851_p10 }
  0x5b   :  { %4859 = shalt.err (!%p4856_p12)
}
  0x5c   :  { %s4860_s29 = scalar_lea.vmem %s62_s30, 1024  ;;  %p4865_p0 = scmp.lt.s32.totalorder %s62_s30, %s62_s30 }
  0x5d   :  { %p4861_p13 = scmp.ne.s32.totalorder %s62_s30, %s4860_s29  ;;  %p4866_p1 = scmp.lt.s32.totalorder %s4860_s29, %s4860_s29 }
  0x5f   :  { %p4867_p2 = por %p4866_p1, %p4865_p0 }
  0x61   :  { %p4868_p3 = pnand %p4867_p2, %p4861_p13 }
  0x63   :  { %4871 = shalt.err (!%p4868_p3)
}
  0x64   :  { %s5076_s15 = smov 64   ;;  %s5077_s5 = smov 4  }
  0x65   :  { %67 = dma.hbm_to_vmem [thread:$0]  %s6495_s7, 1024, %s62_s30, [#allocation5], %s5076_s15, %s5076_s15, %s5077_s5  }
  0x66   :  { %s5078_s13 = smov [#allocation10]   ;;  %s5079_s6 = smov [#allocation13]  }
  0x67   :  { %s93_s8 = sshll.u32 %s5078_s13, 4  ;;  %s115_s28 = sshll.u32 %s5079_s6, 4  ;;  %s94_s8 = int_to_ptr.vmem [resolvable:$true] %s93_s8  ;;  %s5287_s28 = int_to_ptr.vmem [resolvable:$true] %s115_s28 }
  0x68   :  { %s4872_s9 = scalar_lea.hbm %s6446_s12, 1024 }
  0x69   :  { %p4873_p4 = scmp.ne.s32.totalorder %s6446_s12, %s4872_s9  ;;  %p4876_p5 = scmp.lt.u32.totalorder %s4872_s9, %s6446_s12 }
  0x6b   :  { %p4878_p6 = pnand %p4876_p5, %p4873_p4 }
  0x6d   :  { %4881 = shalt.err (!%p4878_p6)
}
  0x6e   :  { %s4882_s30 = scalar_lea.vmem %s94_s8, 1024  ;;  %p4887_p8 = scmp.lt.s32.totalorder %s94_s8, %s94_s8 }
  0x6f   :  { %p4883_p7 = scmp.ne.s32.totalorder %s94_s8, %s4882_s30  ;;  %p4888_p9 = scmp.lt.s32.totalorder %s4882_s30, %s4882_s30 }
  0x71   :  { %p4889_p10 = por %p4888_p9, %p4887_p8 }
  0x73   :  { %p4890_p11 = pnand %p4889_p10, %p4883_p7 }
  0x75   :  { %4893 = shalt.err (!%p4890_p11)
}
  0x76   :  { %99 = dma.hbm_to_vmem [thread:$0]  %s6446_s12, 1024, %s94_s8, [#allocation9], %s5076_s15, %s5076_s15, %s5077_s5  }
  0x77   :  { %s4894_s6 = scalar_lea.hbm %s6448_s14, 3072 }
  0x78   :  { %p4895_p12 = scmp.ne.s32.totalorder %s6448_s14, %s4894_s6  ;;  %p4898_p13 = scmp.lt.u32.totalorder %s4894_s6, %s6448_s14 }
  0x7a   :  { %p4900_p0 = pnand %p4898_p13, %p4895_p12 }
  0x7c   :  { %4903 = shalt.err (!%p4900_p0)
}
  0x7d   :  { %s4904_s0 = scalar_lea.vmem %s5287_s28, 3072  ;;  %p4909_p2 = scmp.lt.s32.totalorder %s5287_s28, %s5287_s28 }
  0x7e   :  { %p4905_p1 = scmp.ne.s32.totalorder %s5287_s28, %s4904_s0  ;;  %p4910_p3 = scmp.lt.s32.totalorder %s4904_s0, %s4904_s0 }
  0x80   :  { %p4911_p4 = por %p4910_p3, %p4909_p2 }
  0x82   :  { %p4912_p5 = pnand %p4911_p4, %p4905_p1 }
  0x84   :  { %4915 = shalt.err (!%p4912_p5)
}
  0x85   :  { %121 = dma.hbm_to_vmem [thread:$0]  %s6448_s14, 3072, %s5287_s28, [#allocation12], %s5071_s11, %s5071_s11, %s5072_s2  }
  0x86   :  { %s148_s10 = sshll.u32 %s6454_s20, 4  ;;  %s158_s7 = sshll.u32 %s6455_s21, 4  ;;  %s149_s10 = int_to_ptr.vmem [resolvable:$true] %s148_s10  ;;  %s159_s7 = int_to_ptr.vmem [resolvable:$true] %s158_s7 }
  0x87   :  { %s4916_s19 = scalar_lea.vmem %s149_s10, 16  ;;  %p4921_p7 = scmp.lt.s32.totalorder %s149_s10, %s149_s10 }
  0x88   :  { %p4917_p6 = scmp.ne.s32.totalorder %s149_s10, %s4916_s19  ;;  %p4922_p8 = scmp.lt.s32.totalorder %s4916_s19, %s4916_s19 }
  0x8a   :  { %p4923_p9 = por %p4922_p8, %p4921_p7 }
  0x8c   :  { %p4924_p10 = pnand %p4923_p9, %p4917_p6 }
  0x8e   :  { %4927 = shalt.err (!%p4924_p10)
}
  0x8f   :  { %s5080_s1 = smov [#allocation16]   ;;  %s4928_s14 = scalar_lea.vmem %s159_s7, 16 }
  0x90   :  { %151 = dma.vmem_to_smem %s149_s10, 16, %s5080_s1, [#allocation7]  }
  0x91   :  { %p4929_p11 = scmp.ne.s32.totalorder %s159_s7, %s4928_s14  ;;  %p4933_p12 = scmp.lt.s32.totalorder %s159_s7, %s159_s7 }
  0x92   :  { %p4934_p13 = scmp.lt.s32.totalorder %s4928_s14, %s4928_s14 }
  0x94   :  { %p4935_p0 = por %p4934_p13, %p4933_p12 }
  0x96   :  { %p4936_p1 = pnand %p4935_p0, %p4929_p11 }
  0x98   :  { %4939 = shalt.err (!%p4936_p1)
}
  0x99   :  { %s5081_s20 = smov [#allocation17]   ;;  %s5082_s21 = smov [#allocation19]  }
  0x9a   :  { %161 = dma.vmem_to_smem %s159_s7, 16, %s5081_s20, [#allocation18]  }
  0x9b   :  { %s167_s11 = sshll.u32 %s5082_s21, 4  ;;  %s4940_s13 = scalar_lea.hbm %s6456_s22, 1024  ;;  %s168_s11 = int_to_ptr.vmem [resolvable:$true] %s167_s11 }
  0x9c   :  { %p4941_p2 = scmp.ne.s32.totalorder %s6456_s22, %s4940_s13  ;;  %p4944_p3 = scmp.lt.u32.totalorder %s4940_s13, %s6456_s22 }
  0x9e   :  { %p4946_p4 = pnand %p4944_p3, %p4941_p2 }
  0xa0   :  { %4949 = shalt.err (!%p4946_p4)
}
  0xa1   :  { %s4950_s24 = scalar_lea.vmem %s168_s11, 1024  ;;  %p4955_p6 = scmp.lt.s32.totalorder %s168_s11, %s168_s11 }
  0xa2   :  { %p4951_p5 = scmp.ne.s32.totalorder %s168_s11, %s4950_s24  ;;  %p4956_p7 = scmp.lt.s32.totalorder %s4950_s24, %s4950_s24 }
  0xa4   :  { %p4957_p8 = por %p4956_p7, %p4955_p6 }
  0xa6   :  { %p4958_p9 = pnand %p4957_p8, %p4951_p5 }
  0xa8   :  { %4961 = shalt.err (!%p4958_p9)
}
  0xa9   :  { %s6471_s0 = smov 128   ;;  %s6473_s12 = smov 8  }
  0xaa   :  { %173 = dma.hbm_to_vmem [thread:$0]  %s6456_s22, 1024, %s168_s11, [#allocation15], %s6471_s0, %s6471_s0, %s6473_s12  }
  0xab   :  { %s5085_s8 = smov [#allocation20]   ;;  %s4962_s7 = scalar_lea.hbm %s6457_s23, 1024 }
  0xac   :  { %s179_s10 = sshll.u32 %s5085_s8, 4  ;;  %p4963_p10 = scmp.ne.s32.totalorder %s6457_s23, %s4962_s7  ;;  %s180_s10 = int_to_ptr.vmem [resolvable:$true] %s179_s10 }
  0xad   :  { %p4966_p11 = scmp.lt.u32.totalorder %s4962_s7, %s6457_s23 }
  0xaf   :  { %p4968_p12 = pnand %p4966_p11, %p4963_p10 }
  0xb1   :  { %4971 = shalt.err (!%p4968_p12)
}
  0xb2   :  { %s4972_s21 = scalar_lea.vmem %s180_s10, 1024  ;;  %p4977_p0 = scmp.lt.s32.totalorder %s180_s10, %s180_s10 }
  0xb3   :  { %p4973_p13 = scmp.ne.s32.totalorder %s180_s10, %s4972_s21  ;;  %p4978_p1 = scmp.lt.s32.totalorder %s4972_s21, %s4972_s21 }
  0xb5   :  { %p4979_p2 = por %p4978_p1, %p4977_p0 }
  0xb7   :  { %p4980_p3 = pnand %p4979_p2, %p4973_p13 }
  0xb9   :  { %4983 = shalt.err (!%p4980_p3)
}
  0xba   :  { %185 = dma.hbm_to_vmem [thread:$0]  %s6457_s23, 1024, %s180_s10, [#allocation21], %s6471_s0, %s6471_s0, %s6473_s12  }
  0xbb   :  { %5050 = dma.done.wait [#allocation5], 1024  }
  0xbc   :  { %5051 = vsyncadd [#allocation5], 4294966272 }
  0xbd   :  { %5052 = dma.done.wait [#allocation9], 4096  }
  0xbe   :  { %5053 = vsyncadd [#allocation9], 4294963200 }
  0xbf   :  { %5054 = dma.done.wait [#allocation12], 3088  }
  0xc0   :  { %5055 = vsyncadd [#allocation12], 4294964208 }
  0xc1   :  { %5056 = dma.done.wait [#allocation15], 3072  }
  0xc2   :  { %5057 = vsyncadd [#allocation15], 4294964224 }
  0xc3   :  { %5058 = dma.done.wait [#allocation7], 16  }
  0xc4   :  { %5059 = vsyncadd [#allocation7], 4294967280 }
  0xc5   :  { %5060 = dma.done.wait [#allocation18], 16  }
  0xc6   :  { %5061 = vsyncadd [#allocation18], 4294967280 }
  0xc7   :  { %5062 = dma.done.wait [#allocation15], 1024  }
  0xc8   :  { %5063 = vsyncadd [#allocation15], 4294966272 }
  0xc9   :  { %5064 = dma.done.wait [#allocation21], 1024  }
  0xca   :  { %5065 = vsyncadd [#allocation21], 4294966272 }
  0xcb   :  { %216 = sfence }
  0xcc   :  { %s6496_s23 = sld [smem:[#allocation45_spill]]  ;;  %v5086_v3 = vmov 0   ;;  %s6497_s9 = sld [smem:[#allocation43_spill]]  ;;  %vm294_vm0 = vcmask 130048   ;;  %v4371_v24 = vld [vmem:[#allocation8] ss:$12 sps:$4 sm:$0xff]   ;;  %v254_v60 = vlaneseq }
  0xcd   :  { %339 = vmatprep.mubr.bf16.mxu0 %v5086_v3  ;;  %s6498_s5 = sld [smem:[#allocation47_spill]]  ;;  %v4373_v25 = vld [vmem:[#allocation8 + $0x4] ss:$12 sps:$4 sm:$0xff]   ;;  %v4376_v26 = vld [vmem:[#allocation8 + $0x1c] ss:$12 sps:$4 sm:$0xff]   ;;  %s6499_s13 = sld [smem:[#allocation51_spill]] }
  0xce   :  { %v5432_v27 = vld [vmem:[#allocation8 + $0x8] ss:$12 sps:$4 sm:$0xff]   ;;  %v4374_v28 = vld [vmem:[#allocation8 + $0x18] ss:$12 sps:$4 sm:$0xff]   ;;  %v4377_v30 = vld [vmem:[#allocation8 + $0x30] ss:$12 sps:$4 sm:$0xff]  }
  0xcf   :  { %v4379_v29 = vld [vmem:[#allocation8 + $0x34] ss:$12 sps:$4 sm:$0xff]   ;;  %v4383_v31 = vld [vmem:[#allocation8 + $0x4c] ss:$12 sps:$4 sm:$0xff]   ;;  %v4387_v33 = vld [vmem:[#allocation8 + $0x64] ss:$12 sps:$4 sm:$0xff]  }
  0xd0   :  { %v4381_v32 = vld [vmem:[#allocation8 + $0x48] ss:$12 sps:$4 sm:$0xff]   ;;  %v4385_v34 = vld [vmem:[#allocation8 + $0x60] ss:$12 sps:$4 sm:$0xff]   ;;  %v4389_v36 = vld [vmem:[#allocation8 + $0x78] ss:$12 sps:$4 sm:$0xff]  }
  0xd1   :  { %v4391_v35 = vld [vmem:[#allocation8 + $0x7c] ss:$12 sps:$4 sm:$0xff]   ;;  %v4395_v37 = vld [vmem:[#allocation8 + $0x94] ss:$12 sps:$4 sm:$0xff]   ;;  %v4399_v39 = vld [vmem:[#allocation8 + $0xac] ss:$12 sps:$4 sm:$0xff]  }
  0xd2   :  { %v4348_v1 = vld [vmem:[%s6496_s23 + $0x4] ss:$8 sps:$4 sm:$0xff]   ;;  %v4350_v2 = vld [vmem:[%s6496_s23] ss:$8 sps:$4 sm:$0xff]   ;;  %v4353_v14 = vld [vmem:[%s6497_s9 + $0x10] sm:$0xff]   ;;  %v5489_v61 = vshrl.u32 %v254_v60, 7 }
  0xd3   :  { %307 = vmatprep.subr.bf16.mxu0 %v4348_v1  ;;  %v4351_v4 = vld [vmem:[%s6497_s9] sm:$0xff]   ;;  %v4352_v7 = vld [vmem:[%s6497_s9 + $0x8] sm:$0xff]   ;;  %v4359_v10 = vld [vmem:[%s6498_s5 + $0x50] sm:$0xff]   ;;  %s6501_s29 = sld [smem:[#allocation48_spill]]  ;;  %s6502_s19 = sld [smem:[#allocation44_spill]] }
  0xd4   :  { %308 = vmatpush1.bf16.msra.mxu0 %v4350_v2  ;;  %v4355_v5 = vld [vmem:[%s6498_s5 + $0x40] sm:$0xff]   ;;  %v4357_v8 = vld [vmem:[%s6498_s5 + $0x48] sm:$0xff]   ;;  %v4360_v11 = vld [vmem:[%s6498_s5 + $0x10] sm:$0xff]   ;;  %v5492_v62 = vsub.s32 0, %v5489_v61  ;;  %v5498_v0 = vsub.s32 1, %v5489_v61  ;;  %s6503_s24 = sld [smem:[#allocation54_spill]] }
  0xd5   :  { %v4356_v6 = vld [vmem:[%s6498_s5] sm:$0xff]   ;;  %3855 = vmatprep.subr.bf16.mxu1 %v4355_v5  ;;  %v4358_v9 = vld [vmem:[%s6498_s5 + $0x8] sm:$0xff]   ;;  %v4361_v12 = vld [vmem:[%s6498_s5 + $0x58] sm:$0xff]   ;;  %841 = vmatprep.subr.bf16.mxu0 %v4373_v25  ;;  %s6504_s10 = sld [smem:[#allocation53_spill]]  ;;  %s6505_s1 = sld [smem:[#allocation50_spill]] }
  0xd6   :  { %3856 = vmatpush3.bf16.msra.mxu1 %v4356_v6  ;;  %v4362_v13 = vld [vmem:[%s6498_s5 + $0x18] sm:$0xff]   ;;  %v4363_v15 = vld [vmem:[%s6498_s5 + $0x60] sm:$0xff]   ;;  %v4365_v18 = vld [vmem:[%s6498_s5 + $0x68] sm:$0xff]   ;;  %s6279_s4 = sld [smem:[#allocation17 + $0x1]]  ;;  %s6283_s15 = sld [smem:[#allocation17 + $0x2]] }
  0xd7   :  { %3605 = vmatmul.mubr.msk.bf16.vlgmr.msra.gmra.mrb[0].mxu0 %vm294_vm0, %v4351_v4  ;;  %3857 = vmatprep.subr.bf16.mxu1 %v4357_v8  ;;  %v4364_v16 = vld [vmem:[%s6498_s5 + $0x20] sm:$0xff]   ;;  %v4354_v17 = vld [vmem:[%s6497_s9 + $0x18] sm:$0xff]   ;;  %v4366_v19 = vld [vmem:[%s6498_s5 + $0x28] sm:$0xff]   ;;  %s6286_s8 = sld [smem:[#allocation16 + $0x3]]  ;;  %s6297_s30 = sld [smem:[#allocation16 + $0x4]] }
  0xd8   :  { %349 = vmatprep.mubr.bf16.mxu0 %v5086_v3  ;;  %v4367_v20 = vld [vmem:[%s6498_s5 + $0x70] sm:$0xff]   ;;  %v4369_v22 = vld [vmem:[%s6498_s5 + $0x78] sm:$0xff]   ;;  %842 = vmatpush1.bf16.msra.mxu0 %v4371_v24  ;;  %v4402_v45 = vld [vmem:[%s6499_s13] ss:$12 sps:$4 sm:$0xff]   ;;  %s6299_s7 = sld [smem:[#allocation17 + $0x4]]  ;;  %s6307_s14 = sld [smem:[#allocation16 + $0x6]] }
  0xd9   :  { %v4368_v21 = vld [vmem:[%s6498_s5 + $0x30] sm:$0xff]   ;;  %v4370_v23 = vld [vmem:[%s6498_s5 + $0x38] sm:$0xff]   ;;  %843 = vmatprep.subr.bf16.mxu0 %v4376_v26  ;;  %v236_v48 = vld [vmem:[#allocation19 + $0x10] sm:$0xff]  ;;  %s6500_s5 = sld [smem:[#allocation46_spill]]  ;;  %s6312_s20 = sld [smem:[#allocation16 + $0x7]] }
  0xda   :  { %3858 = vmatpush3.bf16.msra.mxu1 %v4358_v9  ;;  %v4393_v38 = vld [vmem:[#allocation8 + $0x90] ss:$12 sps:$4 sm:$0xff]   ;;  %v4397_v40 = vld [vmem:[#allocation8 + $0xa8] ss:$12 sps:$4 sm:$0xff]   ;;  %s6314_s9 = sld [smem:[#allocation17 + $0x7]]  ;;  %s6317_s21 = sld [smem:[#allocation16 + $0x8]] }
  0xdb   :  { %3859 = vmatprep.subr.bf16.mxu1 %v4359_v10  ;;  %v234_v41 = vld [vmem:[#allocation19] sm:$0xff]  ;;  %v235_v42 = vld [vmem:[#allocation19 + $0x8] sm:$0xff]  ;;  %v237_v49 = vld [vmem:[#allocation19 + $0x18] sm:$0xff]  ;;  %s6319_s22 = sld [smem:[#allocation17 + $0x8]]  ;;  %s6321_s11 = sld [smem:[#allocation16 + $0x9]] }
  0xdc   :  { %844 = vmatpush1.bf16.msra.mxu0 %v4374_v28  ;;  %v4404_v43 = vld [vmem:[%s6499_s13 + $0x4] ss:$12 sps:$4 sm:$0xff]   ;;  %v5438_v44 = vpack.c.bf16 %v235_v42, %v234_v41  ;;  %v4408_v46 = vld [vmem:[%s6499_s13 + $0x1c] ss:$12 sps:$4 sm:$0xff]   ;;  %v4411_v50 = vld [vmem:[%s6499_s13 + $0x34] ss:$12 sps:$4 sm:$0xff]   ;;  %v5454_v51 = vpack.c.bf16 %v237_v49, %v236_v48 }
  0xdd   :  { %845 = vmatprep.subr.bf16.mxu0 %v4379_v29  ;;  %v4406_v47 = vld [vmem:[%s6499_s13 + $0x18] ss:$12 sps:$4 sm:$0xff]   ;;  %v4409_v52 = vld [vmem:[%s6499_s13 + $0x30] ss:$12 sps:$4 sm:$0xff]   ;;  %v5469_v54 = vld [vmem:[%s6499_s13 + $0x48] ss:$12 sps:$4 sm:$0xff]  }
  0xde   :  { %3860 = vmatpush3.bf16.msra.mxu1 %v4360_v11  ;;  %v5462_v53 = vld [vmem:[%s6499_s13 + $0x4c] ss:$12 sps:$4 sm:$0xff]   ;;  %v5475_v57 = vld [vmem:[%s6499_s13 + $0x64] ss:$12 sps:$4 sm:$0xff]   ;;  %s6323_s2 = sld [smem:[#allocation17 + $0x9]]  ;;  %s6325_s28 = sld [smem:[#allocation16 + $0xa]] }
  0xdf   :  { %3606 = vmatmul.mubr.msk.bf16.gmra.mrb[4].mxu0 %vm294_vm0, %v4352_v7  ;;  %3861 = vmatprep.subr.bf16.mxu1 %v4361_v12  ;;  %v238_v55 = vld [vmem:[#allocation19 + $0x20] sm:$0xff]  ;;  %v239_v56 = vld [vmem:[#allocation19 + $0x28] sm:$0xff]  ;;  %s6329_s23 = sld [smem:[#allocation16 + $0xb]]  ;;  %s6334_s6 = sld [smem:[#allocation16 + $0xc]] }
  0xe0   :  { %359 = vmatprep.mubr.bf16.mxu0 %v5086_v3  ;;  %846 = vmatpush1.bf16.msra.mxu0 %v4377_v30  ;;  %v5477_v58 = vpack.c.bf16 %v239_v56, %v238_v55  ;;  %v5483_v59 = vld [vmem:[%s6499_s13 + $0x60] ss:$12 sps:$4 sm:$0xff]   ;;  %s6336_s3 = sld [smem:[#allocation17 + $0xc]]  ;;  %s6339_s0 = sld [smem:[#allocation16 + $0xd]] }
  0xe1   :  { %847 = vmatprep.subr.bf16.mxu0 %v4383_v31  ;;  %v252_v63 = vld [vmem:[%s6500_s5] sm:$0x3]  ;;  %s6327_s5 = sld [smem:[#allocation17 + $0xa]]  ;;  %s6341_s12 = sld [smem:[#allocation17 + $0xd]] }
  0xe2   :  { %3862 = vmatpush3.bf16.msra.mxu1 %v4362_v13  ;;  %v5501_v1 = vrot.slane %v252_v63, %v5492_v62  ;;  %v5504_v2 = vrot.slane %v252_v63, %v5498_v0  ;;  %v4384_v28 = vld [vmem:[#allocation8 + $0x20] ss:$12 sps:$4 sm:$0xff]   ;;  %s6343_s27 = sld [smem:[#allocation16 + $0xe]]  ;;  %s6347_s26 = sld [smem:[#allocation16 + $0xf]] }
  0xe3   :  { %3863 = vmatprep.subr.bf16.mxu1 %v4363_v15  ;;  %s6345_s25 = sld [smem:[#allocation17 + $0xe]] }
  0xe4   :  { %848 = vmatpush1.bf16.msra.mxu0 %v4381_v32 }
  0xe5   :  { %849 = vmatprep.subr.bf16.mxu0 %v4387_v33  ;;  %6506 = sst [smem:[#allocation36_spill]] %s6334_s6 }
  0xe6   :  { %3864 = vmatpush3.bf16.msra.mxu1 %v4364_v16  ;;  %6507 = sst [smem:[#allocation37_spill]] %s6336_s3  ;;  %s6349_s3 = sld [smem:[#allocation17 + $0xf]] }
  0xe7   :  { %3607 = vmatmul.mubr.msk.bf16.gmra.mrb[8].mxu0 %vm294_vm0, %v4353_v14  ;;  %3865 = vmatprep.subr.bf16.mxu1 %v4365_v18  ;;  %6508 = sst [smem:[#allocation38_spill]] %s6339_s0 }
  0xe8   :  { %369 = vmatprep.mubr.bf16.mxu0 %v5086_v3  ;;  %850 = vmatpush1.bf16.msra.mxu0 %v4385_v34  ;;  %6509 = sst [smem:[#allocation39_spill]] %s6341_s12 }
  0xe9   :  { %851 = vmatprep.subr.bf16.mxu0 %v4391_v35  ;;  %6510 = sst [smem:[#allocation40_spill]] %s6343_s27  ;;  %s3290_s27 = scalar_lea.vmem [#allocation25], %s6279_s4 }
  0xea   :  { %3866 = vmatpush3.bf16.msra.mxu1 %v4366_v19  ;;  %6511 = sst [smem:[#allocation41_spill]] %s6345_s25  ;;  %s3338_s4 = scalar_lea.vmem [#allocation25], %s6314_s9 }
  0xeb   :  { %3867 = vmatprep.subr.bf16.mxu1 %v4367_v20  ;;  %6512 = sst [smem:[#allocation42_spill]] %s6347_s26  ;;  %s3298_s26 = scalar_lea.vmem [#allocation25], %s6283_s15 }
  0xec   :  { %852 = vmatpush1.bf16.msra.mxu0 %v4389_v36  ;;  %v4388_v36 = vld [vmem:[#allocation8 + $0x38] ss:$12 sps:$4 sm:$0xff]   ;;  %s3346_s15 = scalar_lea.vmem [#allocation25], %s6319_s22  ;;  %s6518_s22 = sld [smem:[#allocation41_spill]] }
  0xed   :  { %853 = vmatprep.subr.bf16.mxu0 %v4395_v37 }
  0xee   :  { %3868 = vmatpush3.bf16.msra.mxu1 %v4368_v21 }
  0xef   :  { %3608 = vmatmul.mubr.msk.bf16.gmra.mrb[12].mxu0 %vm294_vm0, %v4354_v17  ;;  %3869 = vmatprep.subr.bf16.mxu1 %v4369_v22 }
  0xf0   :  { %873 = vmatprep.mubr.bf16.mxu0 %v5086_v3  ;;  %854 = vmatpush1.bf16.msra.mxu0 %v4393_v38 }
  0xf1   :  { %855 = vmatprep.subr.bf16.mxu0 %v4399_v39 }
  0xf2   :  { %3870 = vmatpush3.bf16.msra.mxu1 %v4370_v23 }
  0xf3   :  { %4013 = vmatprep.subr.bf16.mxu1 %v5432_v27 }
  0xf4   :  { %856 = vmatpush1.bf16.msra.mxu0 %v4397_v40 }
  0xf5   :  { %1160 = vmatprep.subr.bf16.mxu0 %v4404_v43 }
  0xf7   :  { %874 = vmatmul.mubr.bf16.vlgmr.msra.gmra.mrb[16].mxu0 %v5438_v44 }
  0xf8   :  { %1161 = vmatpush1.bf16.msra.mxu0 %v4402_v45  ;;  %883 = vmatprep.mubr.bf16.mxu0 %v5086_v3 }
  0xf9   :  { %1162 = vmatprep.subr.bf16.mxu0 %v4408_v46 }
  0xfc   :  { %1163 = vmatpush1.bf16.msra.mxu0 %v4406_v47 }
  0xfd   :  { %1164 = vmatprep.subr.bf16.mxu0 %v4411_v50 }
  0xff   :  { %884 = vmatmul.mubr.bf16.gmra.mrb[20].mxu0 %v5454_v51 }
 0x100   :  { %1165 = vmatpush1.bf16.msra.mxu0 %v4409_v52  ;;  %893 = vmatprep.mubr.bf16.mxu0 %v5086_v3 }
 0x101   :  { %1166 = vmatprep.subr.bf16.mxu0 %v5462_v53 }
 0x104   :  { %1167 = vmatpush1.bf16.msra.mxu0 %v5469_v54 }
 0x105   :  { %1168 = vmatprep.subr.bf16.mxu0 %v5475_v57 }
 0x107   :  { %894 = vmatmul.mubr.bf16.gmra.mrb[24].mxu0 %v5477_v58 }
 0x108   :  { %1169 = vmatpush1.bf16.msra.mxu0 %v5483_v59  ;;  %903 = vmatprep.mubr.bf16.mxu0 %v5086_v3 }
 0x1aa   :  { %v341_v4 = vpop.f32.mrb[0].mxu0 }
 0x1ab   :  { %v342_v5 = vadd.f32 %v341_v4, %v5501_v1  ;;  %v343_v6 = vpop.f32.mrb[1].mxu0  ;;  %v4396_v4 = vld [vmem:[#allocation8 + $0x68] ss:$12 sps:$4 sm:$0xff]  }
 0x1ac   :  { %v344_v7 = vadd.f32 %v343_v6, %v5504_v2  ;;  %v345_v8 = vpop.f32.mrb[2].mxu0 }
 0x1ad   :  { %v396_v9 = vmul.f32 0.01, %v342_v5  ;;  %v346_v10 = vadd.f32 %v345_v8, %v5501_v1  ;;  %v347_v11 = vpop.f32.mrb[3].mxu0  ;;  %vm380_vm1 = vcmp.ge.f32.partialorder %v342_v5, 0.0 }
 0x1ae   :  { %v397_v12 = vmul.f32 0.01, %v344_v7  ;;  %v348_v13 = vadd.f32 %v347_v11, %v5504_v2  ;;  %vm381_vm3 = vcmp.ge.f32.partialorder %v344_v7, 0.0 }
 0x1af   :  { %vm382_vm2 = vcmp.ge.f32.partialorder %v346_v10, 0.0  ;;  %v398_v14 = vmul.f32 0.01, %v346_v10  ;;  %v412_v16 = vsel %vm380_vm1, %v342_v5, %v396_v9 }
 0x1b0   :  { %v399_v15 = vmul.f32 0.01, %v348_v13  ;;  %vm383_vm4 = vcmp.ge.f32.partialorder %v348_v13, 0.0  ;;  %v413_v19 = vsel %vm381_vm3, %v344_v7, %v397_v12 }
 0x1b1   :  { %v414_v17 = vsel %vm382_vm2, %v346_v10, %v398_v14 }
 0x1b2   :  { %v351_v18 = vpop.f32.mrb[4].mxu0  ;;  %v415_v20 = vsel %vm383_vm4, %v348_v13, %v399_v15  ;;  %v428_v21 = vpack.c.bf16 %v414_v17, %v412_v16  ;;  %v4400_v16 = vld [vmem:[#allocation8 + $0x80] ss:$12 sps:$4 sm:$0xff]  }
 0x1b3   :  { %v352_v22 = vadd.f32 %v351_v18, %v5501_v1  ;;  %v353_v23 = vpop.f32.mrb[5].mxu0  ;;  %v429_v24 = vpack.c.bf16 %v415_v20, %v413_v19 }
 0x1b4   :  { %v354_v25 = vadd.f32 %v353_v23, %v5504_v2  ;;  %v355_v26 = vpop.f32.mrb[6].mxu0 }
 0x1b5   :  { %v400_v29 = vmul.f32 0.01, %v352_v22  ;;  %v356_v30 = vadd.f32 %v355_v26, %v5501_v1  ;;  %v357_v31 = vpop.f32.mrb[7].mxu0  ;;  %603 = vmatprep.mubr.bf16.mxu1 %v429_v24  ;;  %vm384_vm5 = vcmp.ge.f32.partialorder %v352_v22, 0.0  ;;  %v4401_v24 = vld [vmem:[#allocation8 + $0x98] ss:$12 sps:$4 sm:$0xff]  }
 0x1b6   :  { %v401_v32 = vmul.f32 0.01, %v354_v25  ;;  %v358_v33 = vadd.f32 %v357_v31, %v5504_v2  ;;  %604 = vmatmul.mubr.bf16.vlgmr.msra.gmra.mrb[0].mxu1 %v428_v21  ;;  %vm385_vm6 = vcmp.ge.f32.partialorder %v354_v25, 0.0  ;;  %v4405_v31 = vld [vmem:[#allocation8 + $0xb0] ss:$12 sps:$4 sm:$0xff]  }
 0x1b7   :  { %vm386_vm7 = vcmp.ge.f32.partialorder %v356_v30, 0.0  ;;  %v402_v34 = vmul.f32 0.01, %v356_v30  ;;  %4014 = vmatpush3.bf16.msra.mxu1 %v5432_v27  ;;  %v416_v37 = vsel %vm384_vm5, %v352_v22, %v400_v29  ;;  %v4392_v27 = vld [vmem:[#allocation8 + $0x50] ss:$12 sps:$4 sm:$0xff]  }
 0x1b8   :  { %vm387_vm8 = vcmp.ge.f32.partialorder %v358_v33, 0.0  ;;  %v403_v35 = vmul.f32 0.01, %v358_v33  ;;  %4015 = vmatprep.subr.bf16.mxu1 %v4384_v28  ;;  %v417_v40 = vsel %vm385_vm6, %v354_v25, %v401_v32  ;;  %v4416_v32 = vld [vmem:[%s6499_s13 + $0x20] ss:$12 sps:$4 sm:$0xff]  }
 0x1b9   :  { %v418_v38 = vsel %vm386_vm7, %v356_v30, %v402_v34  ;;  %v5543_v34 = vld [vmem:[#allocation19 + $0x30] sm:$0xff] }
 0x1ba   :  { %v361_v39 = vpop.f32.mrb[8].mxu0  ;;  %v419_v41 = vsel %vm387_vm8, %v358_v33, %v403_v35  ;;  %v430_v42 = vpack.c.bf16 %v418_v38, %v416_v37  ;;  %v5538_v33 = vld [vmem:[%s6499_s13 + $0x7c] ss:$12 sps:$4 sm:$0xff]   ;;  %v5559_v37 = vld [vmem:[%s6499_s13 + $0x94] ss:$12 sps:$4 sm:$0xff]  }
 0x1bb   :  { %v362_v43 = vadd.f32 %v361_v39, %v5501_v1  ;;  %v363_v45 = vpop.f32.mrb[9].mxu0  ;;  %v431_v46 = vpack.c.bf16 %v419_v41, %v417_v40  ;;  %4016 = vmatpush3.bf16.msra.mxu1 %v4384_v28  ;;  %v5550_v35 = vld [vmem:[#allocation19 + $0x38] sm:$0xff]  ;;  %1170 = vmatprep.subr.bf16.mxu0 %v5538_v33 }
 0x1bc   :  { %v364_v47 = vadd.f32 %v363_v45, %v5504_v2  ;;  %v365_v48 = vpop.f32.mrb[10].mxu0  ;;  %4017 = vmatprep.subr.bf16.mxu1 %v4388_v36  ;;  %v4428_v38 = vld [vmem:[%s6499_s13 + $0x68] ss:$12 sps:$4 sm:$0xff]   ;;  %v5567_v39 = vld [vmem:[%s6499_s13 + $0x90] ss:$12 sps:$4 sm:$0xff]  }
 0x1bd   :  { %v404_v49 = vmul.f32 0.01, %v362_v43  ;;  %v366_v50 = vadd.f32 %v365_v48, %v5501_v1  ;;  %v367_v52 = vpop.f32.mrb[11].mxu0  ;;  %611 = vmatprep.mubr.bf16.mxu1 %v431_v46  ;;  %vm388_vm9 = vcmp.ge.f32.partialorder %v362_v43, 0.0  ;;  %v5575_v40 = vld [vmem:[%s6499_s13 + $0xac] ss:$12 sps:$4 sm:$0xff]  }
 0x1be   :  { %v405_v55 = vmul.f32 0.01, %v364_v47  ;;  %v368_v56 = vadd.f32 %v367_v52, %v5504_v2  ;;  %612 = vmatmul.mubr.bf16.gmra.mrb[4].mxu1 %v430_v42  ;;  %vm389_vm10 = vcmp.ge.f32.partialorder %v364_v47, 0.0  ;;  %v4432_v41 = vld [vmem:[%s6499_s13 + $0x80] ss:$12 sps:$4 sm:$0xff]   ;;  %v4434_v45 = vld [vmem:[#allocation4] sm:$0xff]  }
 0x1bf   :  { %vm390_vm11 = vcmp.ge.f32.partialorder %v366_v50, 0.0  ;;  %v406_v60 = vmul.f32 0.01, %v366_v50  ;;  %4018 = vmatpush3.bf16.msra.mxu1 %v4388_v36  ;;  %v420_v5 = vsel %vm388_vm9, %v362_v43, %v404_v49  ;;  %v663_v36 = vpack.c.bf16 %v5550_v35, %v5543_v34  ;;  %v5583_v42 = vld [vmem:[%s6499_s13 + $0xa8] ss:$12 sps:$4 sm:$0xff]  }
 0x1c0   :  { %vm391_vm12 = vcmp.ge.f32.partialorder %v368_v56, 0.0  ;;  %v407_v63 = vmul.f32 0.01, %v368_v56  ;;  %4019 = vmatprep.subr.bf16.mxu1 %v4392_v27  ;;  %v421_v8 = vsel %vm389_vm10, %v364_v47, %v405_v55  ;;  %v4433_v43 = vld [vmem:[%s6499_s13 + $0x98] ss:$12 sps:$4 sm:$0xff]   ;;  %vm1634_vm9 = vcmask 523264  }
 0x1c1   :  { %v422_v6 = vsel %vm390_vm11, %v366_v50, %v406_v60  ;;  %904 = vmatmul.mubr.bf16.gmra.mrb[28].mxu0 %v663_v36  ;;  %v4435_v46 = vld [vmem:[%s6499_s13 + $0xb0] ss:$12 sps:$4 sm:$0xff]  }
 0x1c2   :  { %v371_v7 = vpop.f32.mrb[12].mxu0  ;;  %v423_v9 = vsel %vm391_vm12, %v368_v56, %v407_v63  ;;  %v432_v10 = vpack.c.bf16 %v422_v6, %v420_v5  ;;  %1192 = vmatprep.mubr.bf16.mxu0 %v5086_v3 }
 0x1c3   :  { %v372_v11 = vadd.f32 %v371_v7, %v5501_v1  ;;  %v373_v12 = vpop.f32.mrb[13].mxu0  ;;  %v433_v13 = vpack.c.bf16 %v423_v9, %v421_v8  ;;  %4020 = vmatpush3.bf16.msra.mxu1 %v4392_v27  ;;  %v5620_v7 = vld [vmem:[%s6501_s29] ss:$0 sm:$0xff]  ;;  %s6290_s29 = sld [smem:[#allocation17 + $0x3]] }
 0x1c4   :  { %v374_v14 = vadd.f32 %v373_v12, %v5504_v2  ;;  %v375_v15 = vpop.f32.mrb[14].mxu0  ;;  %4021 = vmatprep.subr.bf16.mxu1 %v4396_v4 }
 0x1c5   :  { %v408_v17 = vmul.f32 0.01, %v372_v11  ;;  %v376_v18 = vadd.f32 %v375_v15, %v5501_v1  ;;  %v377_v19 = vpop.f32.mrb[15].mxu0  ;;  %619 = vmatprep.mubr.bf16.mxu1 %v433_v13  ;;  %vm392_vm13 = vcmp.ge.f32.partialorder %v372_v11, 0.0 }
 0x1c6   :  { %v409_v20 = vmul.f32 0.01, %v374_v14  ;;  %v378_v21 = vadd.f32 %v377_v19, %v5504_v2  ;;  %620 = vmatmul.mubr.bf16.gmra.mrb[8].mxu1 %v432_v10  ;;  %vm393_vm14 = vcmp.ge.f32.partialorder %v374_v14, 0.0  ;;  %v4412_v2 = vld [vmem:[%s6499_s13 + $0x8] ss:$12 sps:$4 sm:$0xff]  }
 0x1c7   :  { %vm394_vm15 = vcmp.ge.f32.partialorder %v376_v18, 0.0  ;;  %v410_v22 = vmul.f32 0.01, %v376_v18  ;;  %4022 = vmatpush3.bf16.msra.mxu1 %v4396_v4  ;;  %v424_v25 = vsel %vm392_vm13, %v372_v11, %v408_v17 }
 0x1c8   :  { %vm395_vm0 = vcmp.ge.f32.partialorder %v378_v21, 0.0  ;;  %v411_v23 = vmul.f32 0.01, %v378_v21  ;;  %4023 = vmatprep.subr.bf16.mxu1 %v4400_v16  ;;  %v425_v28 = vsel %vm393_vm14, %v374_v14, %v409_v20 }
 0x1c9   :  { %v426_v26 = vsel %vm394_vm15, %v376_v18, %v410_v22 }
 0x1ca   :  { %v427_v29 = vsel %vm395_vm0, %v378_v21, %v411_v23  ;;  %v434_v1 = vpack.c.bf16 %v426_v26, %v424_v25  ;;  %v5593_v47 = vpop.f32.mrb[16].mxu0  ;;  %v4436_v25 = vld [vmem:[#allocation4 + $0x8] sm:$0xff]  }
 0x1cb   :  { %v435_v30 = vpack.c.bf16 %v427_v29, %v425_v28  ;;  %4024 = vmatpush3.bf16.msra.mxu1 %v4400_v16  ;;  %v5595_v48 = vpop.f32.mrb[17].mxu0 }
 0x1cc   :  { %4025 = vmatprep.subr.bf16.mxu1 %v4401_v24  ;;  %v5597_v27 = vpop.f32.mrb[18].mxu0 }
 0x1cd   :  { %627 = vmatprep.mubr.bf16.mxu1 %v435_v30  ;;  %v5599_v49 = vpop.f32.mrb[19].mxu0  ;;  %v4437_v30 = vld [vmem:[#allocation4 + $0x10] sm:$0xff]  }
 0x1ce   :  { %628 = vmatmul.mubr.bf16.gmra.mrb[12].mxu1 %v434_v1 }
 0x1cf   :  { %4026 = vmatpush3.bf16.msra.mxu1 %v4401_v24  ;;  %4029 = vmatprep.mubr.bf16.mxu1 %v5438_v44  ;;  %v4420_v44 = vld [vmem:[%s6499_s13 + $0x38] ss:$12 sps:$4 sm:$0xff]  }
 0x1d0   :  { %4027 = vmatprep.subr.bf16.mxu1 %v4405_v31 }
 0x1d2   :  { %v5601_v50 = vpop.f32.mrb[20].mxu0 }
 0x1d3   :  { %4028 = vmatpush3.bf16.msra.mxu1 %v4405_v31  ;;  %v5603_v52 = vpop.f32.mrb[21].mxu0 }
 0x1d4   :  { %4037 = vmatprep.subr.bf16.mxu1 %v4412_v2  ;;  %v5605_v55 = vpop.f32.mrb[22].mxu0 }
 0x1d5   :  { %v5607_v56 = vpop.f32.mrb[23].mxu0 }
 0x1d6   :  { %4030 = vmatmul.mubr.bf16.vlgmr.msra.gmra.mrb[16].mxu1 %v5454_v51  ;;  %v4424_v51 = vld [vmem:[%s6499_s13 + $0x50] ss:$12 sps:$4 sm:$0xff]  }
 0x1d7   :  { %4038 = vmatpush3.bf16.msra.mxu1 %v4412_v2  ;;  %4033 = vmatprep.mubr.bf16.mxu1 %v5477_v58  ;;  %v5548_v58 = vld [vmem:[%s6499_s13 + $0x78] ss:$12 sps:$4 sm:$0xff]  }
 0x1d8   :  { %4039 = vmatprep.subr.bf16.mxu1 %v4416_v32  ;;  %1171 = vmatpush1.bf16.msra.mxu0 %v5548_v58 }
 0x1d9   :  { %1172 = vmatprep.subr.bf16.mxu0 %v5559_v37 }
 0x1da   :  { %v5609_v60 = vpop.f32.mrb[24].mxu0 }
 0x1db   :  { %4040 = vmatpush3.bf16.msra.mxu1 %v4416_v32  ;;  %v5611_v63 = vpop.f32.mrb[25].mxu0 }
 0x1dc   :  { %4041 = vmatprep.subr.bf16.mxu1 %v4420_v44  ;;  %1173 = vmatpush1.bf16.msra.mxu0 %v5567_v39  ;;  %v5613_v4 = vpop.f32.mrb[26].mxu0 }
 0x1dd   :  { %1174 = vmatprep.subr.bf16.mxu0 %v5575_v40  ;;  %v5615_v5 = vpop.f32.mrb[27].mxu0 }
 0x1de   :  { %4034 = vmatmul.mubr.bf16.gmra.mrb[20].mxu1 %v663_v36 }
 0x1df   :  { %4042 = vmatpush3.bf16.msra.mxu1 %v4420_v44 }
 0x1e0   :  { %4043 = vmatprep.subr.bf16.mxu1 %v4424_v51  ;;  %1175 = vmatpush1.bf16.msra.mxu0 %v5583_v42 }
 0x1e1   :  { %4061 = vmatprep.subr.bf16.mxu0 %v4434_v45 }
 0x1e3   :  { %4044 = vmatpush3.bf16.msra.mxu1 %v4424_v51 }
 0x1e4   :  { %4045 = vmatprep.subr.bf16.mxu1 %v4428_v38 }
 0x1e7   :  { %4046 = vmatpush3.bf16.msra.mxu1 %v4428_v38 }
 0x1e8   :  { %4047 = vmatprep.subr.bf16.mxu1 %v4432_v41 }
 0x1eb   :  { %4048 = vmatpush3.bf16.msra.mxu1 %v4432_v41 }
 0x1ec   :  { %4049 = vmatprep.subr.bf16.mxu1 %v4433_v43 }
 0x1ef   :  { %4050 = vmatpush3.bf16.msra.mxu1 %v4433_v43 }
 0x1f0   :  { %4051 = vmatprep.subr.bf16.mxu1 %v4435_v46 }
 0x1f3   :  { %4052 = vmatpush3.bf16.msra.mxu1 %v4435_v46  ;;  %v4438_v46 = vld [vmem:[#allocation4 + $0x18] sm:$0xff]  }
 0x289   :  { %v3871_v6 = vpop.f32.mrb[0].mxu1 }
 0x28a   :  { %v3872_v8 = vpop.f32.mrb[1].mxu1 }
 0x28b   :  { %v3873_v9 = vadd.f32 %v3872_v8, %v3871_v6  ;;  %v3874_v10 = vpop.f32.mrb[2].mxu1 }
 0x28c   :  { %v3875_v11 = vpop.f32.mrb[3].mxu1 }
 0x28d   :  { %v606_v12 = vadd.f32 %v3873_v9, %v5620_v7  ;;  %v3876_v13 = vadd.f32 %v3875_v11, %v3874_v10  ;;  %v4439_v10 = vld [vmem:[#allocation4 + $0x20] sm:$0xff]  }
 0x28f   :  { %v644_v14 = vmul.f32 0.01, %v606_v12  ;;  %v609_v15 = vadd.f32 %v3876_v13, %v5620_v7  ;;  %vm636_vm1 = vcmp.ge.f32.partialorder %v606_v12, 0.0 }
 0x291   :  { %vm637_vm2 = vcmp.ge.f32.partialorder %v609_v15, 0.0  ;;  %v645_v16 = vmul.f32 0.01, %v609_v15  ;;  %v3877_v17 = vpop.f32.mrb[4].mxu1  ;;  %v652_v19 = vsel %vm636_vm1, %v606_v12, %v644_v14 }
 0x292   :  { %v3878_v18 = vpop.f32.mrb[5].mxu1 }
 0x293   :  { %v653_v20 = vsel %vm637_vm2, %v609_v15, %v645_v16  ;;  %v3879_v21 = vadd.f32 %v3878_v18, %v3877_v17  ;;  %v3880_v22 = vpop.f32.mrb[6].mxu1 }
 0x294   :  { %v5624_v23 = vpack.c.bf16 %v653_v20, %v652_v19  ;;  %v3881_v24 = vpop.f32.mrb[7].mxu1  ;;  %v4440_v20 = vld [vmem:[#allocation4 + $0x28] sm:$0xff]  }
 0x295   :  { %v614_v26 = vadd.f32 %v3879_v21, %v5620_v7  ;;  %v3882_v28 = vadd.f32 %v3881_v24, %v3880_v22 }
 0x296   :  { %1193 = vmatmul.mubr.bf16.vlgmr.msra.gmra.mrb[32].mxu0 %v5624_v23  ;;  %4053 = vmatprep.mubr.bf16.mxu1 %v5624_v23 }
 0x297   :  { %v646_v29 = vmul.f32 0.01, %v614_v26  ;;  %v617_v1 = vadd.f32 %v3882_v28, %v5620_v7  ;;  %4062 = vmatpush3.bf16.msra.mxu0 %v4434_v45  ;;  %1202 = vmatprep.mubr.bf16.mxu0 %v5086_v3  ;;  %vm638_vm3 = vcmp.ge.f32.partialorder %v614_v26, 0.0 }
 0x298   :  { %4063 = vmatprep.subr.bf16.mxu0 %v4436_v25 }
 0x299   :  { %vm639_vm4 = vcmp.ge.f32.partialorder %v617_v1, 0.0  ;;  %v647_v31 = vmul.f32 0.01, %v617_v1  ;;  %v3883_v2 = vpop.f32.mrb[8].mxu1  ;;  %v654_v36 = vsel %vm638_vm3, %v614_v26, %v646_v29  ;;  %v4441_v26 = vld [vmem:[#allocation4 + $0x30] sm:$0xff]  }
 0x29a   :  { %v3884_v32 = vpop.f32.mrb[9].mxu1 }
 0x29b   :  { %v3885_v44 = vadd.f32 %v3884_v32, %v3883_v2  ;;  %v3886_v51 = vpop.f32.mrb[10].mxu1  ;;  %4064 = vmatpush3.bf16.msra.mxu0 %v4436_v25  ;;  %v655_v38 = vsel %vm639_vm4, %v617_v1, %v647_v31  ;;  %v4442_v2 = vld [vmem:[#allocation4 + $0x38] sm:$0xff]  }
 0x29c   :  { %v3887_v41 = vpop.f32.mrb[11].mxu1  ;;  %v980_v43 = vpack.c.bf16 %v655_v38, %v654_v36  ;;  %4065 = vmatprep.subr.bf16.mxu0 %v4437_v30 }
 0x29d   :  { %v622_v45 = vadd.f32 %v3885_v44, %v5620_v7  ;;  %v3888_v6 = vadd.f32 %v3887_v41, %v3886_v51 }
 0x29e   :  { %1203 = vmatmul.mubr.bf16.gmra.mrb[36].mxu0 %v980_v43  ;;  %4054 = vmatmul.mubr.bf16.vlgmr.msra.gmra.mrb[24].mxu1 %v980_v43 }
 0x29f   :  { %v648_v8 = vmul.f32 0.01, %v622_v45  ;;  %v625_v9 = vadd.f32 %v3888_v6, %v5620_v7  ;;  %4066 = vmatpush3.bf16.msra.mxu0 %v4437_v30  ;;  %1212 = vmatprep.mubr.bf16.mxu0 %v5086_v3  ;;  %vm640_vm5 = vcmp.ge.f32.partialorder %v622_v45, 0.0  ;;  %v5666_v6 = vld [vmem:[%s6502_s19] sm:$0xff]  }
 0x2a0   :  { %4067 = vmatprep.subr.bf16.mxu0 %v4438_v46 }
 0x2a1   :  { %vm641_vm6 = vcmp.ge.f32.partialorder %v625_v9, 0.0  ;;  %v649_v11 = vmul.f32 0.01, %v625_v9  ;;  %v3889_v12 = vpop.f32.mrb[12].mxu1  ;;  %v656_v16 = vsel %vm640_vm5, %v622_v45, %v648_v8  ;;  %v4447_v8 = vld [vmem:[%s6499_s13] ss:$12 sps:$4 sm:$0xff]  }
 0x2a2   :  { %v3890_v13 = vpop.f32.mrb[13].mxu1 }
 0x2a3   :  { %v3891_v14 = vadd.f32 %v3890_v13, %v3889_v12  ;;  %v3892_v15 = vpop.f32.mrb[14].mxu1  ;;  %4068 = vmatpush3.bf16.msra.mxu0 %v4438_v46  ;;  %v657_v17 = vsel %vm641_vm6, %v625_v9, %v649_v11  ;;  %v4449_v9 = vld [vmem:[%s6499_s13 + $0x4] ss:$12 sps:$4 sm:$0xff]   ;;  %v4457_v12 = vld [vmem:[%s6499_s13 + $0x34] ss:$12 sps:$4 sm:$0xff]  }
 0x2a4   :  { %v3893_v18 = vpop.f32.mrb[15].mxu1  ;;  %v981_v19 = vpack.c.bf16 %v657_v17, %v656_v16  ;;  %4069 = vmatprep.subr.bf16.mxu0 %v4439_v10  ;;  %v4451_v11 = vld [vmem:[%s6499_s13 + $0x18] ss:$12 sps:$4 sm:$0xff]   ;;  %v4455_v13 = vld [vmem:[%s6499_s13 + $0x30] ss:$12 sps:$4 sm:$0xff]  }
 0x2a5   :  { %v630_v21 = vadd.f32 %v3891_v14, %v5620_v7  ;;  %v3894_v22 = vadd.f32 %v3893_v18, %v3892_v15 }
 0x2a6   :  { %1213 = vmatmul.mubr.bf16.gmra.mrb[40].mxu0 %v981_v19  ;;  %4057 = vmatprep.mubr.bf16.mxu1 %v981_v19 }
 0x2a7   :  { %v650_v24 = vmul.f32 0.01, %v630_v21  ;;  %v633_v25 = vadd.f32 %v3894_v22, %v5620_v7  ;;  %4070 = vmatpush3.bf16.msra.mxu0 %v4439_v10  ;;  %1222 = vmatprep.mubr.bf16.mxu0 %v5086_v3  ;;  %vm642_vm7 = vcmp.ge.f32.partialorder %v630_v21, 0.0  ;;  %v5641_v7 = vpop.f32.mrb[28].mxu0  ;;  %v4453_v10 = vld [vmem:[%s6499_s13 + $0x1c] ss:$12 sps:$4 sm:$0xff]  }
 0x2a8   :  { %4071 = vmatprep.subr.bf16.mxu0 %v4440_v20  ;;  %v5643_v32 = vpop.f32.mrb[29].mxu0 }
 0x2a9   :  { %vm643_vm8 = vcmp.ge.f32.partialorder %v633_v25, 0.0  ;;  %v651_v28 = vmul.f32 0.01, %v633_v25  ;;  %v5637_v29 = vpop.f32.mrb[16].mxu1  ;;  %v658_v1 = vsel %vm642_vm7, %v630_v21, %v650_v24  ;;  %v5645_v44 = vpop.f32.mrb[30].mxu0 }
 0x2aa   :  { %v5647_v51 = vpop.f32.mrb[31].mxu0  ;;  %v5649_v36 = vpop.f32.mrb[17].mxu1 }
 0x2ab   :  { %4072 = vmatpush3.bf16.msra.mxu0 %v4440_v20  ;;  %v659_v30 = vsel %vm643_vm8, %v633_v25, %v651_v28  ;;  %v5651_v38 = vpop.f32.mrb[18].mxu1 }
 0x2ac   :  { %v982_v31 = vpack.c.bf16 %v659_v30, %v658_v1  ;;  %4073 = vmatprep.subr.bf16.mxu0 %v4441_v26 }
 0x2ae   :  { %1223 = vmatmul.mubr.bf16.gmra.mrb[44].mxu0 %v982_v31  ;;  %4058 = vmatmul.mubr.bf16.gmra.mrb[28].mxu1 %v982_v31 }
 0x2af   :  { %4074 = vmatpush3.bf16.msra.mxu0 %v4441_v26  ;;  %4077 = vmatprep.mubr.bf16.mxu0 %v5624_v23  ;;  %v5653_v23 = vpop.f32.mrb[19].mxu1 }
 0x2b0   :  { %4075 = vmatprep.subr.bf16.mxu0 %v4442_v2  ;;  %4093 = vmatprep.mubr.msk.bf16.mxu1 %vm1634_vm9, %v5666_v6 }
 0x2b1   :  { %v5655_v41 = vpop.f32.mrb[20].mxu1 }
 0x2b3   :  { %4076 = vmatpush3.bf16.msra.mxu0 %v4442_v2 }
 0x2b4   :  { %1917 = vmatprep.subr.bf16.mxu0 %v4449_v9 }
 0x2b6   :  { %4078 = vmatmul.mubr.bf16.vlgmr.msra.gmra.mrb[48].mxu0 %v980_v43  ;;  %v5657_v43 = vpop.f32.mrb[21].mxu1 }
 0x2b7   :  { %4081 = vmatprep.mubr.bf16.mxu0 %v981_v19  ;;  %v5659_v46 = vpop.f32.mrb[22].mxu1  ;;  %1918 = vmatpush1.bf16.msra.mxu0 %v4447_v8 }
 0x2b8   :  { %v5661_v45 = vpop.f32.mrb[23].mxu1  ;;  %1919 = vmatprep.subr.bf16.mxu0 %v4453_v10 }
 0x2bb   :  { %1920 = vmatpush1.bf16.msra.mxu0 %v4451_v11 }
 0x2bc   :  { %1921 = vmatprep.subr.bf16.mxu0 %v4457_v12 }
 0x2be   :  { %4082 = vmatmul.mubr.bf16.gmra.mrb[52].mxu0 %v982_v31 }
 0x2bf   :  { %1949 = vmatprep.mubr.bf16.mxu0 %v5086_v3  ;;  %1922 = vmatpush1.bf16.msra.mxu0 %v4455_v13 }
 0x2c0   :  { %1923 = vmatprep.subr.bf16.mxu0 %v5462_v53  ;;  %v5701_v53 = vld [vmem:[%s6503_s24] sm:$0x7]  ;;  %s6281_s24 = sld [smem:[#allocation16 + $0x2]] }
 0x2c3   :  { %1924 = vmatpush1.bf16.msra.mxu0 %v5469_v54  ;;  %v5706_v54 = vld [vmem:[%s6504_s10] sm:$0x7] }
 0x2c4   :  { %1925 = vmatprep.subr.bf16.mxu0 %v5475_v57  ;;  %v5710_v57 = vrot.slane %v5701_v53, %v5492_v62 }
 0x2c6   :  { %v5736_v17 = vadd.f32 %v5597_v27, %v5710_v57  ;;  %s3296_s25 = scalar_lea.vmem [#allocation25], %s6281_s24  ;;  %s3344_s24 = scalar_lea.vmem [#allocation25], %s6317_s21 }
 0x2c7   :  { %1926 = vmatpush1.bf16.msra.mxu0 %v5483_v59  ;;  %v5714_v59 = vrot.slane %v5706_v54, %v5492_v62  ;;  %s6517_s21 = sld [smem:[#allocation40_spill]] }
 0x2c8   :  { %1927 = vmatprep.subr.bf16.mxu0 %v5538_v33  ;;  %v5718_v33 = vrot.slane %v5701_v53, %v5498_v0 }
 0x2ca   :  { %v5731_v14 = vadd.f32 %v5595_v48, %v5718_v33  ;;  %v5742_v20 = vadd.f32 %v5599_v49, %v5718_v33  ;;  %v5752_v49 = vadd.f32 %v5601_v50, %v5710_v57  ;;  %v5759_v9 = vadd.f32 %v5603_v52, %v5718_v33 }
 0x2cb   :  { %1928 = vmatpush1.bf16.msra.mxu0 %v5548_v58  ;;  %v5722_v58 = vrot.slane %v5706_v54, %v5498_v0  ;;  %v5766_v50 = vadd.f32 %v5605_v55, %v5710_v57 }
 0x2cc   :  { %1929 = vmatprep.subr.bf16.mxu0 %v5559_v37 }
 0x2cf   :  { %1930 = vmatpush1.bf16.msra.mxu0 %v5567_v39  ;;  %v5726_v39 = vadd.f32 %v5593_v47, %v5710_v57 }
 0x2d0   :  { %1931 = vmatprep.subr.bf16.mxu0 %v5575_v40 }
 0x2d3   :  { %1932 = vmatpush1.bf16.msra.mxu0 %v5583_v42 }
 0x369   :  { %v1194_v37 = vpop.f32.mrb[32].mxu0 }
 0x36a   :  { %v1195_v40 = vadd.f32 %v1194_v37, %v5714_v59  ;;  %v1196_v42 = vpop.f32.mrb[33].mxu0 }
 0x36b   :  { %v1197_v15 = vadd.f32 %v1196_v42, %v5722_v58  ;;  %v1198_v16 = vpop.f32.mrb[34].mxu0 }
 0x36c   :  { %v1298_v18 = vadd.f32 %v1195_v40, %v5726_v39  ;;  %v1199_v19 = vadd.f32 %v1198_v16, %v5714_v59  ;;  %v1200_v47 = vpop.f32.mrb[35].mxu0  ;;  %v5776_v16 = vadd.f32 %v5607_v56, %v5718_v33  ;;  %v5787_v56 = vadd.f32 %v5613_v4, %v5710_v57 }
 0x36d   :  { %v1354_v21 = vadd.f32 %v1197_v15, %v5731_v14  ;;  %v1201_v48 = vadd.f32 %v1200_v47, %v5722_v58  ;;  %v5797_v4 = vadd.f32 %v5611_v63, %v5718_v33 }
 0x36e   :  { %v3674_v22 = vmul.f32 -1.442695, %v1298_v18  ;;  %v1299_v24 = vadd.f32 %v1199_v19, %v5736_v17 }
 0x36f   :  { %v3682_v25 = vmul.f32 -1.442695, %v1354_v21  ;;  %v1355_v27 = vadd.f32 %v1201_v48, %v5742_v20 }
 0x370   :  { %4536 = vpow2.f32 %v3674_v22  ;;  %v3675_v26 = vmul.f32 -1.442695, %v1299_v24  ;;  %v5782_v24 = vadd.f32 %v5609_v60, %v5710_v57 }
 0x371   :  { %v3683_v28 = vmul.f32 -1.442695, %v1355_v27  ;;  %v1204_v1 = vpop.f32.mrb[36].mxu0  ;;  %v5748_v30 = vpop.f32.mrb[24].mxu1 }
 0x372   :  { %4538 = vpow2.f32 %v3675_v26  ;;  %v1205_v31 = vadd.f32 %v1204_v1, %v5714_v59  ;;  %v1206_v2 = vpop.f32.mrb[37].mxu0  ;;  %v5755_v8 = vpop.f32.mrb[25].mxu1 }
 0x373   :  { %4540 = vpow2.f32 %v3682_v25  ;;  %v1207_v10 = vadd.f32 %v1206_v2, %v5722_v58  ;;  %v1208_v11 = vpop.f32.mrb[38].mxu0  ;;  %v5762_v12 = vpop.f32.mrb[26].mxu1 }
 0x374   :  { %v1300_v13 = vadd.f32 %v1205_v31, %v5752_v49  ;;  %v1209_v37 = vadd.f32 %v1208_v11, %v5714_v59  ;;  %v1210_v40 = vpop.f32.mrb[39].mxu0  ;;  %v5770_v42 = vpop.f32.mrb[27].mxu1  ;;  %4542 = vpow2.f32 %v3683_v28 }
 0x375   :  { %v1356_v52 = vadd.f32 %v1207_v10, %v5759_v9  ;;  %v1211_v15 = vadd.f32 %v1210_v40, %v5722_v58 }
 0x376   :  { %v3676_v18 = vmul.f32 -1.442695, %v1300_v13  ;;  %v1301_v55 = vadd.f32 %v1209_v37, %v5766_v50  ;;  %v5793_v37 = vsub.s32 2, %v5489_v61 }
 0x377   :  { %v3684_v19 = vmul.f32 -1.442695, %v1356_v52  ;;  %v1357_v21 = vadd.f32 %v1211_v15, %v5776_v16 }
 0x378   :  { %4544 = vpow2.f32 %v3676_v18  ;;  %v3677_v47 = vmul.f32 -1.442695, %v1301_v55  ;;  %v5807_v61 = vrot.slane %v5701_v53, %v5793_v37 }
 0x379   :  { %v1214_v48 = vpop.f32.mrb[40].mxu0  ;;  %v3685_v31 = vmul.f32 -1.442695, %v1357_v21 }
 0x37a   :  { %v4537_v22 = vpop.eup %4536  ;;  %4546 = vpow2.f32 %v3677_v47  ;;  %v1215_v25 = vadd.f32 %v1214_v48, %v5714_v59  ;;  %v1216_v27 = vpop.f32.mrb[41].mxu0  ;;  %v5812_v48 = vadd.f32 %v5641_v7, %v5710_v57 }
 0x37b   :  { %v1330_v26 = vadd.f32 1.0, %v4537_v22  ;;  %4548 = vpow2.f32 %v3684_v19  ;;  %v1218_v28 = vpop.f32.mrb[42].mxu0  ;;  %v1217_v10 = vadd.f32 %v1216_v27, %v5722_v58  ;;  %v5803_v19 = vadd.f32 %v5615_v5, %v5718_v33 }
 0x37c   :  { %v4539_v1 = vpop.eup %4538  ;;  %v1302_v2 = vadd.f32 %v1215_v25, %v5782_v24  ;;  %v1219_v60 = vadd.f32 %v1218_v28, %v5714_v59  ;;  %v1220_v11 = vpop.f32.mrb[43].mxu0  ;;  %v5816_v22 = vadd.f32 %v5645_v44, %v5710_v57  ;;  %v5830_v44 = vadd.f32 %v5649_v36, %v5807_v61 }
 0x37d   :  { %v4541_v13 = vpop.eup %4540  ;;  %4550 = vrcp.f32 %v1330_v26  ;;  %v1331_v40 = vadd.f32 1.0, %v4539_v1  ;;  %v1221_v18 = vadd.f32 %v1220_v11, %v5722_v58  ;;  %v1358_v63 = vadd.f32 %v1217_v10, %v5797_v4 }
 0x37e   :  { %v3678_v52 = vmul.f32 -1.442695, %v1302_v2  ;;  %v1303_v15 = vadd.f32 %v1219_v60, %v5787_v56  ;;  %v4543_v55 = vpop.eup %4542  ;;  %v1386_v47 = vadd.f32 1.0, %v4541_v13  ;;  %v5822_v26 = vrot.slane %v5706_v54, %v5793_v37 }
 0x37f   :  { %4552 = vrcp.f32 %v1331_v40  ;;  %v1387_v27 = vadd.f32 1.0, %v4543_v55  ;;  %v1359_v28 = vadd.f32 %v1221_v18, %v5803_v19  ;;  %v3686_v11 = vmul.f32 -1.442695, %v1358_v63 }
 0x380   :  { %4554 = vpow2.f32 %v3685_v31  ;;  %v3679_v21 = vmul.f32 -1.442695, %v1303_v15  ;;  %v5841_v36 = vadd.f32 %v5643_v32, %v5718_v33  ;;  %v5845_v55 = vadd.f32 %v5653_v23, %v5807_v61 }
 0x381   :  { %4556 = vpow2.f32 %v3678_v52  ;;  %v1224_v5 = vpop.f32.mrb[44].mxu0  ;;  %v5818_v25 = vpop.f32.mrb[28].mxu1 }
 0x382   :  { %v4545_v53 = vpop.eup %4544  ;;  %v1225_v1 = vadd.f32 %v1224_v5, %v5714_v59  ;;  %v1226_v7 = vpop.f32.mrb[45].mxu0  ;;  %4558 = vpow2.f32 %v3679_v21 }
 0x383   :  { %v5826_v31 = vpop.f32.mrb[29].mxu1  ;;  %v1332_v57 = vadd.f32 1.0, %v4545_v53  ;;  %v1227_v2 = vadd.f32 %v1226_v7, %v5722_v58  ;;  %v1228_v10 = vpop.f32.mrb[46].mxu0  ;;  %4560 = vrcp.f32 %v1386_v47  ;;  %v3687_v47 = vmul.f32 -1.442695, %v1359_v28 }
 0x384   :  { %v5833_v60 = vpop.f32.mrb[30].mxu1  ;;  %v4547_v54 = vpop.eup %4546  ;;  %v1304_v13 = vadd.f32 %v1225_v1, %v5812_v48  ;;  %v1229_v40 = vadd.f32 %v1228_v10, %v5714_v59  ;;  %v1268_v7 = vadd.f32 %v5755_v8, %v5822_v26 }
 0x385   :  { %v1230_v52 = vpop.f32.mrb[47].mxu0  ;;  %v5837_v15 = vpop.f32.mrb[31].mxu1  ;;  %4562 = vrcp.f32 %v1332_v57  ;;  %v1333_v21 = vadd.f32 1.0, %v4547_v54  ;;  %v1360_v53 = vadd.f32 %v1227_v2, %v5841_v36 }
 0x386   :  { %v4549_v18 = vpop.eup %4548  ;;  %4564 = vrcp.f32 %v1387_v27  ;;  %v3680_v63 = vmul.f32 -1.442695, %v1304_v13  ;;  %v1305_v5 = vadd.f32 %v1229_v40, %v5816_v22  ;;  %v1231_v1 = vadd.f32 %v1230_v52, %v5722_v58 }
 0x387   :  { %v4551_v59 = vpop.eup %4550  ;;  %4566 = vrcp.f32 %v1333_v21  ;;  %v5855_v27 = vadd.f32 %v5647_v51, %v5718_v33  ;;  %v1388_v28 = vadd.f32 1.0, %v4549_v18  ;;  %v1271_v58 = vadd.f32 %v5770_v42, %v5822_v26 }
 0x388   :  { %v1410_v32 = vmul.f32 %v4551_v59, %v5830_v44  ;;  %4568 = vpow2.f32 %v3686_v11  ;;  %v3681_v23 = vmul.f32 -1.442695, %v1305_v5  ;;  %v5862_v11 = vadd.f32 %v5637_v29, %v5807_v61 }
 0x389   :  { %v4553_v57 = vpop.eup %4552  ;;  %4570 = vpow2.f32 %v3680_v63  ;;  %v4079_v10 = vpop.f32.mrb[48].mxu0  ;;  %v3688_v52 = vmul.f32 -1.442695, %v1360_v53  ;;  %v1361_v51 = vadd.f32 %v1231_v1, %v5855_v27 }
 0x38a   :  { %v4555_v54 = vpop.eup %4554  ;;  %v1411_v2 = vmul.f32 %v4553_v57, %v5845_v55  ;;  %v1418_v13 = vadd.f32 %v1410_v32, %v1268_v7  ;;  %4572 = vpow2.f32 %v3687_v47  ;;  %v1572_v40 = vpop.f32.mrb[49].mxu0  ;;  %v5867_v32 = vadd.f32 %v5651_v38, %v5807_v61 }
 0x38b   :  { %v4557_v8 = vpop.eup %4556  ;;  %4574 = vpow2.f32 %v3681_v23  ;;  %v4080_v33 = vpop.f32.mrb[50].mxu0  ;;  %v1389_v29 = vadd.f32 1.0, %v4555_v54  ;;  %v3689_v1 = vmul.f32 -1.442695, %v1361_v51  ;;  %v1276_v57 = vadd.f32 %v5748_v30, %v5822_v26 }
 0x38c   :  { %4576 = vtanh.f32 %v1418_v13  ;;  %v1419_v18 = vadd.f32 %v1411_v2, %v1271_v58  ;;  %v1334_v21 = vadd.f32 1.0, %v4557_v8  ;;  %v1604_v63 = vpack.c.bf16 %v4080_v33, %v4079_v10  ;;  %v1575_v5 = vpop.f32.mrb[51].mxu0  ;;  %v4559_v59 = vpop.eup %4558 }
 0x38d   :  { %4578 = vrcp.f32 %v1388_v28  ;;  %v1603_v42 = vpack.c.bf16 %v1575_v5, %v1572_v40  ;;  %v4561_v47 = vpop.eup %4560  ;;  %v1335_v53 = vadd.f32 1.0, %v4559_v59  ;;  %v1279_v13 = vadd.f32 %v5762_v12, %v5822_v26 }
 0x38e   :  { %4580 = vtanh.f32 %v1419_v18  ;;  %v1434_v59 = vsub.f32 1.0, %v4561_v47  ;;  %v5877_v12 = vadd.f32 %v5657_v43, %v5807_v61 }
 0x38f   :  { %v4563_v7 = vpop.eup %4562  ;;  %4582 = vrcp.f32 %v1334_v21  ;;  %4085 = vmatprep.subr.bf16.mxu1 %v1603_v42 }
 0x390   :  { %v4565_v23 = vpop.eup %4564  ;;  %v1412_v10 = vmul.f32 %v4563_v7, %v5862_v11  ;;  %4584 = vpow2.f32 %v3688_v52  ;;  %4086 = vmatpush3.bf16.msra.mxu1 %v1603_v42 }
 0x391   :  { %v4567_v28 = vpop.eup %4566  ;;  %4586 = vrcp.f32 %v1335_v53  ;;  %v4083_v2 = vpop.f32.mrb[52].mxu0  ;;  %4087 = vmatprep.subr.bf16.mxu1 %v1604_v63 }
 0x392   :  { %v4569_v38 = vpop.eup %4568  ;;  %v1420_v54 = vadd.f32 %v1412_v10, %v1276_v57  ;;  %v1413_v58 = vmul.f32 %v4567_v28, %v5867_v32  ;;  %4588 = vrcp.f32 %v1389_v29  ;;  %v1588_v40 = vpop.f32.mrb[53].mxu0  ;;  %v5879_v57 = vld [vmem:[#allocation19] sm:$0xff] }
 0x393   :  { %v4571_v8 = vpop.eup %4570  ;;  %4590 = vpow2.f32 %v3689_v1  ;;  %v4084_v30 = vpop.f32.mrb[54].mxu0  ;;  %v1390_v29 = vadd.f32 1.0, %v4569_v38  ;;  %v1450_v10 = vmul.f32 %v5879_v57, %v4561_v47  ;;  %v4450_v47 = vld [vmem:[%s6499_s13 + $0x8] ss:$12 sps:$4 sm:$0xff]  }
 0x394   :  { %v4573_v51 = vpop.eup %4572  ;;  %4592 = vtanh.f32 %v1420_v54  ;;  %v1421_v52 = vadd.f32 %v1413_v58, %v1279_v13  ;;  %v1336_v33 = vadd.f32 1.0, %v4571_v8  ;;  %v1606_v18 = vpack.c.bf16 %v4084_v30, %v4083_v2  ;;  %v1591_v21 = vpop.f32.mrb[55].mxu0  ;;  %4088 = vmatpush3.bf16.msra.mxu1 %v1604_v63  ;;  %v5886_v58 = vld [vmem:[#allocation19 + $0x8] sm:$0xff] }
 0x395   :  { %v4575_v5 = vpop.eup %4574  ;;  %v1605_v42 = vpack.c.bf16 %v1591_v21, %v1588_v40  ;;  %v1435_v2 = vsub.f32 1.0, %v4565_v23  ;;  %v5884_v54 = vadd.f32 %v5661_v45, %v5807_v61  ;;  %v1391_v13 = vadd.f32 1.0, %v4573_v51 }
 0x396   :  { %v4577_v53 = vpop.eup %4576  ;;  %4594 = vtanh.f32 %v1421_v52  ;;  %v1337_v7 = vadd.f32 1.0, %v4575_v5  ;;  %v1451_v38 = vmul.f32 %v5886_v58, %v4565_v23  ;;  %v1284_v45 = vadd.f32 %v5826_v31, %v5822_v26  ;;  %v5898_v23 = vld [vmem:[%s6502_s19 + $0x8] sm:$0xff]   ;;  %v5906_v31 = vld [vmem:[%s6502_s19 + $0x10] sm:$0xff]  }
 0x397   :  { %v4579_v1 = vpop.eup %4578  ;;  %v1442_v28 = vmul.f32 %v4577_v53, %v1434_v59  ;;  %4596 = vrcp.f32 %v1336_v33  ;;  %4089 = vmatprep.subr.bf16.mxu1 %v1605_v42  ;;  %v1287_v59 = vadd.f32 %v5837_v15, %v5822_v26  ;;  %v5913_v15 = vadd.f32 %v5655_v41, %v5807_v61 }
 0x398   :  { %v4581_v63 = vpop.eup %4580  ;;  %4090 = vmatpush3.bf16.msra.mxu1 %v1605_v42  ;;  %4598 = vrcp.f32 %v1337_v7  ;;  %v4454_v7 = vld [vmem:[%s6499_s13 + $0x20] ss:$12 sps:$4 sm:$0xff]  }
 0x399   :  { %v4583_v43 = vpop.eup %4582  ;;  %v1458_v40 = vadd.f32 %v1450_v10, %v1442_v28  ;;  %v1443_v8 = vmul.f32 %v4581_v63, %v1435_v2  ;;  %4091 = vmatprep.subr.bf16.mxu1 %v1606_v18  ;;  %4600 = vrcp.f32 %v1390_v29  ;;  %v1436_v29 = vsub.f32 1.0, %v4579_v1  ;;  %v5915_v63 = vld [vmem:[#allocation19 + $0x10] sm:$0xff] }
 0x39a   :  { %v4585_v30 = vpop.eup %4584  ;;  %v1414_v51 = vmul.f32 %v4583_v43, %v5877_v12  ;;  %4602 = vrcp.f32 %v1391_v13  ;;  %v1452_v13 = vmul.f32 %v5915_v63, %v4579_v1 }
 0x39b   :  { %v4587_v52 = vpop.eup %4586  ;;  %1466 = vst [vmem:[#allocation22] sm:$0xff] %v1458_v40  ;;  %v1459_v33 = vadd.f32 %v1451_v38, %v1443_v8  ;;  %v1392_v28 = vadd.f32 1.0, %v4585_v30  ;;  %v5922_v40 = vadd.f32 %v5659_v46, %v5807_v61  ;;  %v1292_v46 = vadd.f32 %v5818_v25, %v5822_v26  ;;  %v4459_v25 = vld [vmem:[%s6499_s13 + $0x50] ss:$12 sps:$4 sm:$0xff]  }
 0x39c   :  { %v4589_v21 = vpop.eup %4588  ;;  %v1422_v5 = vadd.f32 %v1414_v51, %v1284_v45  ;;  %v1415_v42 = vmul.f32 %v4587_v52, %v5884_v54  ;;  %4092 = vmatpush3.bf16.msra.mxu1 %v1606_v18  ;;  %v5926_v51 = vld [vmem:[#allocation19 + $0x18] sm:$0xff]  ;;  %v4458_v52 = vld [vmem:[%s6499_s13 + $0x38] ss:$12 sps:$4 sm:$0xff]  }
 0x39d   :  { %v4591_v53 = vpop.eup %4590  ;;  %1467 = vst [vmem:[#allocation22 + $0x8] sm:$0xff] %v1459_v33  ;;  %4101 = vmatprep.subr.bf16.mxu1 %v4450_v47  ;;  %v1437_v43 = vsub.f32 1.0, %v4589_v21  ;;  %v1453_v1 = vmul.f32 %v5926_v51, %v4589_v21 }
 0x39e   :  { %v4593_v10 = vpop.eup %4592  ;;  %4604 = vtanh.f32 %v1422_v5  ;;  %v1423_v18 = vadd.f32 %v1415_v42, %v1287_v59  ;;  %v1393_v8 = vadd.f32 1.0, %v4591_v53  ;;  %v5938_v5 = vld [vmem:[%s6502_s19 + $0x18] sm:$0xff]   ;;  %v1295_v42 = vadd.f32 %v5833_v60, %v5822_v26  ;;  %s6331_s19 = sld [smem:[#allocation17 + $0xb]] }
 0x39f   :  { %v1444_v2 = vmul.f32 %v4593_v10, %v1436_v29  ;;  %4094 = vmatmul.mubr.msk.bf16.vlgmr.msra.gmra.mrb[32].mxu1 %vm1634_vm9, %v5898_v23  ;;  %v5948_v26 = vld [vmem:[#allocation19 + $0x20] sm:$0xff] }
 0x3a0   :  { %v4595_v38 = vpop.eup %4594  ;;  %4606 = vtanh.f32 %v1423_v18  ;;  %4097 = vmatprep.mubr.msk.bf16.mxu1 %vm1634_vm9, %v5906_v31  ;;  %4102 = vmatpush3.bf16.msra.mxu1 %v4450_v47 }
 0x3a1   :  { %v4597_v41 = vpop.eup %4596  ;;  %v1460_v30 = vadd.f32 %v1452_v13, %v1444_v2  ;;  %v1445_v45 = vmul.f32 %v4595_v38, %v1437_v43  ;;  %4103 = vmatprep.subr.bf16.mxu1 %v4454_v7  ;;  %4608 = vrcp.f32 %v1392_v28  ;;  %v4460_v13 = vld [vmem:[%s6499_s13 + $0x68] ss:$12 sps:$4 sm:$0xff]   ;;  %v5954_v38 = vld [vmem:[#allocation19 + $0x28] sm:$0xff] }
 0x3a2   :  { %v1416_v61 = vmul.f32 %v4597_v41, %v5913_v15  ;;  %v4599_v33 = vpop.eup %4598  ;;  %4610 = vrcp.f32 %v1393_v8 }
 0x3a3   :  { %1468 = vst [vmem:[#allocation22 + $0x10] sm:$0xff] %v1460_v30  ;;  %v1461_v47 = vadd.f32 %v1453_v1, %v1445_v45  ;;  %v4601_v21 = vpop.eup %4600  ;;  %v1417_v53 = vmul.f32 %v4599_v33, %v5922_v40 }
 0x3a4   :  { %v1424_v59 = vadd.f32 %v1416_v61, %v1292_v46  ;;  %4104 = vmatpush3.bf16.msra.mxu1 %v4454_v7  ;;  %v4603_v29 = vpop.eup %4602  ;;  %v1438_v28 = vsub.f32 1.0, %v4601_v21  ;;  %v1454_v60 = vmul.f32 %v5948_v26, %v4601_v21  ;;  %s3370_s9 = scalar_lea.vmem [#allocation25], %s6331_s19  ;;  %s3394_s19 = scalar_lea.vmem [#allocation25], %s6518_s22 }
 0x3a5   :  { %1469 = vst [vmem:[#allocation22 + $0x18] sm:$0xff] %v1461_v47  ;;  %4105 = vmatprep.subr.bf16.mxu1 %v4458_v52  ;;  %v1425_v10 = vadd.f32 %v1417_v53, %v1295_v42  ;;  %v1439_v2 = vsub.f32 1.0, %v4603_v29  ;;  %v1455_v8 = vmul.f32 %v5954_v38, %v4603_v29 }
 0x3a6   :  { %4612 = vtanh.f32 %v1424_v59 }
 0x3a7   :  { %4098 = vmatmul.mubr.msk.bf16.gmra.mrb[36].mxu1 %vm1634_vm9, %v5938_v5  ;;  %4614 = vtanh.f32 %v1425_v10 }
 0x3a8   :  { %v4605_v18 = vpop.eup %4604  ;;  %4106 = vmatpush3.bf16.msra.mxu1 %v4458_v52 }
 0x3a9   :  { %v1446_v7 = vmul.f32 %v4605_v18, %v1438_v28  ;;  %4107 = vmatprep.subr.bf16.mxu1 %v4459_v25  ;;  %v4462_v28 = vld [vmem:[%s6499_s13 + $0x98] ss:$12 sps:$4 sm:$0xff]  }
 0x3aa   :  { %v4607_v43 = vpop.eup %4606 }
 0x3ab   :  { %v1462_v41 = vadd.f32 %v1454_v60, %v1446_v7  ;;  %v1447_v30 = vmul.f32 %v4607_v43, %v1439_v2  ;;  %v4609_v45 = vpop.eup %4608 }
 0x3ac   :  { %4108 = vmatpush3.bf16.msra.mxu1 %v4459_v25  ;;  %v4611_v52 = vpop.eup %4610  ;;  %v1440_v46 = vsub.f32 1.0, %v4609_v45  ;;  %v1456_v47 = vmul.f32 %v4609_v45, %v5543_v34  ;;  %v4461_v25 = vld [vmem:[%s6499_s13 + $0x80] ss:$12 sps:$4 sm:$0xff]   ;;  %v4463_v34 = vld [vmem:[%s6499_s13 + $0xb0] ss:$12 sps:$4 sm:$0xff]   ;;  %s6303_s13 = sld [smem:[#allocation17 + $0x5]] }
 0x3ad   :  { %1470 = vst [vmem:[#allocation22 + $0x20] sm:$0xff] %v1462_v41  ;;  %v1463_v1 = vadd.f32 %v1455_v8, %v1447_v30  ;;  %4109 = vmatprep.subr.bf16.mxu1 %v4460_v13  ;;  %v1441_v21 = vsub.f32 1.0, %v4611_v52  ;;  %v1457_v29 = vmul.f32 %v4611_v52, %v5550_v35  ;;  %v3698_v35 = vld [vmem:[%s6505_s1] ss:$0 sm:$0xff]  ;;  %s6301_s1 = sld [smem:[#allocation16 + $0x5]] }
 0x3af   :  { %1471 = vst [vmem:[#allocation22 + $0x28] sm:$0xff] %v1463_v1 }
 0x3b0   :  { %v4613_v61 = vpop.eup %4612  ;;  %4110 = vmatpush3.bf16.msra.mxu1 %v4460_v13 }
 0x3b1   :  { %v1448_v33 = vmul.f32 %v4613_v61, %v1440_v46  ;;  %v4615_v59 = vpop.eup %4614  ;;  %4111 = vmatprep.subr.bf16.mxu1 %v4461_v25 }
 0x3b2   :  { %v1449_v53 = vmul.f32 %v4615_v59, %v1441_v21 }
 0x3b3   :  { %v1464_v42 = vadd.f32 %v1456_v47, %v1448_v33 }
 0x3b4   :  { %v1465_v10 = vadd.f32 %v1457_v29, %v1449_v53  ;;  %4112 = vmatpush3.bf16.msra.mxu1 %v4461_v25 }
 0x3b5   :  { %1472 = vst [vmem:[#allocation22 + $0x30] sm:$0xff] %v1464_v42  ;;  %4113 = vmatprep.subr.bf16.mxu1 %v4462_v28 }
 0x3b6   :  { %1473 = vst [vmem:[#allocation22 + $0x38] sm:$0xff] %v1465_v10 }
 0x3b8   :  { %4114 = vmatpush3.bf16.msra.mxu1 %v4462_v28 }
 0x3b9   :  { %4115 = vmatprep.subr.bf16.mxu1 %v4463_v34 }
 0x3bc   :  { %4116 = vmatpush3.bf16.msra.mxu1 %v4463_v34 }
 0x472   :  { %v4095_v18 = vpop.f32.mrb[32].mxu1 }
 0x473   :  { %v1690_v60 = vadd.f32 %v4095_v18, %v3698_v35  ;;  %v1681_v7 = vpop.f32.mrb[33].mxu1 }
 0x474   :  { %v1682_v2 = vadd.f32 %v3698_v35, %v1681_v7  ;;  %v4096_v13 = vpop.f32.mrb[34].mxu1 }
 0x475   :  { %v1722_v43 = vmul.f32 0.01, %v1690_v60  ;;  %v1693_v8 = vadd.f32 %v4096_v13, %v3698_v35  ;;  %v1684_v41 = vpop.f32.mrb[35].mxu1  ;;  %vm1714_vm10 = vcmp.ge.f32.partialorder %v1690_v60, 0.0 }
 0x476   :  { %v1720_v30 = vmul.f32 0.01, %v1682_v2  ;;  %v1685_v45 = vadd.f32 %v3698_v35, %v1684_v41  ;;  %vm1712_vm11 = vcmp.ge.f32.partialorder %v1682_v2, 0.0 }
 0x477   :  { %vm1715_vm12 = vcmp.ge.f32.partialorder %v1693_v8, 0.0  ;;  %v1723_v1 = vmul.f32 0.01, %v1693_v8  ;;  %v1730_v46 = vsel %vm1714_vm10, %v1690_v60, %v1722_v43 }
 0x478   :  { %vm1713_vm13 = vcmp.ge.f32.partialorder %v1685_v45, 0.0  ;;  %v1721_v52 = vmul.f32 0.01, %v1685_v45  ;;  %v1728_v33 = vsel %vm1712_vm11, %v1682_v2, %v1720_v30 }
 0x479   :  { %v1731_v61 = vsel %vm1715_vm12, %v1693_v8, %v1723_v1 }
 0x47a   :  { %v1737_v47 = vpack.c.bf16 %v1731_v61, %v1730_v46  ;;  %v1729_v21 = vsel %vm1713_vm13, %v1685_v45, %v1721_v52  ;;  %v4099_v59 = vpop.f32.mrb[36].mxu1  ;;  %v4465_v52 = vld [vmem:[#allocation10 + $0x8] sm:$0xff]   ;;  %v4466_v46 = vld [vmem:[#allocation10 + $0x10] sm:$0xff]   ;;  %v4467_v61 = vld [vmem:[#allocation10 + $0x18] sm:$0xff]  }
 0x47b   :  { %v1736_v42 = vpack.c.bf16 %v1729_v21, %v1728_v33  ;;  %v1706_v53 = vadd.f32 %v4099_v59, %v3698_v35  ;;  %v1697_v29 = vpop.f32.mrb[37].mxu1  ;;  %v4468_v33 = vld [vmem:[#allocation10 + $0x20] sm:$0xff]   ;;  %v4471_v21 = vld [vmem:[#allocation10 + $0x38] sm:$0xff]   ;;  %v5979_v59 = vld [vmem:[%s6504_s10] sm:$0x7]  ;;  %s6309_s10 = sld [smem:[#allocation17 + $0x6]] }
 0x47c   :  { %v1698_v10 = vadd.f32 %v3698_v35, %v1697_v29  ;;  %v4100_v25 = vpop.f32.mrb[38].mxu1 }
 0x47d   :  { %vm1718_vm14 = vcmp.ge.f32.partialorder %v1706_v53, 0.0  ;;  %v1726_v28 = vmul.f32 0.01, %v1706_v53  ;;  %v1709_v34 = vadd.f32 %v4100_v25, %v3698_v35  ;;  %v1700_v18 = vpop.f32.mrb[39].mxu1  ;;  %1950 = vmatmul.mubr.bf16.vlgmr.msra.gmra.mrb[56].mxu0 %v1736_v42  ;;  %4117 = vmatprep.mubr.bf16.mxu1 %v1736_v42  ;;  %v5983_v42 = vrot.slane %v5979_v59, %v5492_v62 }
 0x47e   :  { %vm1716_vm15 = vcmp.ge.f32.partialorder %v1698_v10, 0.0  ;;  %v1724_v7 = vmul.f32 0.01, %v1698_v10  ;;  %v1701_v13 = vadd.f32 %v3698_v35, %v1700_v18  ;;  %4118 = vmatmul.mubr.bf16.vlgmr.msra.gmra.mrb[40].mxu1 %v1737_v47  ;;  %1959 = vmatprep.mubr.bf16.mxu0 %v5086_v3  ;;  %v4464_v35 = vld [vmem:[#allocation10] sm:$0xff]  }
 0x47f   :  { %vm1719_vm0 = vcmp.ge.f32.partialorder %v1709_v34, 0.0  ;;  %v1727_v60 = vmul.f32 0.01, %v1709_v34  ;;  %v1734_v2 = vsel %vm1718_vm14, %v1706_v53, %v1726_v28  ;;  %4125 = vmatprep.subr.bf16.mxu0 %v4464_v35  ;;  %v5987_v53 = vrot.slane %v5979_v59, %v5498_v0 }
 0x480   :  { %vm1717_vm1 = vcmp.ge.f32.partialorder %v1701_v13, 0.0  ;;  %v1725_v43 = vmul.f32 0.01, %v1701_v13  ;;  %v1732_v8 = vsel %vm1716_vm15, %v1698_v10, %v1724_v7  ;;  %4126 = vmatpush3.bf16.msra.mxu0 %v4464_v35 }
 0x481   :  { %v1735_v41 = vsel %vm1719_vm0, %v1709_v34, %v1727_v60  ;;  %4127 = vmatprep.subr.bf16.mxu0 %v4465_v52 }
 0x482   :  { %v1733_v30 = vsel %vm1717_vm1, %v1701_v13, %v1725_v43  ;;  %v1739_v45 = vpack.c.bf16 %v1735_v41, %v1734_v2 }
 0x483   :  { %v1738_v1 = vpack.c.bf16 %v1733_v30, %v1732_v8 }
 0x484   :  { %4128 = vmatpush3.bf16.msra.mxu0 %v4465_v52 }
 0x485   :  { %1960 = vmatmul.mubr.bf16.gmra.mrb[60].mxu0 %v1737_v47  ;;  %4121 = vmatprep.mubr.bf16.mxu1 %v1738_v1  ;;  %v4470_v47 = vld [vmem:[#allocation10 + $0x30] sm:$0xff]  }
 0x486   :  { %4122 = vmatmul.mubr.bf16.gmra.mrb[44].mxu1 %v1739_v45  ;;  %1969 = vmatprep.mubr.bf16.mxu0 %v5086_v3 }
 0x487   :  { %4157 = vmatprep.mubr.msk.bf16.mxu1 %vm1634_vm9, %v5666_v6  ;;  %4129 = vmatprep.subr.bf16.mxu0 %v4466_v46  ;;  %v4469_v6 = vld [vmem:[#allocation10 + $0x28] sm:$0xff]  }
 0x488   :  { %4130 = vmatpush3.bf16.msra.mxu0 %v4466_v46 }
 0x489   :  { %4131 = vmatprep.subr.bf16.mxu0 %v4467_v61 }
 0x48c   :  { %4132 = vmatpush3.bf16.msra.mxu0 %v4467_v61 }
 0x48d   :  { %1970 = vmatmul.mubr.bf16.gmra.mrb[64].mxu0 %v1738_v1  ;;  %4133 = vmatprep.subr.bf16.mxu0 %v4468_v33 }
 0x48e   :  { %1979 = vmatprep.mubr.bf16.mxu0 %v5086_v3 }
 0x490   :  { %4134 = vmatpush3.bf16.msra.mxu0 %v4468_v33 }
 0x491   :  { %4135 = vmatprep.subr.bf16.mxu0 %v4469_v6 }
 0x494   :  { %4136 = vmatpush3.bf16.msra.mxu0 %v4469_v6 }
 0x495   :  { %1980 = vmatmul.mubr.bf16.gmra.mrb[68].mxu0 %v1739_v45  ;;  %4137 = vmatprep.subr.bf16.mxu0 %v4470_v47 }
 0x498   :  { %4138 = vmatpush3.bf16.msra.mxu0 %v4470_v47 }
 0x499   :  { %4139 = vmatprep.subr.bf16.mxu0 %v4471_v21 }
 0x49c   :  { %4140 = vmatpush3.bf16.msra.mxu0 %v4471_v21 }
 0x550   :  { %v1951_v29 = vpop.f32.mrb[56].mxu0 }
 0x551   :  { %v1952_v10 = vadd.f32 %v1951_v29, %v5983_v42  ;;  %v1953_v25 = vpop.f32.mrb[57].mxu0  ;;  %v5990_v28 = vpop.f32.mrb[40].mxu1 }
 0x552   :  { %v1954_v34 = vadd.f32 %v1953_v25, %v5987_v53  ;;  %v1955_v18 = vpop.f32.mrb[58].mxu0  ;;  %v5993_v7 = vpop.f32.mrb[41].mxu1 }
 0x553   :  { %v2055_v13 = vadd.f32 %v1952_v10, %v5726_v39  ;;  %v1956_v60 = vadd.f32 %v1955_v18, %v5983_v42  ;;  %v1957_v2 = vpop.f32.mrb[59].mxu0  ;;  %v5997_v43 = vpop.f32.mrb[42].mxu1 }
 0x554   :  { %v2111_v8 = vadd.f32 %v1954_v34, %v5731_v14  ;;  %v1958_v41 = vadd.f32 %v1957_v2, %v5987_v53  ;;  %v6001_v30 = vpop.f32.mrb[43].mxu1 }
 0x555   :  { %v3731_v45 = vmul.f32 -1.442695, %v2055_v13  ;;  %v2056_v1 = vadd.f32 %v1956_v60, %v5736_v17 }
 0x556   :  { %v3739_v35 = vmul.f32 -1.442695, %v2111_v8  ;;  %v2112_v52 = vadd.f32 %v1958_v41, %v5742_v20 }
 0x557   :  { %4616 = vpow2.f32 %v3731_v45  ;;  %v3732_v46 = vmul.f32 -1.442695, %v2056_v1 }
 0x558   :  { %4618 = vpow2.f32 %v3739_v35  ;;  %v3740_v39 = vmul.f32 -1.442695, %v2112_v52  ;;  %v1961_v61 = vpop.f32.mrb[60].mxu0 }
 0x559   :  { %4620 = vpow2.f32 %v3732_v46  ;;  %v1962_v33 = vadd.f32 %v1961_v61, %v5983_v42  ;;  %v1963_v6 = vpop.f32.mrb[61].mxu0  ;;  %v6006_v14 = vpop.f32.mrb[44].mxu1 }
 0x55a   :  { %v1964_v47 = vadd.f32 %v1963_v6, %v5987_v53  ;;  %v1965_v21 = vpop.f32.mrb[62].mxu0  ;;  %v6009_v29 = vpop.f32.mrb[45].mxu1  ;;  %4622 = vpow2.f32 %v3740_v39 }
 0x55b   :  { %v2057_v17 = vadd.f32 %v1962_v33, %v5752_v49  ;;  %v1966_v20 = vadd.f32 %v1965_v21, %v5983_v42  ;;  %v1967_v10 = vpop.f32.mrb[63].mxu0  ;;  %v6013_v25 = vpop.f32.mrb[46].mxu1 }
 0x55c   :  { %v2113_v34 = vadd.f32 %v1964_v47, %v5759_v9  ;;  %v1968_v18 = vadd.f32 %v1967_v10, %v5987_v53  ;;  %v6017_v13 = vpop.f32.mrb[47].mxu1 }
 0x55d   :  { %v3733_v60 = vmul.f32 -1.442695, %v2057_v17  ;;  %v2058_v2 = vadd.f32 %v1966_v20, %v5766_v50 }
 0x55e   :  { %v3741_v8 = vmul.f32 -1.442695, %v2113_v34  ;;  %v2114_v49 = vadd.f32 %v1968_v18, %v5776_v16 }
 0x55f   :  { %4624 = vpow2.f32 %v3733_v60  ;;  %v3734_v41 = vmul.f32 -1.442695, %v2058_v2 }
 0x560   :  { %v1971_v45 = vpop.f32.mrb[64].mxu0  ;;  %v3742_v33 = vmul.f32 -1.442695, %v2114_v49 }
 0x561   :  { %v4617_v1 = vpop.eup %4616  ;;  %4626 = vpow2.f32 %v3734_v41  ;;  %v1972_v35 = vadd.f32 %v1971_v45, %v5983_v42  ;;  %v1973_v52 = vpop.f32.mrb[65].mxu0 }
 0x562   :  { %v4619_v46 = vpop.eup %4618  ;;  %v2087_v9 = vadd.f32 1.0, %v4617_v1  ;;  %4628 = vpow2.f32 %v3741_v8  ;;  %v1975_v39 = vpop.f32.mrb[66].mxu0  ;;  %v1974_v50 = vadd.f32 %v1973_v52, %v5987_v53 }
 0x563   :  { %v4621_v61 = vpop.eup %4620  ;;  %v2059_v6 = vadd.f32 %v1972_v35, %v5782_v24  ;;  %v1976_v47 = vadd.f32 %v1975_v39, %v5983_v42  ;;  %v1977_v21 = vpop.f32.mrb[67].mxu0  ;;  %v2143_v17 = vadd.f32 1.0, %v4619_v46 }
 0x564   :  { %4630 = vrcp.f32 %v2087_v9  ;;  %v2088_v16 = vadd.f32 1.0, %v4621_v61  ;;  %v1978_v34 = vadd.f32 %v1977_v21, %v5987_v53  ;;  %v4623_v18 = vpop.eup %4622  ;;  %v2115_v60 = vadd.f32 %v1974_v50, %v5797_v4 }
 0x565   :  { %v3735_v20 = vmul.f32 -1.442695, %v2059_v6  ;;  %v2060_v10 = vadd.f32 %v1976_v47, %v5787_v56  ;;  %v2144_v41 = vadd.f32 1.0, %v4623_v18  ;;  %v6032_v56 = vrot.slane %v5979_v59, %v5793_v37 }
 0x566   :  { %4632 = vrcp.f32 %v2088_v16  ;;  %v2116_v49 = vadd.f32 %v1978_v34, %v5803_v19  ;;  %v3743_v4 = vmul.f32 -1.442695, %v2115_v60 }
 0x567   :  { %4634 = vpow2.f32 %v3742_v33  ;;  %v3736_v2 = vmul.f32 -1.442695, %v2060_v10  ;;  %v2025_v16 = vadd.f32 %v5993_v7, %v6032_v56 }
 0x568   :  { %4636 = vpow2.f32 %v3735_v20  ;;  %v1981_v24 = vpop.f32.mrb[68].mxu0  ;;  %v3744_v50 = vmul.f32 -1.442695, %v2116_v49 }
 0x569   :  { %v4625_v8 = vpop.eup %4624  ;;  %4638 = vrcp.f32 %v2143_v17  ;;  %v1982_v45 = vadd.f32 %v1981_v24, %v5983_v42  ;;  %v1983_v1 = vpop.f32.mrb[69].mxu0 }
 0x56a   :  { %v2089_v35 = vadd.f32 1.0, %v4625_v8  ;;  %4640 = vpow2.f32 %v3736_v2  ;;  %v1985_v52 = vpop.f32.mrb[70].mxu0  ;;  %v1984_v39 = vadd.f32 %v1983_v1, %v5987_v53 }
 0x56b   :  { %v4627_v46 = vpop.eup %4626  ;;  %v2061_v9 = vadd.f32 %v1982_v45, %v5812_v48  ;;  %v1986_v61 = vadd.f32 %v1985_v52, %v5983_v42  ;;  %v1987_v33 = vpop.f32.mrb[71].mxu0 }
 0x56c   :  { %v4629_v19 = vpop.eup %4628  ;;  %4642 = vrcp.f32 %v2089_v35  ;;  %v2090_v6 = vadd.f32 1.0, %v4627_v46  ;;  %v1988_v48 = vadd.f32 %v1987_v33, %v5987_v53  ;;  %v2117_v42 = vadd.f32 %v1984_v39, %v5841_v36 }
 0x56d   :  { %4644 = vrcp.f32 %v2144_v41  ;;  %v3737_v47 = vmul.f32 -1.442695, %v2061_v9  ;;  %v2062_v59 = vadd.f32 %v1986_v61, %v5816_v22  ;;  %v2145_v34 = vadd.f32 1.0, %v4629_v19 }
 0x56e   :  { %v4631_v21 = vpop.eup %4630  ;;  %4646 = vrcp.f32 %v2090_v6  ;;  %v2028_v22 = vadd.f32 %v6001_v30, %v6032_v56  ;;  %v2118_v53 = vadd.f32 %v1988_v48, %v5855_v27  ;;  %v3745_v8 = vmul.f32 -1.442695, %v2117_v42 }
 0x56f   :  { %v2167_v17 = vmul.f32 %v4631_v21, %v5830_v44  ;;  %4648 = vpow2.f32 %v3743_v4  ;;  %v3738_v20 = vmul.f32 -1.442695, %v2062_v59  ;;  %v2036_v4 = vadd.f32 %v5997_v43, %v6032_v56 }
 0x570   :  { %v4633_v10 = vpop.eup %4632  ;;  %4650 = vpow2.f32 %v3737_v47  ;;  %v3746_v30 = vmul.f32 -1.442695, %v2118_v53 }
 0x571   :  { %v4635_v18 = vpop.eup %4634  ;;  %v2175_v60 = vadd.f32 %v2167_v17, %v2025_v16  ;;  %v2168_v2 = vmul.f32 %v4633_v10, %v5845_v55  ;;  %4652 = vpow2.f32 %v3744_v50  ;;  %v2033_v55 = vadd.f32 %v5990_v28, %v6032_v56 }
 0x572   :  { %v4637_v7 = vpop.eup %4636  ;;  %4654 = vpow2.f32 %v3738_v20  ;;  %v2146_v49 = vadd.f32 1.0, %v4635_v18 }
 0x573   :  { %v4639_v44 = vpop.eup %4638  ;;  %4656 = vtanh.f32 %v2175_v60  ;;  %v2176_v24 = vadd.f32 %v2168_v2, %v2028_v22  ;;  %v2091_v36 = vadd.f32 1.0, %v4637_v7  ;;  %v2041_v60 = vadd.f32 %v6009_v29, %v6032_v56 }
 0x574   :  { %v4641_v41 = vpop.eup %4640  ;;  %4658 = vrcp.f32 %v2145_v34  ;;  %v2191_v50 = vsub.f32 1.0, %v4639_v44  ;;  %v2207_v48 = vmul.f32 %v5879_v57, %v4639_v44  ;;  %v2044_v57 = vadd.f32 %v6017_v13, %v6032_v56 }
 0x575   :  { %4660 = vtanh.f32 %v2176_v24  ;;  %v2092_v45 = vadd.f32 1.0, %v4641_v41 }
 0x576   :  { %v4643_v1 = vpop.eup %4642  ;;  %4662 = vrcp.f32 %v2091_v36 }
 0x577   :  { %v4645_v35 = vpop.eup %4644  ;;  %v2169_v52 = vmul.f32 %v4643_v1, %v5862_v11  ;;  %4664 = vpow2.f32 %v3745_v8 }
 0x578   :  { %v4647_v27 = vpop.eup %4646  ;;  %4666 = vrcp.f32 %v2092_v45  ;;  %v2192_v16 = vsub.f32 1.0, %v4645_v35  ;;  %v2208_v10 = vmul.f32 %v5886_v58, %v4645_v35 }
 0x579   :  { %v4649_v46 = vpop.eup %4648  ;;  %v2177_v9 = vadd.f32 %v2169_v52, %v2033_v55  ;;  %v2170_v39 = vmul.f32 %v4647_v27, %v5867_v32  ;;  %4668 = vrcp.f32 %v2146_v49  ;;  %v2049_v27 = vadd.f32 %v6006_v14, %v6032_v56 }
 0x57a   :  { %v4651_v61 = vpop.eup %4650  ;;  %4670 = vpow2.f32 %v3746_v30  ;;  %v2147_v47 = vadd.f32 1.0, %v4649_v46 }
 0x57b   :  { %v4653_v33 = vpop.eup %4652  ;;  %4672 = vtanh.f32 %v2177_v9  ;;  %v2178_v19 = vadd.f32 %v2170_v39, %v2036_v4  ;;  %v2093_v6 = vadd.f32 1.0, %v4651_v61 }
 0x57c   :  { %v4655_v28 = vpop.eup %4654  ;;  %v2148_v17 = vadd.f32 1.0, %v4653_v33 }
 0x57d   :  { %v4657_v11 = vpop.eup %4656  ;;  %4674 = vtanh.f32 %v2178_v19  ;;  %v2094_v59 = vadd.f32 1.0, %v4655_v28 }
 0x57e   :  { %v4659_v21 = vpop.eup %4658  ;;  %4676 = vrcp.f32 %v2093_v6  ;;  %v2199_v43 = vmul.f32 %v4657_v11, %v2191_v50 }
 0x57f   :  { %v4661_v32 = vpop.eup %4660  ;;  %4678 = vrcp.f32 %v2094_v59  ;;  %v2193_v36 = vsub.f32 1.0, %v4659_v21  ;;  %v2209_v1 = vmul.f32 %v5915_v63, %v4659_v21  ;;  %v2052_v63 = vadd.f32 %v6013_v25, %v6032_v56 }
 0x580   :  { %v4663_v42 = vpop.eup %4662  ;;  %v2200_v20 = vmul.f32 %v4661_v32, %v2192_v16  ;;  %v2215_v34 = vadd.f32 %v2207_v48, %v2199_v43  ;;  %4680 = vrcp.f32 %v2147_v47 }
 0x581   :  { %v4665_v18 = vpop.eup %4664  ;;  %v2171_v22 = vmul.f32 %v4663_v42, %v5877_v12  ;;  %4682 = vrcp.f32 %v2148_v17 }
 0x582   :  { %v4667_v2 = vpop.eup %4666  ;;  %v2216_v7 = vadd.f32 %v2208_v10, %v2200_v20  ;;  %2223 = vst [vmem:[#allocation23] sm:$0xff] %v2215_v34  ;;  %v2149_v29 = vadd.f32 1.0, %v4665_v18  ;;  %v4782_v20 = vld [vmem:[#allocation19 + $0x30] sm:$0xff]  ;;  %v4783_v18 = vld [vmem:[#allocation19 + $0x38] sm:$0xff] }
 0x583   :  { %v4669_v53 = vpop.eup %4668  ;;  %v2172_v44 = vmul.f32 %v4667_v2, %v5884_v54  ;;  %v2179_v24 = vadd.f32 %v2171_v22, %v2041_v60 }
 0x584   :  { %v4671_v58 = vpop.eup %4670  ;;  %2224 = vst [vmem:[#allocation23 + $0x8] sm:$0xff] %v2216_v7  ;;  %v2231_v8 = vpack.c.bf16 %v2216_v7, %v2215_v34  ;;  %v2194_v12 = vsub.f32 1.0, %v4669_v53  ;;  %v2210_v55 = vmul.f32 %v5926_v51, %v4669_v53  ;;  %v4475_v7 = vld [vmem:[#allocation14 + $0x8] ss:$12 sps:$4 sm:$0xff]   ;;  %v4479_v53 = vld [vmem:[#allocation14 + $0x20] ss:$12 sps:$4 sm:$0xff]  }
 0x585   :  { %v4673_v41 = vpop.eup %4672  ;;  %v2180_v49 = vadd.f32 %v2172_v44, %v2044_v57  ;;  %4684 = vtanh.f32 %v2179_v24  ;;  %v2150_v35 = vadd.f32 1.0, %v4671_v58  ;;  %4165 = vmatprep.subr.bf16.mxu0 %v4475_v7  ;;  %v4483_v57 = vld [vmem:[#allocation14 + $0x38] ss:$12 sps:$4 sm:$0xff]   ;;  %v4487_v44 = vld [vmem:[#allocation14 + $0x50] ss:$12 sps:$4 sm:$0xff]  }
 0x586   :  { %4141 = vmatprep.mubr.bf16.mxu0 %v2231_v8  ;;  %v2201_v45 = vmul.f32 %v4673_v41, %v2193_v36  ;;  %v4491_v24 = vld [vmem:[#allocation14 + $0x68] ss:$12 sps:$4 sm:$0xff]   ;;  %v4495_v58 = vld [vmem:[#allocation14 + $0x80] ss:$12 sps:$4 sm:$0xff]   ;;  %v4499_v36 = vld [vmem:[#allocation14 + $0x98] ss:$12 sps:$4 sm:$0xff]  }
 0x587   :  { %v4675_v30 = vpop.eup %4674  ;;  %4686 = vtanh.f32 %v2180_v49  ;;  %v6071_v8 = vld [vmem:[#allocation20] sm:$0xff]  ;;  %v6073_v41 = vld [vmem:[#allocation20 + $0x8] sm:$0xff]  ;;  %v4503_v49 = vld [vmem:[#allocation14 + $0xb0] ss:$12 sps:$4 sm:$0xff]  }
 0x588   :  { %v4677_v13 = vpop.eup %4676  ;;  %v2202_v54 = vmul.f32 %v4675_v30, %v2194_v12  ;;  %v2217_v52 = vadd.f32 %v2209_v1, %v2201_v45  ;;  %4688 = vrcp.f32 %v2149_v29  ;;  %v6077_v29 = vpack.c.bf16 %v6073_v41, %v6071_v8  ;;  %v6080_v12 = vld [vmem:[#allocation20 + $0x10] sm:$0xff]  ;;  %v6082_v45 = vld [vmem:[#allocation20 + $0x18] sm:$0xff] }
 0x589   :  { %v2173_v46 = vmul.f32 %v4677_v13, %v5913_v15  ;;  %v4679_v4 = vpop.eup %4678  ;;  %4690 = vrcp.f32 %v2150_v35  ;;  %v4507_v1 = vld [vmem:[#allocation13 + $0x8] ss:$12 sps:$4 sm:$0xff]   ;;  %v6086_v30 = vpack.c.bf16 %v6082_v45, %v6080_v12  ;;  %v4511_v35 = vld [vmem:[#allocation13 + $0x20] ss:$12 sps:$4 sm:$0xff]   ;;  %v4515_v13 = vld [vmem:[#allocation13 + $0x38] ss:$12 sps:$4 sm:$0xff]  }
 0x58a   :  { %v2218_v9 = vadd.f32 %v2210_v55, %v2202_v54  ;;  %2225 = vst [vmem:[#allocation23 + $0x10] sm:$0xff] %v2217_v52  ;;  %v4681_v39 = vpop.eup %4680  ;;  %v2174_v61 = vmul.f32 %v4679_v4, %v5922_v40  ;;  %v6089_v54 = vld [vmem:[#allocation20 + $0x20] sm:$0xff]  ;;  %v6091_v55 = vld [vmem:[#allocation20 + $0x28] sm:$0xff] }
 0x58b   :  { %v2181_v33 = vadd.f32 %v2173_v46, %v2049_v27  ;;  %v4683_v19 = vpop.eup %4682  ;;  %v2195_v14 = vsub.f32 1.0, %v4681_v39  ;;  %v2211_v11 = vmul.f32 %v5948_v26, %v4681_v39  ;;  %v4519_v27 = vld [vmem:[#allocation13 + $0x50] ss:$12 sps:$4 sm:$0xff]   ;;  %v4523_v46 = vld [vmem:[#allocation13 + $0x68] ss:$12 sps:$4 sm:$0xff]  }
 0x58c   :  { %2226 = vst [vmem:[#allocation23 + $0x18] sm:$0xff] %v2218_v9  ;;  %v2232_v51 = vpack.c.bf16 %v2218_v9, %v2217_v52  ;;  %v2182_v6 = vadd.f32 %v2174_v61, %v2052_v63  ;;  %v2196_v28 = vsub.f32 1.0, %v4683_v19  ;;  %v2212_v25 = vmul.f32 %v5954_v38, %v4683_v19 }
 0x58d   :  { %4692 = vtanh.f32 %v2181_v33  ;;  %v6095_v52 = vpack.c.bf16 %v6091_v55, %v6089_v54 }
 0x58e   :  { %4142 = vmatmul.mubr.bf16.vlgmr.msra.gmra.mrb[72].mxu0 %v2232_v51  ;;  %4694 = vtanh.f32 %v2182_v6 }
 0x58f   :  { %v4685_v15 = vpop.eup %4684  ;;  %4166 = vmatpush3.bf16.msra.mxu0 %v4475_v7  ;;  %v4526_v7 = vld [vmem:[#allocation13 + $0x7c] ss:$12 sps:$4 sm:$0xff]  }
 0x590   :  { %v2203_v50 = vmul.f32 %v4685_v15, %v2195_v14  ;;  %4167 = vmatprep.subr.bf16.mxu0 %v4479_v53 }
 0x591   :  { %v4687_v47 = vpop.eup %4686 }
 0x592   :  { %v2204_v59 = vmul.f32 %v4687_v47, %v2196_v28  ;;  %v2219_v40 = vadd.f32 %v2211_v11, %v2203_v50  ;;  %v4689_v56 = vpop.eup %4688  ;;  %v4474_v50 = vld [vmem:[#allocation14 + $0x4] ss:$12 sps:$4 sm:$0xff]   ;;  %v4472_v11 = vld [vmem:[#allocation14] ss:$12 sps:$4 sm:$0xff]   ;;  %v4478_v47 = vld [vmem:[#allocation14 + $0x1c] ss:$12 sps:$4 sm:$0xff]  }
 0x593   :  { %v4691_v16 = vpop.eup %4690  ;;  %v2197_v48 = vsub.f32 1.0, %v4689_v56  ;;  %v2213_v10 = vmul.f32 %v4782_v20, %v4689_v56  ;;  %4168 = vmatpush3.bf16.msra.mxu0 %v4479_v53  ;;  %v4486_v56 = vld [vmem:[#allocation14 + $0x4c] ss:$12 sps:$4 sm:$0xff]  }
 0x594   :  { %v2220_v21 = vadd.f32 %v2212_v25, %v2204_v59  ;;  %2227 = vst [vmem:[#allocation23 + $0x20] sm:$0xff] %v2219_v40  ;;  %v2198_v17 = vsub.f32 1.0, %v4691_v16  ;;  %v2214_v60 = vmul.f32 %v4783_v18, %v4691_v16  ;;  %4169 = vmatprep.subr.bf16.mxu0 %v4483_v57  ;;  %v4476_v59 = vld [vmem:[#allocation14 + $0x18] ss:$12 sps:$4 sm:$0xff]   ;;  %v4482_v25 = vld [vmem:[#allocation14 + $0x34] ss:$12 sps:$4 sm:$0xff]  }
 0x595   :  { %v4488_v16 = vld [vmem:[#allocation14 + $0x60] ss:$12 sps:$4 sm:$0xff]   ;;  %v4512_v18 = vld [vmem:[#allocation13 + $0x30] ss:$12 sps:$4 sm:$0xff]   ;;  %v4524_v53 = vld [vmem:[#allocation13 + $0x78] ss:$12 sps:$4 sm:$0xff]  }
 0x596   :  { %2228 = vst [vmem:[#allocation23 + $0x28] sm:$0xff] %v2220_v21  ;;  %v2233_v43 = vpack.c.bf16 %v2220_v21, %v2219_v40  ;;  %v4480_v40 = vld [vmem:[#allocation14 + $0x30] ss:$12 sps:$4 sm:$0xff]   ;;  %v4484_v21 = vld [vmem:[#allocation14 + $0x48] ss:$12 sps:$4 sm:$0xff]  }
 0x597   :  { %v4693_v32 = vpop.eup %4692  ;;  %4170 = vmatpush3.bf16.msra.mxu0 %v4483_v57  ;;  %v4504_v20 = vld [vmem:[#allocation13] ss:$12 sps:$4 sm:$0xff]  }
 0x598   :  { %4145 = vmatprep.mubr.bf16.mxu0 %v2233_v43  ;;  %v2205_v42 = vmul.f32 %v4693_v32, %v2197_v48  ;;  %v4695_v34 = vpop.eup %4694  ;;  %4171 = vmatprep.subr.bf16.mxu0 %v4487_v44  ;;  %v4492_v43 = vld [vmem:[#allocation14 + $0x78] ss:$12 sps:$4 sm:$0xff]   ;;  %v4498_v48 = vld [vmem:[#allocation14 + $0x94] ss:$12 sps:$4 sm:$0xff]   ;;  %v4496_v32 = vld [vmem:[#allocation14 + $0x90] ss:$12 sps:$4 sm:$0xff]  }
 0x599   :  { %v2206_v26 = vmul.f32 %v4695_v34, %v2198_v17  ;;  %v4502_v17 = vld [vmem:[#allocation14 + $0xac] ss:$12 sps:$4 sm:$0xff]  }
 0x59a   :  { %v2221_v22 = vadd.f32 %v2213_v10, %v2205_v42  ;;  %v4506_v42 = vld [vmem:[#allocation13 + $0x4] ss:$12 sps:$4 sm:$0xff]   ;;  %v4510_v10 = vld [vmem:[#allocation13 + $0x1c] ss:$12 sps:$4 sm:$0xff]   ;;  %v4527_v57 = vld [vmem:[#allocation13 + $0x80] ss:$12 sps:$4 sm:$0xff]  }
 0x59b   :  { %v2222_v38 = vadd.f32 %v2214_v60, %v2206_v26  ;;  %4172 = vmatpush3.bf16.msra.mxu0 %v4487_v44  ;;  %v4508_v34 = vld [vmem:[#allocation13 + $0x18] ss:$12 sps:$4 sm:$0xff]   ;;  %v4514_v26 = vld [vmem:[#allocation13 + $0x34] ss:$12 sps:$4 sm:$0xff]  }
 0x59c   :  { %2229 = vst [vmem:[#allocation23 + $0x30] sm:$0xff] %v2221_v22  ;;  %4173 = vmatprep.subr.bf16.mxu0 %v4491_v24  ;;  %v4518_v60 = vld [vmem:[#allocation13 + $0x4c] ss:$12 sps:$4 sm:$0xff]   ;;  %v6111_v44 = vld [vmem:[#allocation20 + $0x30] sm:$0xff] }
 0x59d   :  { %2230 = vst [vmem:[#allocation23 + $0x38] sm:$0xff] %v2222_v38  ;;  %v2234_v2 = vpack.c.bf16 %v2222_v38, %v2221_v22  ;;  %v4516_v22 = vld [vmem:[#allocation13 + $0x48] ss:$12 sps:$4 sm:$0xff]   ;;  %v4522_v38 = vld [vmem:[#allocation13 + $0x64] ss:$12 sps:$4 sm:$0xff]  }
 0x59f   :  { %4146 = vmatmul.mubr.bf16.gmra.mrb[76].mxu0 %v2234_v2  ;;  %v4520_v2 = vld [vmem:[#allocation13 + $0x60] ss:$12 sps:$4 sm:$0xff]  }
 0x5a0   :  { %4174 = vmatpush3.bf16.msra.mxu0 %v4491_v24  ;;  %4181 = vmatprep.mubr.bf16.mxu0 %v6077_v29  ;;  %v6113_v24 = vld [vmem:[#allocation20 + $0x38] sm:$0xff] }
 0x5a1   :  { %4175 = vmatprep.subr.bf16.mxu0 %v4495_v58 }
 0x5a4   :  { %4176 = vmatpush3.bf16.msra.mxu0 %v4495_v58  ;;  %v2467_v58 = vpack.c.bf16 %v6113_v24, %v6111_v44 }
 0x5a5   :  { %4177 = vmatprep.subr.bf16.mxu0 %v4499_v36 }
 0x5a8   :  { %4178 = vmatpush3.bf16.msra.mxu0 %v4499_v36  ;;  %v4530_v36 = vld [vmem:[#allocation13 + $0x94] ss:$12 sps:$4 sm:$0xff]  }
 0x5a9   :  { %4179 = vmatprep.subr.bf16.mxu0 %v4503_v49 }
 0x5ac   :  { %4180 = vmatpush3.bf16.msra.mxu0 %v4503_v49  ;;  %v4531_v49 = vld [vmem:[#allocation13 + $0x98] ss:$12 sps:$4 sm:$0xff]  }
 0x5ad   :  { %4189 = vmatprep.subr.bf16.mxu0 %v4507_v1 }
 0x5af   :  { %4182 = vmatmul.mubr.bf16.vlgmr.msra.gmra.mrb[80].mxu0 %v6086_v30 }
 0x5b0   :  { %4190 = vmatpush3.bf16.msra.mxu0 %v4507_v1  ;;  %4185 = vmatprep.mubr.bf16.mxu0 %v6095_v52  ;;  %v4534_v1 = vld [vmem:[#allocation13 + $0xac] ss:$12 sps:$4 sm:$0xff]  }
 0x5b1   :  { %4191 = vmatprep.subr.bf16.mxu0 %v4511_v35 }
 0x5b4   :  { %4192 = vmatpush3.bf16.msra.mxu0 %v4511_v35  ;;  %v4535_v35 = vld [vmem:[#allocation13 + $0xb0] ss:$12 sps:$4 sm:$0xff]  }
 0x5b5   :  { %4193 = vmatprep.subr.bf16.mxu0 %v4515_v13 }
 0x5b7   :  { %4186 = vmatmul.mubr.bf16.gmra.mrb[84].mxu0 %v2467_v58 }
 0x5b8   :  { %4194 = vmatpush3.bf16.msra.mxu0 %v4515_v13 }
 0x5b9   :  { %4195 = vmatprep.subr.bf16.mxu0 %v4519_v27 }
 0x5bc   :  { %4196 = vmatpush3.bf16.msra.mxu0 %v4519_v27 }
 0x5bd   :  { %4197 = vmatprep.subr.bf16.mxu0 %v4523_v46 }
 0x5c0   :  { %4198 = vmatpush3.bf16.msra.mxu0 %v4523_v46 }
 0x5c1   :  { %4199 = vmatprep.subr.bf16.mxu0 %v4527_v57 }
 0x5c4   :  { %4200 = vmatpush3.bf16.msra.mxu0 %v4527_v57 }
 0x5c5   :  { %4201 = vmatprep.subr.bf16.mxu0 %v4531_v49 }
 0x5c8   :  { %4202 = vmatpush3.bf16.msra.mxu0 %v4531_v49  ;;  %v3411_v49 = vld [vmem:[%s6452_s18 + $0x18] sm:$0xff] }
 0x5c9   :  { %4203 = vmatprep.subr.bf16.mxu0 %v4535_v35 }
 0x5cc   :  { %4204 = vmatpush3.bf16.msra.mxu0 %v4535_v35  ;;  %v3413_v35 = vld [vmem:[%s6452_s18 + $0x28] sm:$0xff] }
 0x661   :  { %v4143_v4 = vpop.f32.mrb[72].mxu0 }
 0x662   :  { %v2333_v9 = vpop.f32.mrb[73].mxu0 }
 0x663   :  { %v4144_v39 = vpop.f32.mrb[74].mxu0 }
 0x664   :  { %v2365_v63 = vpack.c.bf16 %v4144_v39, %v4143_v4  ;;  %v2336_v61 = vpop.f32.mrb[75].mxu0  ;;  %v3755_v4 = vld [vmem:[#allocation11] ss:$0 sm:$0xff] }
 0x665   :  { %v2364_v33 = vpack.c.bf16 %v2336_v61, %v2333_v9 }
 0x667   :  { %4149 = vmatprep.subr.bf16.mxu1 %v2364_v33 }
 0x668   :  { %4150 = vmatpush3.bf16.msra.mxu1 %v2364_v33 }
 0x669   :  { %4151 = vmatprep.subr.bf16.mxu1 %v2365_v63 }
 0x66c   :  { %4152 = vmatpush3.bf16.msra.mxu1 %v2365_v63 }
 0x672   :  { %v4147_v51 = vpop.f32.mrb[76].mxu0 }
 0x673   :  { %v2349_v19 = vpop.f32.mrb[77].mxu0 }
 0x674   :  { %v4148_v6 = vpop.f32.mrb[78].mxu0 }
 0x675   :  { %v2367_v14 = vpack.c.bf16 %v4148_v6, %v4147_v51  ;;  %v2352_v15 = vpop.f32.mrb[79].mxu0 }
 0x676   :  { %v2366_v28 = vpack.c.bf16 %v2352_v15, %v2349_v19 }
 0x678   :  { %4153 = vmatprep.subr.bf16.mxu1 %v2366_v28 }
 0x679   :  { %4154 = vmatpush3.bf16.msra.mxu1 %v2366_v28 }
 0x67a   :  { %4155 = vmatprep.subr.bf16.mxu1 %v2367_v14 }
 0x67d   :  { %4156 = vmatpush3.bf16.msra.mxu1 %v2367_v14 }
 0x67e   :  { %2645 = vmatprep.subr.bf16.mxu1 %v4474_v50 }
 0x680   :  { %4158 = vmatmul.mubr.msk.bf16.vlgmr.msra.gmra.mrb[48].mxu1 %vm1634_vm9, %v5898_v23  ;;  %v4490_v23 = vld [vmem:[#allocation14 + $0x64] ss:$12 sps:$4 sm:$0xff]  }
 0x681   :  { %4161 = vmatprep.mubr.msk.bf16.mxu1 %vm1634_vm9, %v5906_v31  ;;  %2646 = vmatpush1.bf16.msra.mxu1 %v4472_v11  ;;  %v4494_v31 = vld [vmem:[#allocation14 + $0x7c] ss:$12 sps:$4 sm:$0xff]  }
 0x682   :  { %2647 = vmatprep.subr.bf16.mxu1 %v4478_v47  ;;  %v6118_v13 = vpop.f32.mrb[80].mxu0 }
 0x685   :  { %2648 = vmatpush1.bf16.msra.mxu1 %v4476_v59 }
 0x686   :  { %2649 = vmatprep.subr.bf16.mxu1 %v4482_v25 }
 0x688   :  { %4162 = vmatmul.mubr.msk.bf16.gmra.mrb[52].mxu1 %vm1634_vm9, %v5938_v5  ;;  %v4500_v5 = vld [vmem:[#allocation14 + $0xa8] ss:$12 sps:$4 sm:$0xff]  }
 0x689   :  { %2650 = vmatpush1.bf16.msra.mxu1 %v4480_v40  ;;  %2677 = vmatprep.mubr.bf16.mxu1 %v5086_v3 }
 0x68a   :  { %2651 = vmatprep.subr.bf16.mxu1 %v4486_v56 }
 0x68d   :  { %2652 = vmatpush1.bf16.msra.mxu1 %v4484_v21 }
 0x68e   :  { %2653 = vmatprep.subr.bf16.mxu1 %v4490_v23 }
 0x691   :  { %2654 = vmatpush1.bf16.msra.mxu1 %v4488_v16 }
 0x692   :  { %2655 = vmatprep.subr.bf16.mxu1 %v4494_v31 }
 0x695   :  { %2656 = vmatpush1.bf16.msra.mxu1 %v4492_v43 }
 0x696   :  { %2657 = vmatprep.subr.bf16.mxu1 %v4498_v48 }
 0x699   :  { %2658 = vmatpush1.bf16.msra.mxu1 %v4496_v32 }
 0x69a   :  { %2659 = vmatprep.subr.bf16.mxu1 %v4502_v17 }
 0x69d   :  { %2660 = vmatpush1.bf16.msra.mxu1 %v4500_v5 }
 0x69e   :  { %2964 = vmatprep.subr.bf16.mxu1 %v4506_v42 }
 0x6a0   :  { %2678 = vmatmul.mubr.bf16.vlgmr.msra.gmra.mrb[56].mxu1 %v6077_v29  ;;  %v4528_v29 = vld [vmem:[#allocation13 + $0x90] ss:$12 sps:$4 sm:$0xff]  }
 0x6a1   :  { %2965 = vmatpush1.bf16.msra.mxu1 %v4504_v20  ;;  %2687 = vmatprep.mubr.bf16.mxu1 %v5086_v3 }
 0x6a2   :  { %2966 = vmatprep.subr.bf16.mxu1 %v4510_v10 }
 0x6a5   :  { %2967 = vmatpush1.bf16.msra.mxu1 %v4508_v34 }
 0x6a6   :  { %2968 = vmatprep.subr.bf16.mxu1 %v4514_v26 }
 0x6a8   :  { %2688 = vmatmul.mubr.bf16.gmra.mrb[60].mxu1 %v6086_v30  ;;  %v4532_v30 = vld [vmem:[#allocation13 + $0xa8] ss:$12 sps:$4 sm:$0xff]  }
 0x6a9   :  { %2969 = vmatpush1.bf16.msra.mxu1 %v4512_v18  ;;  %2697 = vmatprep.mubr.bf16.mxu1 %v5086_v3 }
 0x6aa   :  { %2970 = vmatprep.subr.bf16.mxu1 %v4518_v60 }
 0x6ad   :  { %2971 = vmatpush1.bf16.msra.mxu1 %v4516_v22 }
 0x6ae   :  { %2972 = vmatprep.subr.bf16.mxu1 %v4522_v38 }
 0x6b0   :  { %2698 = vmatmul.mubr.bf16.gmra.mrb[64].mxu1 %v6095_v52  ;;  %v6120_v52 = vpop.f32.mrb[81].mxu0 }
 0x6b1   :  { %2973 = vmatpush1.bf16.msra.mxu1 %v4520_v2  ;;  %2707 = vmatprep.mubr.bf16.mxu1 %v5086_v3  ;;  %v6122_v27 = vpop.f32.mrb[82].mxu0 }
 0x6b2   :  { %2974 = vmatprep.subr.bf16.mxu1 %v4526_v7  ;;  %v6124_v46 = vpop.f32.mrb[83].mxu0 }
 0x6b3   :  { %v6129_v2 = vpop.f32.mrb[84].mxu0 }
 0x6b4   :  { %v6131_v7 = vpop.f32.mrb[85].mxu0 }
 0x6b5   :  { %2975 = vmatpush1.bf16.msra.mxu1 %v4524_v53  ;;  %v6133_v53 = vpop.f32.mrb[86].mxu0 }
 0x6b6   :  { %2976 = vmatprep.subr.bf16.mxu1 %v4530_v36  ;;  %v6135_v57 = vpop.f32.mrb[87].mxu0  ;;  %v3409_v36 = vld [vmem:[%s6452_s18 + $0x8] sm:$0xff] }
 0x6b8   :  { %2708 = vmatmul.mubr.bf16.gmra.mrb[68].mxu1 %v2467_v58  ;;  %v3408_v58 = vld [vmem:[%s6452_s18] sm:$0xff] }
 0x6b9   :  { %2977 = vmatpush1.bf16.msra.mxu1 %v4528_v29  ;;  %2996 = vmatprep.mubr.bf16.mxu1 %v5086_v3  ;;  %v4248_v29 = vpack.c.bf16 %v3409_v36, %v3408_v58 }
 0x6ba   :  { %2978 = vmatprep.subr.bf16.mxu1 %v4534_v1 }
 0x6bd   :  { %2979 = vmatpush1.bf16.msra.mxu1 %v4532_v30  ;;  %v3412_v30 = vld [vmem:[%s6452_s18 + $0x20] sm:$0xff] }
 0x6be   :  { %4249 = vmatprep.subr.bf16.mxu1 %v4248_v29 }
 0x753   :  { %v4159_v9 = vpop.f32.mrb[48].mxu1 }
 0x754   :  { %v2418_v39 = vadd.f32 %v4159_v9, %v3755_v4  ;;  %v2409_v63 = vpop.f32.mrb[49].mxu1  ;;  %v3414_v9 = vld [vmem:[%s6452_s18 + $0x30] sm:$0xff] }
 0x755   :  { %v2410_v61 = vadd.f32 %v3755_v4, %v2409_v63  ;;  %v4160_v33 = vpop.f32.mrb[50].mxu1 }
 0x756   :  { %v2450_v51 = vmul.f32 0.01, %v2418_v39  ;;  %v2421_v19 = vadd.f32 %v4160_v33, %v3755_v4  ;;  %v2412_v6 = vpop.f32.mrb[51].mxu1  ;;  %vm2442_vm2 = vcmp.ge.f32.partialorder %v2418_v39, 0.0  ;;  %v3417_v33 = vld [vmem:[%s6452_s18 + $0x48] sm:$0xff] }
 0x757   :  { %v2448_v14 = vmul.f32 0.01, %v2410_v61  ;;  %v2413_v15 = vadd.f32 %v3755_v4, %v2412_v6  ;;  %vm2440_vm3 = vcmp.ge.f32.partialorder %v2410_v61, 0.0  ;;  %v3419_v6 = vld [vmem:[%s6452_s18 + $0x58] sm:$0xff] }
 0x758   :  { %vm2443_vm4 = vcmp.ge.f32.partialorder %v2421_v19, 0.0  ;;  %v2451_v28 = vmul.f32 0.01, %v2421_v19  ;;  %v2458_v11 = vsel %vm2442_vm2, %v2418_v39, %v2450_v51  ;;  %v3415_v39 = vld [vmem:[%s6452_s18 + $0x38] sm:$0xff]  ;;  %v3418_v51 = vld [vmem:[%s6452_s18 + $0x50] sm:$0xff] }
 0x759   :  { %vm2441_vm5 = vcmp.ge.f32.partialorder %v2413_v15, 0.0  ;;  %v2449_v50 = vmul.f32 0.01, %v2413_v15  ;;  %v2456_v59 = vsel %vm2440_vm3, %v2410_v61, %v2448_v14  ;;  %v4260_v63 = vpack.c.bf16 %v3415_v39, %v3414_v9  ;;  %v3416_v61 = vld [vmem:[%s6452_s18 + $0x40] sm:$0xff] }
 0x75a   :  { %v2459_v47 = vsel %vm2443_vm4, %v2421_v19, %v2451_v28  ;;  %v4264_v19 = vpack.c.bf16 %v3417_v33, %v3416_v61  ;;  %v4268_v14 = vpack.c.bf16 %v3419_v6, %v3418_v51  ;;  %v3421_v28 = vld [vmem:[%s6452_s18 + $0x68] sm:$0xff] }
 0x75b   :  { %v2784_v25 = vpack.c.bf16 %v2459_v47, %v2458_v11  ;;  %v2457_v40 = vsel %vm2441_vm5, %v2413_v15, %v2449_v50  ;;  %v4163_v56 = vpop.f32.mrb[52].mxu1  ;;  %v3420_v15 = vld [vmem:[%s6452_s18 + $0x60] sm:$0xff]  ;;  %v3422_v11 = vld [vmem:[%s6452_s18 + $0x70] sm:$0xff]  ;;  %v3423_v47 = vld [vmem:[%s6452_s18 + $0x78] sm:$0xff] }
 0x75c   :  { %v2783_v21 = vpack.c.bf16 %v2457_v40, %v2456_v59  ;;  %v2434_v23 = vadd.f32 %v4163_v56, %v3755_v4  ;;  %v2425_v16 = vpop.f32.mrb[53].mxu1  ;;  %v4272_v50 = vpack.c.bf16 %v3421_v28, %v3420_v15  ;;  %v4276_v59 = vpack.c.bf16 %v3423_v47, %v3422_v11  ;;  %v6193_v40 = vld [vmem:[%s6450_s16] sm:$0x7]  ;;  %s6273_s16 = sld [smem:[#allocation16]] }
 0x75d   :  { %v2426_v31 = vadd.f32 %v3755_v4, %v2425_v16  ;;  %v4164_v43 = vpop.f32.mrb[54].mxu1  ;;  %v2828_v16 = vrot.slane %v6193_v40, %v5498_v0 }
 0x75e   :  { %vm2446_vm6 = vcmp.ge.f32.partialorder %v2434_v23, 0.0  ;;  %v2454_v48 = vmul.f32 0.01, %v2434_v23  ;;  %v2437_v32 = vadd.f32 %v4164_v43, %v3755_v4  ;;  %v2428_v17 = vpop.f32.mrb[55].mxu1  ;;  %2997 = vmatmul.mubr.bf16.vlgmr.msra.gmra.mrb[56].mxu1 %v2783_v21  ;;  %4205 = vmatprep.mubr.bf16.mxu0 %v2783_v21  ;;  %v2824_v21 = vrot.slane %v6193_v40, %v5492_v62 }
 0x75f   :  { %vm2444_vm7 = vcmp.ge.f32.partialorder %v2426_v31, 0.0  ;;  %v2452_v5 = vmul.f32 0.01, %v2426_v31  ;;  %v2429_v42 = vadd.f32 %v3755_v4, %v2428_v17  ;;  %4206 = vmatmul.mubr.bf16.vlgmr.msra.gmra.mrb[88].mxu0 %v2784_v25  ;;  %3006 = vmatprep.mubr.bf16.mxu1 %v5086_v3  ;;  %v4256_v4 = vpack.c.bf16 %v3413_v35, %v3412_v30 }
 0x760   :  { %vm2447_vm8 = vcmp.ge.f32.partialorder %v2437_v32, 0.0  ;;  %v2455_v20 = vmul.f32 0.01, %v2437_v32  ;;  %v2462_v10 = vsel %vm2446_vm6, %v2434_v23, %v2454_v48  ;;  %4251 = vmatpush3.bf16.msra.mxu1 %v4248_v29 }
 0x761   :  { %vm2445_vm9 = vcmp.ge.f32.partialorder %v2429_v42, 0.0  ;;  %v2453_v34 = vmul.f32 0.01, %v2429_v42  ;;  %v2460_v26 = vsel %vm2444_vm7, %v2426_v31, %v2452_v5 }
 0x762   :  { %v2463_v18 = vsel %vm2447_vm8, %v2437_v32, %v2455_v20  ;;  %s3280_s6 = scalar_lea.vmem [#allocation25], %s6273_s16  ;;  %s3304_s16 = scalar_lea.vmem [#allocation25], %s6286_s8 }
 0x763   :  { %v2461_v60 = vsel %vm2445_vm9, %v2429_v42, %v2453_v34  ;;  %v2786_v22 = vpack.c.bf16 %v2463_v18, %v2462_v10  ;;  %s3352_s8 = scalar_lea.vmem [#allocation25], %s6321_s11 }
 0x764   :  { %v2785_v38 = vpack.c.bf16 %v2461_v60, %v2460_v26 }
 0x766   :  { %3007 = vmatmul.mubr.bf16.gmra.mrb[60].mxu1 %v2784_v25  ;;  %4209 = vmatprep.mubr.bf16.mxu0 %v2785_v38  ;;  %v6188_v25 = vld [vmem:[%s6451_s17] sm:$0x7]  ;;  %s6275_s17 = sld [smem:[#allocation17]] }
 0x767   :  { %4210 = vmatmul.mubr.bf16.gmra.mrb[92].mxu0 %v2786_v22  ;;  %3016 = vmatprep.mubr.bf16.mxu1 %v5086_v3  ;;  %v2505_v56 = vrot.slane %v6188_v25, %v5492_v62  ;;  %v2509_v23 = vrot.slane %v6188_v25, %v5498_v0 }
 0x769   :  { %v6203_v31 = vadd.f32 %v2824_v21, %v2505_v56  ;;  %v6205_v43 = vadd.f32 %v2828_v16, %v2509_v23 }
 0x76c   :  { %s3282_s0 = scalar_lea.vmem [#allocation25], %s6275_s17  ;;  %s3330_s17 = scalar_lea.vmem [#allocation25], %s6309_s10 }
 0x76d   :  { %s3368_s10 = scalar_lea.vmem [#allocation25], %s6329_s23  ;;  %s3392_s23 = scalar_lea.vmem [#allocation25], %s6517_s21 }
 0x76e   :  { %3017 = vmatmul.mubr.bf16.gmra.mrb[64].mxu1 %v2785_v38 }
 0x76f   :  { %3026 = vmatprep.mubr.bf16.mxu1 %v5086_v3  ;;  %v3410_v3 = vld [vmem:[%s6452_s18 + $0x10] sm:$0xff]  ;;  %s6277_s18 = sld [smem:[#allocation16 + $0x1]] }
 0x770   :  { %v4252_v1 = vpack.c.bf16 %v3411_v49, %v3410_v3 }
 0x772   :  { %4253 = vmatprep.subr.bf16.mxu1 %v4252_v1 }
 0x773   :  { %4255 = vmatpush3.bf16.msra.mxu1 %v4252_v1 }
 0x774   :  { %4257 = vmatprep.subr.bf16.mxu1 %v4256_v4 }
 0x775   :  { %s3288_s12 = scalar_lea.vmem [#allocation25], %s6277_s18  ;;  %s3336_s18 = scalar_lea.vmem [#allocation25], %s6312_s20 }
 0x776   :  { %3027 = vmatmul.mubr.bf16.gmra.mrb[68].mxu1 %v2786_v22  ;;  %s6516_s20 = sld [smem:[#allocation39_spill]] }
 0x777   :  { %4259 = vmatpush3.bf16.msra.mxu1 %v4256_v4 }
 0x778   :  { %4261 = vmatprep.subr.bf16.mxu1 %v4260_v63 }
 0x77b   :  { %4263 = vmatpush3.bf16.msra.mxu1 %v4260_v63 }
 0x77c   :  { %4265 = vmatprep.subr.bf16.mxu1 %v4264_v19 }
 0x77f   :  { %4267 = vmatpush3.bf16.msra.mxu1 %v4264_v19 }
 0x780   :  { %4269 = vmatprep.subr.bf16.mxu1 %v4268_v14 }
 0x783   :  { %4271 = vmatpush3.bf16.msra.mxu1 %v4268_v14 }
 0x784   :  { %4273 = vmatprep.subr.bf16.mxu1 %v4272_v50 }
 0x787   :  { %4275 = vmatpush3.bf16.msra.mxu1 %v4272_v50 }
 0x788   :  { %4277 = vmatprep.subr.bf16.mxu1 %v4276_v59 }
 0x78b   :  { %4279 = vmatpush3.bf16.msra.mxu1 %v4276_v59 }
 0x831   :  { %v2998_v48 = vpop.f32.mrb[56].mxu1 }
 0x832   :  { %v4281_v32 = vadd.f32 %v6203_v31, %v2998_v48  ;;  %v3000_v17 = vpop.f32.mrb[57].mxu1  ;;  %v6208_v5 = vpop.f32.mrb[88].mxu0 }
 0x833   :  { %v4283_v42 = vadd.f32 %v6205_v43, %v3000_v17  ;;  %v3002_v20 = vpop.f32.mrb[58].mxu1  ;;  %v6211_v62 = vpop.f32.mrb[89].mxu0 }
 0x834   :  { %v3808_v10 = vmul.f32 -1.442695, %v4281_v32  ;;  %v4285_v34 = vadd.f32 %v6203_v31, %v3002_v20  ;;  %v3004_v26 = vpop.f32.mrb[59].mxu1  ;;  %v6214_v0 = vpop.f32.mrb[90].mxu0 }
 0x835   :  { %v3816_v18 = vmul.f32 -1.442695, %v4283_v42  ;;  %v4287_v60 = vadd.f32 %v6205_v43, %v3004_v26  ;;  %v6217_v22 = vpop.f32.mrb[91].mxu0 }
 0x836   :  { %4696 = vpow2.f32 %v3808_v10  ;;  %v3809_v38 = vmul.f32 -1.442695, %v4285_v34  ;;  %v6236_v10 = vrot.slane %v6188_v25, %v5793_v37 }
 0x837   :  { %v3817_v58 = vmul.f32 -1.442695, %v4287_v60  ;;  %v6241_v60 = vrot.slane %v6193_v40, %v5793_v37 }
 0x838   :  { %4698 = vpow2.f32 %v3809_v38  ;;  %v2753_v25 = vadd.f32 %v6120_v52, %v6236_v10 }
 0x839   :  { %4700 = vpow2.f32 %v3816_v18  ;;  %v3008_v36 = vpop.f32.mrb[60].mxu1 }
 0x83a   :  { %v4289_v29 = vadd.f32 %v6203_v31, %v3008_v36  ;;  %v3010_v3 = vpop.f32.mrb[61].mxu1  ;;  %v6220_v49 = vpop.f32.mrb[92].mxu0  ;;  %4702 = vpow2.f32 %v3817_v58 }
 0x83b   :  { %v4291_v1 = vadd.f32 %v6205_v43, %v3010_v3  ;;  %v3012_v30 = vpop.f32.mrb[62].mxu1  ;;  %v6223_v35 = vpop.f32.mrb[93].mxu0 }
 0x83c   :  { %v3810_v4 = vmul.f32 -1.442695, %v4289_v29  ;;  %v4293_v9 = vadd.f32 %v6203_v31, %v3012_v30  ;;  %v3014_v39 = vpop.f32.mrb[63].mxu1  ;;  %v6226_v63 = vpop.f32.mrb[94].mxu0 }
 0x83d   :  { %v6228_v61 = vpop.f32.mrb[95].mxu0  ;;  %v3818_v33 = vmul.f32 -1.442695, %v4291_v1  ;;  %v4295_v19 = vadd.f32 %v6205_v43, %v3014_v39 }
 0x83e   :  { %4704 = vpow2.f32 %v3810_v4  ;;  %v3811_v51 = vmul.f32 -1.442695, %v4293_v9 }
 0x83f   :  { %v3819_v50 = vmul.f32 -1.442695, %v4295_v19  ;;  %v2756_v19 = vadd.f32 %v6124_v46, %v6236_v10 }
 0x840   :  { %v4697_v6 = vpop.eup %4696  ;;  %4706 = vpow2.f32 %v3811_v51 }
 0x841   :  { %v3134_v14 = vadd.f32 1.0, %v4697_v6  ;;  %v3018_v15 = vpop.f32.mrb[64].mxu1  ;;  %4708 = vpow2.f32 %v3818_v33  ;;  %v3072_v6 = vadd.f32 %v6211_v62, %v6241_v60 }
 0x842   :  { %v4699_v28 = vpop.eup %4698  ;;  %v4297_v11 = vadd.f32 %v6203_v31, %v3018_v15  ;;  %v3020_v47 = vpop.f32.mrb[65].mxu1 }
 0x843   :  { %v4701_v59 = vpop.eup %4700  ;;  %4710 = vrcp.f32 %v3134_v14  ;;  %v3135_v56 = vadd.f32 1.0, %v4699_v28  ;;  %v3022_v21 = vpop.f32.mrb[66].mxu1  ;;  %v4299_v42 = vadd.f32 %v6205_v43, %v3020_v47 }
 0x844   :  { %v3812_v23 = vmul.f32 -1.442695, %v4297_v11  ;;  %v4301_v16 = vadd.f32 %v6203_v31, %v3022_v21  ;;  %v3024_v48 = vpop.f32.mrb[67].mxu1  ;;  %v4703_v32 = vpop.eup %4702  ;;  %v3190_v17 = vadd.f32 1.0, %v4701_v59 }
 0x845   :  { %4712 = vrcp.f32 %v3135_v56  ;;  %v3191_v26 = vadd.f32 1.0, %v4703_v32  ;;  %v4303_v18 = vadd.f32 %v6205_v43, %v3024_v48  ;;  %v3820_v29 = vmul.f32 -1.442695, %v4299_v42 }
 0x846   :  { %4714 = vpow2.f32 %v3819_v50  ;;  %v3813_v20 = vmul.f32 -1.442695, %v4301_v16  ;;  %v2761_v32 = vadd.f32 %v6118_v13, %v6236_v10  ;;  %v3083_v13 = vadd.f32 %v6214_v0, %v6241_v60 }
 0x847   :  { %4716 = vpow2.f32 %v3812_v23  ;;  %v3821_v39 = vmul.f32 -1.442695, %v4303_v18 }
 0x848   :  { %v4705_v34 = vpop.eup %4704  ;;  %4718 = vpow2.f32 %v3813_v20 }
 0x849   :  { %v3136_v38 = vadd.f32 1.0, %v4705_v34  ;;  %v3028_v58 = vpop.f32.mrb[68].mxu1  ;;  %4720 = vrcp.f32 %v3190_v17 }
 0x84a   :  { %v4707_v36 = vpop.eup %4706  ;;  %v4305_v3 = vadd.f32 %v6203_v31, %v3028_v58  ;;  %v3030_v1 = vpop.f32.mrb[69].mxu1 }
 0x84b   :  { %4722 = vrcp.f32 %v3136_v38  ;;  %v3137_v30 = vadd.f32 1.0, %v4707_v36  ;;  %v3032_v4 = vpop.f32.mrb[70].mxu1  ;;  %v4709_v9 = vpop.eup %4708  ;;  %v4307_v52 = vadd.f32 %v6205_v43, %v3030_v1 }
 0x84c   :  { %4724 = vrcp.f32 %v3191_v26  ;;  %v3814_v37 = vmul.f32 -1.442695, %v4305_v3  ;;  %v4309_v40 = vadd.f32 %v6203_v31, %v3032_v4  ;;  %v3034_v33 = vpop.f32.mrb[71].mxu1  ;;  %v3192_v50 = vadd.f32 1.0, %v4709_v9 }
 0x84d   :  { %v4711_v51 = vpop.eup %4710  ;;  %4726 = vrcp.f32 %v3137_v30  ;;  %v3075_v31 = vadd.f32 %v6217_v22, %v6241_v60  ;;  %v4311_v62 = vadd.f32 %v6205_v43, %v3034_v33  ;;  %v3822_v23 = vmul.f32 -1.442695, %v4307_v52 }
 0x84e   :  { %v3214_v14 = vmul.f32 %v4711_v51, %v2753_v25  ;;  %4728 = vpow2.f32 %v3820_v29  ;;  %v3815_v15 = vmul.f32 -1.442695, %v4309_v40  ;;  %v2764_v43 = vadd.f32 %v6122_v27, %v6236_v10 }
 0x84f   :  { %v4713_v28 = vpop.eup %4712  ;;  %4730 = vpow2.f32 %v3814_v37  ;;  %v3823_v20 = vmul.f32 -1.442695, %v4311_v62  ;;  %v3080_v26 = vadd.f32 %v6208_v5, %v6241_v60 }
 0x850   :  { %v4715_v11 = vpop.eup %4714  ;;  %v3222_v47 = vadd.f32 %v3214_v14, %v3072_v6  ;;  %v3215_v59 = vmul.f32 %v4713_v28, %v2756_v19  ;;  %4732 = vpow2.f32 %v3821_v39  ;;  %v2769_v19 = vadd.f32 %v6131_v7, %v6236_v10 }
 0x851   :  { %v4717_v46 = vpop.eup %4716  ;;  %4734 = vpow2.f32 %v3815_v15  ;;  %v3193_v17 = vadd.f32 1.0, %v4715_v11  ;;  %v2772_v11 = vadd.f32 %v6135_v57, %v6236_v10 }
 0x852   :  { %4736 = vtanh.f32 %v3222_v47  ;;  %v3223_v56 = vadd.f32 %v3215_v59, %v3075_v31  ;;  %v3138_v21 = vadd.f32 1.0, %v4717_v46  ;;  %v4719_v16 = vpop.eup %4718  ;;  %v3091_v46 = vadd.f32 %v6228_v61, %v6241_v60 }
 0x853   :  { %4738 = vrcp.f32 %v3192_v50  ;;  %v4721_v48 = vpop.eup %4720  ;;  %v3139_v42 = vadd.f32 1.0, %v4719_v16 }
 0x854   :  { %4740 = vtanh.f32 %v3223_v56  ;;  %v3238_v4 = vsub.f32 1.0, %v4721_v48  ;;  %v3254_v40 = vmul.f32 %v4721_v48, %v6071_v8  ;;  %v3088_v8 = vadd.f32 %v6223_v35, %v6241_v60 }
 0x855   :  { %v4723_v22 = vpop.eup %4722  ;;  %4742 = vrcp.f32 %v3138_v21 }
 0x856   :  { %v4725_v34 = vpop.eup %4724  ;;  %v3216_v18 = vmul.f32 %v4723_v22, %v2761_v32  ;;  %4744 = vpow2.f32 %v3822_v23 }
 0x857   :  { %v4727_v38 = vpop.eup %4726  ;;  %4746 = vrcp.f32 %v3139_v42  ;;  %v3239_v0 = vsub.f32 1.0, %v4725_v34  ;;  %v3255_v15 = vmul.f32 %v4725_v34, %v6073_v41 }
 0x858   :  { %v4729_v58 = vpop.eup %4728  ;;  %v3224_v36 = vadd.f32 %v3216_v18, %v3080_v26  ;;  %v3217_v29 = vmul.f32 %v4727_v38, %v2764_v43  ;;  %4748 = vrcp.f32 %v3193_v17  ;;  %v2777_v17 = vadd.f32 %v6129_v2, %v6236_v10 }
 0x859   :  { %v4731_v3 = vpop.eup %4730  ;;  %4750 = vpow2.f32 %v3823_v20  ;;  %v3194_v9 = vadd.f32 1.0, %v4729_v58  ;;  %v2780_v26 = vadd.f32 %v6133_v53, %v6236_v10  ;;  %v3099_v53 = vadd.f32 %v6226_v63, %v6241_v60 }
 0x85a   :  { %v4733_v1 = vpop.eup %4732  ;;  %4752 = vtanh.f32 %v3224_v36  ;;  %v3225_v25 = vadd.f32 %v3217_v29, %v3083_v13  ;;  %v3140_v27 = vadd.f32 1.0, %v4731_v3 }
 0x85b   :  { %v4735_v30 = vpop.eup %4734  ;;  %v3195_v6 = vadd.f32 1.0, %v4733_v1 }
 0x85c   :  { %v4737_v5 = vpop.eup %4736  ;;  %4754 = vtanh.f32 %v3225_v25  ;;  %v3141_v39 = vadd.f32 1.0, %v4735_v30 }
 0x85d   :  { %v4739_v37 = vpop.eup %4738  ;;  %v3246_v33 = vmul.f32 %v4737_v5, %v3238_v4  ;;  %4756 = vrcp.f32 %v3140_v27 }
 0x85e   :  { %v4741_v51 = vpop.eup %4740  ;;  %4758 = vrcp.f32 %v3141_v39  ;;  %v3240_v56 = vsub.f32 1.0, %v4739_v37  ;;  %v3256_v16 = vmul.f32 %v4739_v37, %v6080_v12  ;;  %v3096_v12 = vadd.f32 %v6220_v49, %v6241_v60 }
 0x85f   :  { %v4743_v14 = vpop.eup %4742  ;;  %v3262_v52 = vadd.f32 %v3254_v40, %v3246_v33  ;;  %v3247_v28 = vmul.f32 %v4741_v51, %v3239_v0  ;;  %4760 = vrcp.f32 %v3194_v9 }
 0x860   :  { %v4745_v50 = vpop.eup %4744  ;;  %v3218_v47 = vmul.f32 %v4743_v14, %v2769_v19  ;;  %4762 = vrcp.f32 %v3195_v6 }
 0x861   :  { %v4747_v31 = vpop.eup %4746  ;;  %3270 = vst [vmem:[#allocation25] sm:$0xff] %v3262_v52  ;;  %v3263_v59 = vadd.f32 %v3255_v15, %v3247_v28  ;;  %v3196_v23 = vadd.f32 1.0, %v4745_v50 }
 0x862   :  { %v4749_v7 = vpop.eup %4748  ;;  %v3226_v62 = vadd.f32 %v3218_v47, %v3088_v8  ;;  %v3219_v41 = vmul.f32 %v4747_v31, %v2772_v11 }
 0x863   :  { %v4751_v57 = vpop.eup %4750  ;;  %3271 = vst [vmem:[#allocation25 + $0x8] sm:$0xff] %v3263_v59  ;;  %v3241_v48 = vsub.f32 1.0, %v4749_v7  ;;  %v3257_v43 = vmul.f32 %v4749_v7, %v6082_v45 }
 0x864   :  { %v4753_v35 = vpop.eup %4752  ;;  %4764 = vtanh.f32 %v3226_v62  ;;  %v3227_v21 = vadd.f32 %v3219_v41, %v3091_v46  ;;  %v3197_v42 = vadd.f32 1.0, %v4751_v57 }
 0x865   :  { %v3248_v61 = vmul.f32 %v4753_v35, %v3240_v56 }
 0x866   :  { %v4755_v32 = vpop.eup %4754  ;;  %4766 = vtanh.f32 %v3227_v21 }
 0x867   :  { %v4757_v22 = vpop.eup %4756  ;;  %v3264_v20 = vadd.f32 %v3256_v16, %v3248_v61  ;;  %v3249_v34 = vmul.f32 %v4755_v32, %v3241_v48  ;;  %4768 = vrcp.f32 %v3196_v23 }
 0x868   :  { %v3220_v18 = vmul.f32 %v4757_v22, %v2777_v17  ;;  %v4759_v2 = vpop.eup %4758  ;;  %4770 = vrcp.f32 %v3197_v42 }
 0x869   :  { %3272 = vst [vmem:[#allocation25 + $0x10] sm:$0xff] %v3264_v20  ;;  %v3265_v38 = vadd.f32 %v3257_v43, %v3249_v34  ;;  %v4761_v45 = vpop.eup %4760  ;;  %v3221_v58 = vmul.f32 %v4759_v2, %v2780_v26 }
 0x86a   :  { %v3228_v10 = vadd.f32 %v3220_v18, %v3096_v12  ;;  %v4763_v49 = vpop.eup %4762  ;;  %v3242_v36 = vsub.f32 1.0, %v4761_v45  ;;  %v3258_v1 = vmul.f32 %v4761_v45, %v6089_v54 }
 0x86b   :  { %3273 = vst [vmem:[#allocation25 + $0x18] sm:$0xff] %v3265_v38  ;;  %v3229_v13 = vadd.f32 %v3221_v58, %v3099_v53  ;;  %v3243_v25 = vsub.f32 1.0, %v4763_v49  ;;  %v3259_v30 = vmul.f32 %v4763_v49, %v6091_v55 }
 0x86c   :  { %4772 = vtanh.f32 %v3228_v10 }
 0x86d   :  { %4774 = vtanh.f32 %v3229_v13 }
 0x86e   :  { %v4765_v29 = vpop.eup %4764 }
 0x86f   :  { %v3250_v3 = vmul.f32 %v4765_v29, %v3242_v36 }
 0x870   :  { %v4767_v63 = vpop.eup %4766 }
 0x871   :  { %v3266_v60 = vadd.f32 %v3258_v1, %v3250_v3  ;;  %v3251_v27 = vmul.f32 %v4767_v63, %v3243_v25  ;;  %v4769_v4 = vpop.eup %4768 }
 0x872   :  { %v4771_v54 = vpop.eup %4770  ;;  %v3244_v9 = vsub.f32 1.0, %v4769_v4  ;;  %v3260_v37 = vmul.f32 %v4769_v4, %v6111_v44 }
 0x873   :  { %3274 = vst [vmem:[#allocation25 + $0x20] sm:$0xff] %v3266_v60  ;;  %v3267_v5 = vadd.f32 %v3259_v30, %v3251_v27  ;;  %v3245_v40 = vsub.f32 1.0, %v4771_v54  ;;  %v3261_v19 = vmul.f32 %v4771_v54, %v6113_v24 }
 0x875   :  { %3275 = vst [vmem:[#allocation25 + $0x28] sm:$0xff] %v3267_v5 }
 0x876   :  { %v4773_v55 = vpop.eup %4772 }
 0x877   :  { %v3252_v39 = vmul.f32 %v4773_v55, %v3244_v9  ;;  %v4775_v33 = vpop.eup %4774 }
 0x878   :  { %v3253_v51 = vmul.f32 %v4775_v33, %v3245_v40 }
 0x879   :  { %v3268_v0 = vadd.f32 %v3260_v37, %v3252_v39 }
 0x87a   :  { %v3269_v44 = vadd.f32 %v3261_v19, %v3253_v51 }
 0x87b   :  { %3276 = vst [vmem:[#allocation25 + $0x30] sm:$0xff] %v3268_v0 }
 0x87c   :  { %3277 = vst [vmem:[#allocation25 + $0x38] sm:$0xff] %v3269_v44 }
 0x883   :  { %v3281_v24 = vld [vmem:[%s3280_s6] sm:$0x1]  ;;  %s3306_s6 = scalar_lea.vmem [#allocation25], %s6290_s29  ;;  %s3354_s29 = scalar_lea.vmem [#allocation25], %s6323_s2 }
 0x884   :  { %v3283_v6 = vld [vmem:[%s3282_s0] sm:$0x1]  ;;  %s3312_s0 = scalar_lea.vmem [#allocation25], %s6297_s30  ;;  %s6513_s30 = sld [smem:[#allocation36_spill]] }
 0x885   :  { %v3289_v14 = vld [vmem:[%s3288_s12] sm:$0x1]  ;;  %v3284_v52 = vmul.f32 %v3283_v6, %v3281_v24  ;;  %s3320_s12 = scalar_lea.vmem [#allocation25], %s6301_s1  ;;  %s6514_s1 = sld [smem:[#allocation37_spill]] }
 0x886   :  { %v3291_v15 = vld [vmem:[%s3290_s27] sm:$0x1]  ;;  %s3314_s27 = scalar_lea.vmem [#allocation25], %s6299_s7  ;;  %s3360_s7 = scalar_lea.vmem [#allocation25], %s6325_s28 }
 0x887   :  { %v3297_v28 = vld [vmem:[%s3296_s25] sm:$0x1]  ;;  %v3292_v11 = vmul.f32 %v3291_v15, %v3289_v14  ;;  %3285 = vst [vmem:[#allocation2] sm:$0x1] %v3284_v52  ;;  %s3322_s25 = scalar_lea.vmem [#allocation25], %s6303_s13  ;;  %s6515_s13 = sld [smem:[#allocation38_spill]] }
 0x888   :  { %v3299_v50 = vld [vmem:[%s3298_s26] sm:$0x1]  ;;  %s3328_s26 = scalar_lea.vmem [#allocation25], %s6307_s14  ;;  %s3362_s14 = scalar_lea.vmem [#allocation25], %s6327_s5 }
 0x889   :  { %v3300_v8 = vmul.f32 %v3299_v50, %v3297_v28  ;;  %v3305_v47 = vld [vmem:[%s3304_s16] sm:$0x1]  ;;  %3293 = vst [vmem:[#allocation2 + $0x1] sm:$0x1] %v3292_v11  ;;  %s6519_s28 = sld [smem:[#allocation42_spill]]  ;;  %s3386_s5 = scalar_lea.vmem [#allocation25], %s6516_s20 }
 0x88a   :  { %v3307_v31 = vld [vmem:[%s3306_s6] sm:$0x1]  ;;  %s3376_s11 = scalar_lea.vmem [#allocation25], %s6513_s30 }
 0x88b   :  { %v3313_v59 = vld [vmem:[%s3312_s0] sm:$0x1]  ;;  %v3308_v7 = vmul.f32 %v3307_v31, %v3305_v47  ;;  %3301 = vst [vmem:[#allocation2 + $0x2] sm:$0x1] %v3300_v8  ;;  %s3378_s2 = scalar_lea.vmem [#allocation25], %s6514_s1  ;;  %s3402_s0 = scalar_lea.vmem [#allocation25], %s6349_s3 }
 0x88c   :  { %v3315_v46 = vld [vmem:[%s3314_s27] sm:$0x1]  ;;  %s5087_s27 = smov [#allocation23]  }
 0x88d   :  { %v3321_v62 = vld [vmem:[%s3320_s12] sm:$0x1]  ;;  %v3316_v57 = vmul.f32 %v3315_v46, %v3313_v59  ;;  %3309 = vst [vmem:[#allocation2 + $0x3] sm:$0x1] %v3308_v7  ;;  %s3384_s16 = scalar_lea.vmem [#allocation25], %s6515_s13  ;;  %s3528_s12 = sshll.u32 %s5087_s27, 4  ;;  %s3529_s12 = int_to_ptr.vmem [resolvable:$true] %s3528_s12 }
 0x88e   :  { %v3323_v41 = vld [vmem:[%s3322_s25] sm:$0x1]  ;;  %s5088_s25 = smov [#allocation22]   ;;  %p4989_p5 = scmp.lt.s32.totalorder %s3529_s12, %s3529_s12 }
 0x88f   :  { %v3324_v56 = vmul.f32 %v3323_v41, %v3321_v62  ;;  %v3329_v35 = vld [vmem:[%s3328_s26] sm:$0x1]  ;;  %3317 = vst [vmem:[#allocation2 + $0x4] sm:$0x1] %v3316_v57  ;;  %s3400_s6 = scalar_lea.vmem [#allocation25], %s6519_s28  ;;  %s3516_s26 = sshll.u32 %s5088_s25, 4  ;;  %s3517_s26 = int_to_ptr.vmem [resolvable:$true] %s3516_s26 }
 0x890   :  { %v3331_v21 = vld [vmem:[%s3330_s17] sm:$0x1]  ;;  %s4984_s17 = scalar_lea.vmem %s3529_s12, 1024 }
 0x891   :  { %v3337_v23 = vld [vmem:[%s3336_s18] sm:$0x1]  ;;  %v3332_v61 = vmul.f32 %v3331_v21, %v3329_v35  ;;  %3325 = vst [vmem:[#allocation2 + $0x5] sm:$0x1] %v3324_v56  ;;  %p4985_p4 = scmp.ne.s32.totalorder %s3529_s12, %s4984_s17  ;;  %p4990_p6 = scmp.lt.s32.totalorder %s4984_s17, %s4984_s17 }
 0x892   :  { %v3339_v16 = vld [vmem:[%s3338_s4] sm:$0x1] }
 0x893   :  { %v3345_v48 = vld [vmem:[%s3344_s24] sm:$0x1]  ;;  %v3340_v17 = vmul.f32 %v3339_v16, %v3337_v23  ;;  %3333 = vst [vmem:[#allocation2 + $0x6] sm:$0x1] %v3332_v61  ;;  %p4991_p7 = por %p4990_p6, %p4989_p5 }
 0x894   :  { %v3347_v32 = vld [vmem:[%s3346_s15] sm:$0x1] }
 0x895   :  { %v3348_v42 = vmul.f32 %v3347_v32, %v3345_v48  ;;  %v3353_v22 = vld [vmem:[%s3352_s8] sm:$0x1]  ;;  %3341 = vst [vmem:[#allocation2 + $0x7] sm:$0x1] %v3340_v17  ;;  %p4992_p8 = pnand %p4991_p7, %p4985_p4 }
 0x896   :  { %v3355_v20 = vld [vmem:[%s3354_s29] sm:$0x1] }
 0x897   :  { %v3361_v34 = vld [vmem:[%s3360_s7] sm:$0x1]  ;;  %v3356_v43 = vmul.f32 %v3355_v20, %v3353_v22  ;;  %3349 = vst [vmem:[#allocation2 + $0x8] sm:$0x1] %v3348_v42 }
 0x898   :  { %v3363_v26 = vld [vmem:[%s3362_s14] sm:$0x1] }
 0x899   :  { %v3369_v12 = vld [vmem:[%s3368_s10] sm:$0x1]  ;;  %v3364_v2 = vmul.f32 %v3363_v26, %v3361_v34  ;;  %3357 = vst [vmem:[#allocation2 + $0x9] sm:$0x1] %v3356_v43 }
 0x89a   :  { %v3371_v18 = vld [vmem:[%s3370_s9] sm:$0x1] }
 0x89b   :  { %v3372_v38 = vmul.f32 %v3371_v18, %v3369_v12  ;;  %v3377_v45 = vld [vmem:[%s3376_s11] sm:$0x1]  ;;  %3365 = vst [vmem:[#allocation2 + $0xa] sm:$0x1] %v3364_v2 }
 0x89c   :  { %v3379_v53 = vld [vmem:[%s3378_s2] sm:$0x1] }
 0x89d   :  { %v3385_v10 = vld [vmem:[%s3384_s16] sm:$0x1]  ;;  %v3380_v58 = vmul.f32 %v3379_v53, %v3377_v45  ;;  %3373 = vst [vmem:[#allocation2 + $0xb] sm:$0x1] %v3372_v38 }
 0x89e   :  { %v3387_v49 = vld [vmem:[%s3386_s5] sm:$0x1] }
 0x89f   :  { %v3393_v13 = vld [vmem:[%s3392_s23] sm:$0x1]  ;;  %v3388_v29 = vmul.f32 %v3387_v49, %v3385_v10  ;;  %3381 = vst [vmem:[#allocation2 + $0xc] sm:$0x1] %v3380_v58 }
 0x8a0   :  { %v3395_v36 = vld [vmem:[%s3394_s19] sm:$0x1] }
 0x8a1   :  { %v3396_v3 = vmul.f32 %v3395_v36, %v3393_v13  ;;  %v3401_v1 = vld [vmem:[%s3400_s6] sm:$0x1]  ;;  %3389 = vst [vmem:[#allocation2 + $0xd] sm:$0x1] %v3388_v29 }
 0x8a2   :  { %v3403_v25 = vld [vmem:[%s3402_s0] sm:$0x1] }
 0x8a3   :  { %v3404_v63 = vmul.f32 %v3403_v25, %v3401_v1  ;;  %3397 = vst [vmem:[#allocation2 + $0xe] sm:$0x1] %v3396_v3  ;;  %v3406_v60 = vld [vmem:[#allocation2] sm:$0xff] }
 0x8a4   :  { %4245 = vmatprep.mubr.f32.mxu1 %v3406_v60 }
 0x8a5   :  { %3405 = vst [vmem:[#allocation2 + $0xf] sm:$0x1] %v3404_v63 }
 0x8ac   :  { %v3407_v27 = vld [vmem:[#allocation2 + $0x8] sm:$0xff] }
 0x8ad   :  { %4246 = vmatmul.mubr.f32.vlgmr.msra.gmra.mrb[72].mxu1 %v3407_v27 }
 0x8ae   :  { %4995 = shalt.err (!%p4992_p8)
}
 0x8af   :  { %s6520_s4 = sld [smem:[#allocation57_spill]] }
 0x8b5   :  { %s4996_s24 = scalar_lea.hbm %s6520_s4, 1024 }
 0x8b6   :  { %p4997_p9 = scmp.ne.s32.totalorder %s6520_s4, %s4996_s24  ;;  %p5000_p10 = scmp.lt.u32.totalorder %s4996_s24, %s6520_s4 }
 0x8b8   :  { %p5002_p11 = pnand %p5000_p10, %p4997_p9 }
 0x8ba   :  { %5005 = shalt.err (!%p5002_p11)
}
 0x8bb   :  { %s6521_s7 = smov 8   ;;  %s6522_s1 = smov 128  }
 0x8bc   :  { %3534 = dma.vmem_to_hbm [thread:$0]  %s3529_s12, 1024, %s6520_s4, [#allocation24], %s6522_s1, %s6522_s1, %s6521_s7  }
 0x8bd   :  { %s5006_s10 = scalar_lea.vmem %s3517_s26, 1024  ;;  %p5011_p13 = scmp.lt.s32.totalorder %s3517_s26, %s3517_s26 }
 0x8be   :  { %p5007_p12 = scmp.ne.s32.totalorder %s3517_s26, %s5006_s10  ;;  %p5012_p0 = scmp.lt.s32.totalorder %s5006_s10, %s5006_s10 }
 0x8c0   :  { %p5013_p1 = por %p5012_p0, %p5011_p13 }
 0x8c2   :  { %p5014_p2 = pnand %p5013_p1, %p5007_p12 }
 0x8c4   :  { %5017 = shalt.err (!%p5014_p2)
}
 0x8c5   :  { %s6523_s21 = sld [smem:[#allocation56_spill]] }
 0x8cb   :  { %s5018_s22 = scalar_lea.hbm %s6523_s21, 1024 }
 0x8cc   :  { %p5019_p3 = scmp.ne.s32.totalorder %s6523_s21, %s5018_s22  ;;  %p5022_p4 = scmp.lt.u32.totalorder %s5018_s22, %s6523_s21 }
 0x8ce   :  { %p5024_p5 = pnand %p5022_p4, %p5019_p3 }
 0x8d0   :  { %5027 = shalt.err (!%p5024_p5)
}
 0x8d1   :  { %3522 = dma.vmem_to_hbm [thread:$0]  %s3517_s26, 1024, %s6523_s21, [#allocation6], %s6522_s1, %s6522_s1, %s6521_s7  }
 0x8d2   :  { %s5089_s19 = smov [#allocation25]  }
 0x8d3   :  { %s3540_s6 = sshll.u32 %s5089_s19, 4  ;;  %s3541_s6 = int_to_ptr.vmem [resolvable:$true] %s3540_s6 }
 0x8d4   :  { %s5028_s0 = scalar_lea.vmem %s3541_s6, 1024  ;;  %p5033_p7 = scmp.lt.s32.totalorder %s3541_s6, %s3541_s6 }
 0x8d5   :  { %p5029_p6 = scmp.ne.s32.totalorder %s3541_s6, %s5028_s0  ;;  %p5034_p8 = scmp.lt.s32.totalorder %s5028_s0, %s5028_s0 }
 0x8d7   :  { %p5035_p9 = por %p5034_p8, %p5033_p7 }
 0x8d9   :  { %p5036_p10 = pnand %p5035_p9, %p5029_p6 }
 0x8db   :  { %5039 = shalt.err (!%p5036_p10)
}
 0x8dc   :  { %s6524_s25 = sld [smem:[#allocation58_spill]] }
 0x8e2   :  { %s5040_s17 = scalar_lea.hbm %s6524_s25, 1024 }
 0x8e3   :  { %p5041_p11 = scmp.ne.s32.totalorder %s6524_s25, %s5040_s17  ;;  %p5044_p12 = scmp.lt.u32.totalorder %s5040_s17, %s6524_s25 }
 0x8e5   :  { %p5046_p13 = pnand %p5044_p12, %p5041_p11 }
 0x8e7   :  { %5049 = shalt.err (!%p5046_p13)
}
 0x8e8   :  { %3546 = dma.vmem_to_hbm [thread:$0]  %s3541_s6, 1024, %s6524_s25, [#allocation24], %s6522_s1, %s6522_s1, %s6521_s7   ;;  %v3854_v30 = vld [vmem:[#allocation3] ss:$0 sm:$0xff]  ;;  %vm3506_vm10 = vcmask 7168  }
 0x8e9   :  { %s6525_s30 = sld [smem:[#allocation55_spill]] }
 0x980   :  { %v4247_v4 = vpop.f32.mrb[72].mxu1 }
 0x981   :  { %v3503_v5 = vadd.f32 %v4247_v4, %v3854_v30  ;;  %v3497_v54 = vpop.f32.mrb[73].mxu1 }
 0x982   :  { %v3498_v9 = vadd.f32 %v3854_v30, %v3497_v54 }
 0x983   :  { %3508 = vst.msk [vmem:[%s6525_s30 + $0x8] sm:$0xff] %vm3506_vm10, %v3503_v5 }
 0x984   :  { %3507 = vst.msk [vmem:[%s6525_s30] sm:$0xff] %vm3506_vm10, %v3498_v9 }
 0x985   :  { %5066 = dma.done.wait [#allocation6], 1024  }
 0x986   :  { %5067 = vsyncadd [#allocation6], 4294966272 }
 0x987   :  { %5068 = dma.done.wait [#allocation24], 2048  }
 0x988   :  { %5069 = vsyncadd [#allocation24], 4294965248 }
 0x989   :  { %3558 = vsyncpa [#allocation5], 1 }
 0x98a   :  { %3559 = vsyncpa [#allocation9], 1 }
 0x98b   :  { %3560 = vsyncpa [#allocation12], 1 }
 0x98c   :  { %3561 = vsyncpa [#allocation15], 1 }
 0x98d   :  { %3562 = vsyncpa [#allocation21], 1 }
 0x98e   :  { %3563 = vsyncpa [#allocation6], 1 }
 0x98f   :  { %3564 = vsyncpa [#allocation24], 1 }
 0x990   :  { %3565 = vsyncpa [#allocation7], 1 }
 0x991   :  { %3566 = vsyncpa [#allocation18], 1 }

</bundles_post_ra>
